<compile_context>
chip_gen: v7x
topology: tpu7x:2x2x1
jax: 0.10.0
libtpu: 0.0.40
codegen_flags: <defaults>
</compile_context>

<pallas_src>
import jax
import jax.numpy as jnp
import numpy as np
from jax import lax
from jax.experimental import pallas as pl
from jax.experimental.pallas import tpu as pltpu


def _geometry(D, H, W):
    """Padded-volume geometry for the voxels-on-lanes layout."""
    Dp, Hp, Wp = D + 2, H + 2, W + 2
    P = Dp * Hp * Wp                    # padded voxels per batch element
    center = Hp * Wp + Wp + 1           # flat offset of the (1,1,1) center tap
    lead = (-center) % 128              # leading zero cols -> aligned center col
    M = P - 2 * center                  # voxels whose conv output is computed
    MPAD = ((M + 127) // 128) * 128     # computed lanes, padded to lane tiles
    FW = lead + 2 * center + MPAD       # feature-buffer / padded-input width
    return Dp, Hp, Wp, P, center, lead, M, MPAD, FW


def _make_rdb_kernel(D, H, W, C0, g, L):
    """Builds the fused RDB kernel for a static shape configuration."""
    Dp, Hp, Wp, P, center, lead, M, MPAD, FW = _geometry(D, H, W)
    CT = C0 + L * g                     # total concat channels
    K = 27 * CT                         # im2col rows (fixed tap/channel slots)
    cen = lead + center                 # column of first computed voxel (%128==0)
    taps = [lead + kd * Hp * Wp + kh * Wp + kw
            for kd in range(3) for kh in range(3) for kw in range(3)]

    def kernel(*refs):
        x_ref = refs[0]                 # (C0, FW)      f32 padded input
        w_refs = refs[1:1 + L]          # (g, 27*CT)    bf16 zero-padded weights
        w1_ref = refs[1 + L]            # (C0, CT)      bf16 1x1x1 weight
        o_ref = refs[2 + L]             # (C0, MPAD)    f32 output
        f_ref = refs[3 + L]             # (L*g, FW)     f32 dense-channel buffer
        im_ref = refs[4 + L]            # (27*CT, MPAD) bf16 im2col slab

        # Interior-voxel mask over the MPAD computed lanes, built from an
        # iota (float div + truncation; the +0.5 keeps the implicit floor
        # robust to division rounding; values here are small exact integers).
        m_idx = lax.broadcasted_iota(jnp.int32, (1, MPAD), 1).astype(jnp.float32)
        p = m_idx + (center + 0.5)
        d = (p / float(Hp * Wp)).astype(jnp.int32)
        rem = p - d.astype(jnp.float32) * float(Hp * Wp)
        h = (rem / float(Wp)).astype(jnp.int32)
        ww = (rem - h.astype(jnp.float32) * float(Wp)).astype(jnp.int32)
        mask = ((d >= 1) & (d <= D) & (h >= 1) & (h <= H)
                & (ww >= 1) & (ww <= W)).astype(jnp.float32)     # (1, MPAD)

        # Halo columns of the dense-channel buffer must read as zeros, and the
        # not-yet-filled channel slots of the slab must contribute 0 * w = 0.
        f_ref[...] = jnp.zeros((L * g, FW), jnp.float32)
        im_ref[...] = jnp.zeros((K, MPAD), jnp.bfloat16)

        # im2col of the input channels: filled ONCE (incremental slab), cast
        # to bf16 during the lane-dense window copies.
        for t, off in enumerate(taps):
            im_ref[t * CT:t * CT + C0, :] = (
                x_ref[:, off:off + MPAD].astype(jnp.bfloat16))

        for l in range(L):
            # One MXU matmul per dense layer: (g, 27*CT) @ (27*CT, MPAD),
            # bf16 operands, f32 accumulation.
            y = jnp.dot(w_refs[l][...], im_ref[...],
                        preferred_element_type=jnp.float32)
            # ReLU; zero halo lanes so they act as 'SAME' zero padding for the
            # next layer, then append as the next dense-channel slice.
            y = jnp.maximum(y, 0.0) * mask
            f_ref[l * g:(l + 1) * g, cen:cen + MPAD] = y
            if l + 1 < L:
                # Append ONLY the new g channels' 27 windows to the slab.
                for t, off in enumerate(taps):
                    r0 = t * CT + C0 + l * g
                    im_ref[r0:r0 + g, :] = (
                        f_ref[l * g:(l + 1) * g, off:off + MPAD]
                        .astype(jnp.bfloat16))

        # Fused 1x1x1 conv (bf16 operands, f32 accumulation) + f32 residual.
        # Split so the input never has to be copied into f_ref.
        x_c = x_ref[:, cen:cen + MPAD]                     # (C0, MPAD) f32
        f_c = f_ref[:, cen:cen + MPAD]                     # (L*g, MPAD) f32
        y = jnp.dot(w1_ref[:, 0:C0], x_c.astype(jnp.bfloat16),
                    preferred_element_type=jnp.float32)
        y = y + jnp.dot(w1_ref[:, C0:CT], f_c.astype(jnp.bfloat16),
                        preferred_element_type=jnp.float32)
        o_ref[...] = y + x_c

    return kernel


@jax.jit
def rdb_forward(x_ncdhw, dense_ws, w1x1):
    """RDB.forward (norm='None', bias=False).  x: (N, C, D, H, W) as in
    PyTorch.  dense_ws[i] is the i-th Conv3d weight in DHWIO layout
    (3, 3, 3, Cin_i, growthRate); w1x1 is (Ctot, C).  (Real PyTorch
    checkpoints store (Cout, Cin, kD, kH, kW) / (Cout, Cin, 1, 1, 1) and need
    a transpose at load time.)"""
    N, C0, D, H, W = x_ncdhw.shape
    L = len(dense_ws)
    g = dense_ws[0].shape[-1]
    Dp, Hp, Wp, P, center, lead, M, MPAD, FW = _geometry(D, H, W)
    CT = C0 + L * g

    # Zero-pad the spatial halo ONCE, flatten voxels onto the lane axis
    # (channels stay on sublanes), and pad so the first computed voxel is at
    # a lane-aligned column and every 3x3x3 tap window stays in bounds.
    xpad = jnp.pad(x_ncdhw, ((0, 0), (0, 0), (1, 1), (1, 1), (1, 1)))
    xflat = xpad.reshape(N, C0, P)
    xflat = jnp.pad(xflat, ((0, 0), (0, 0), (lead, FW - lead - P)))

    # Dense conv weights -> (g, 27*CT) bf16 with tap-major columns, zero
    # padded over the full concat-channel width so every layer can use the
    # same fixed-slot im2col slab.
    w_packed = []
    cin = C0
    for w in dense_ws:
        wt = jnp.transpose(w, (4, 0, 1, 2, 3)).reshape(g, 27, cin)
        wz = jnp.zeros((g, 27, CT), jnp.float32).at[:, :, :cin].set(wt)
        w_packed.append(wz.reshape(g, 27 * CT).astype(jnp.bfloat16))
        cin += g
    w1_t = jnp.transpose(w1x1, (1, 0)).astype(jnp.bfloat16)   # (C0, CT)

    kernel = _make_rdb_kernel(D, H, W, C0, g, L)
    out_pad = pl.pallas_call(
        kernel,
        out_shape=jax.ShapeDtypeStruct((N, C0, MPAD), jnp.float32),
        grid=(N,),
        in_specs=([pl.BlockSpec((None, C0, FW), lambda n: (n, 0, 0))]
                  + [pl.BlockSpec((g, 27 * CT), lambda n: (0, 0))
                     for _ in range(L)]
                  + [pl.BlockSpec((C0, CT), lambda n: (0, 0))]),
        out_specs=pl.BlockSpec((None, C0, MPAD), lambda n: (n, 0, 0)),
        scratch_shapes=[pltpu.VMEM((L * g, FW), jnp.float32),
                        pltpu.VMEM((27 * CT, MPAD), jnp.bfloat16)],
        compiler_params=pltpu.CompilerParams(
            dimension_semantics=("parallel",)),   # ~1.3 MiB VMEM; defaults ok
    )(xflat, *w_packed, w1_t)

    # Only the M computed voxels were written (halo lanes inside them are
    # exactly zero); pad back to the full padded volume, slice the interior.
    out_flat = jnp.pad(out_pad[:, :, :M], ((0, 0), (0, 0), (center, center)))
    out = out_flat.reshape(N, C0, Dp, Hp, Wp)
    return out[:, :, 1:D + 1, 1:H + 1, 1:W + 1]


def rdb_reference(x_ncdhw, dense_ws, w1x1, mxu_bf16=False):
    """Pure-JAX (lax conv) reference.  With mxu_bf16=True every matmul/conv
    operand is rounded to bf16 first, mirroring the kernel's MXU operand
    dtypes (accumulation and the residual add stay f32)."""
    x = jnp.transpose(x_ncdhw, (0, 2, 3, 4, 1))
    out = x
    for w in dense_ws:
        lhs, rhs = out, w
        if mxu_bf16:
            lhs = lhs.astype(jnp.bfloat16).astype(jnp.float32)
            rhs = rhs.astype(jnp.bfloat16).astype(jnp.float32)
        y = lax.conv_general_dilated(
            lhs, rhs, window_strides=(1, 1, 1), padding="SAME",
            dimension_numbers=("NDHWC", "DHWIO", "NDHWC"),
            precision=lax.Precision.HIGHEST)
        out = jnp.concatenate([out, jnp.maximum(y, 0.0)], axis=-1)
    lhs, rhs = out, w1x1
    if mxu_bf16:
        lhs = lhs.astype(jnp.bfloat16).astype(jnp.float32)
        rhs = rhs.astype(jnp.bfloat16).astype(jnp.float32)
    y = jnp.einsum("ndhwc,co->ndhwo", lhs, rhs,
                   precision=lax.Precision.HIGHEST) + x
    return jnp.transpose(y, (0, 4, 1, 2, 3))


if __name__ == "__main__":
    # Module config: RDB(nChannels=4, nDenselayer=2, growthRate=4, norm='None')
    nChannels, nDenselayer, growthRate = 4, 2, 4
    N, D, H, W = 2, 8, 8, 8

    key = jax.random.PRNGKey(0)
    k_x, *k_ws = jax.random.split(key, 2 + nDenselayer)

    x = jax.random.normal(k_x, (N, nChannels, D, H, W), jnp.float32)

    # Synthetic weights generated directly in DHWIO / (Ctot, C) layouts.
    dense_ws = []
    c = nChannels
    for i in range(nDenselayer):
        dense_ws.append(0.1 * jax.random.normal(
            k_ws[i], (3, 3, 3, c, growthRate), jnp.float32))
        c += growthRate
    w1x1 = 0.1 * jax.random.normal(k_ws[nDenselayer], (c, nChannels),
                                   jnp.float32)

    out = jax.block_until_ready(rdb_forward(x, dense_ws, w1x1))
    assert out.shape == x.shape

    # Tight check vs a reference that rounds all matmul operands to bf16
    # exactly like the kernel's MXU path does (small slack for f32
    # accumulation-order differences near bf16 rounding boundaries).
    ref_mxu = rdb_reference(x, dense_ws, w1x1, mxu_bf16=True)
    if not np.allclose(np.asarray(out), np.asarray(ref_mxu),
                       rtol=3e-3, atol=3e-3):
        raise AssertionError("Pallas RDB does not match bf16-operand reference")
    # Loose check vs the full-f32 reference (bf16 MXU operands are the only
    # intended numerical deviation).
    ref_f32 = rdb_reference(x, dense_ws, w1x1, mxu_bf16=False)
    if not np.allclose(np.asarray(out), np.asarray(ref_f32),
                       rtol=5e-2, atol=5e-2):
        raise AssertionError("Pallas RDB does not match f32 reference")
    print("KERNEL_OK")
</pallas_src>

<mosaic_0001>
module attributes {stable_mosaic.version = 11 : i64} {
  func.func @kernel(%arg0: i32, %arg1: memref<1x4x1135xf32, #tpu.memory_space<vmem>>, %arg2: memref<4x324xbf16, #tpu.memory_space<vmem>>, %arg3: memref<4x324xbf16, #tpu.memory_space<vmem>>, %arg4: memref<4x12xbf16, #tpu.memory_space<vmem>>, %arg5: memref<1x4x896xf32, #tpu.memory_space<vmem>>, %arg6: memref<8x1135xf32, #tpu.memory_space<vmem>>, %arg7: memref<324x896xbf16, #tpu.memory_space<vmem>>) attributes {dimension_semantics = [#tpu.dimension_semantics<parallel>], iteration_bounds = array<i64: 2>, scalar_prefetch = 0 : i64, scratch_operands = 2 : i64, tpu.core_type = #tpu.core_type<tc>, window_params = [{transform_indices = @transform_0, window_bounds = array<i64: 1, 4, 1135>}, {pipeline_mode = #tpu.pipeline_mode<synchronous>, transform_indices = @transform_1, window_bounds = array<i64: 4, 324>}, {pipeline_mode = #tpu.pipeline_mode<synchronous>, transform_indices = @transform_2, window_bounds = array<i64: 4, 324>}, {pipeline_mode = #tpu.pipeline_mode<synchronous>, transform_indices = @transform_3, window_bounds = array<i64: 4, 12>}, {transform_indices = @transform_4, window_bounds = array<i64: 1, 4, 896>}]} {
    %0 = tpu.iota {dimensions = array<i32: 1>} : vector<1x896xi32>
    %1 = arith.sitofp %0 : vector<1x896xi32> to vector<1x896xf32>
    %cst = arith.constant 1.115000e+02 : f32
    %2 = vector.broadcast %cst : f32 to vector<1x896xf32>
    %3 = arith.addf %1, %2 : vector<1x896xf32>
    %cst_0 = arith.constant 1.000000e+02 : f32
    %4 = vector.broadcast %cst_0 : f32 to vector<1x896xf32>
    %5 = arith.divf %3, %4 : vector<1x896xf32>
    %6 = arith.fptosi %5 : vector<1x896xf32> to vector<1x896xi32>
    %7 = arith.sitofp %6 : vector<1x896xi32> to vector<1x896xf32>
    %cst_1 = arith.constant 1.000000e+02 : f32
    %8 = vector.broadcast %cst_1 : f32 to vector<1x896xf32>
    %9 = arith.mulf %7, %8 : vector<1x896xf32>
    %10 = arith.subf %3, %9 : vector<1x896xf32>
    %cst_2 = arith.constant 1.000000e+01 : f32
    %11 = vector.broadcast %cst_2 : f32 to vector<1x896xf32>
    %12 = arith.divf %10, %11 : vector<1x896xf32>
    %13 = arith.fptosi %12 : vector<1x896xf32> to vector<1x896xi32>
    %14 = arith.sitofp %13 : vector<1x896xi32> to vector<1x896xf32>
    %cst_3 = arith.constant 1.000000e+01 : f32
    %15 = vector.broadcast %cst_3 : f32 to vector<1x896xf32>
    %16 = arith.mulf %14, %15 : vector<1x896xf32>
    %17 = arith.subf %10, %16 : vector<1x896xf32>
    %18 = arith.fptosi %17 : vector<1x896xf32> to vector<1x896xi32>
    %c1_i32 = arith.constant 1 : i32
    %19 = vector.broadcast %c1_i32 : i32 to vector<1x896xi32>
    %20 = arith.cmpi sge, %6, %19 : vector<1x896xi32>
    %c8_i32 = arith.constant 8 : i32
    %21 = vector.broadcast %c8_i32 : i32 to vector<1x896xi32>
    %22 = arith.cmpi sle, %6, %21 : vector<1x896xi32>
    %23 = arith.andi %20, %22 : vector<1x896xi1>
    %c1_i32_4 = arith.constant 1 : i32
    %24 = vector.broadcast %c1_i32_4 : i32 to vector<1x896xi32>
    %25 = arith.cmpi sge, %13, %24 : vector<1x896xi32>
    %26 = arith.andi %23, %25 : vector<1x896xi1>
    %c8_i32_5 = arith.constant 8 : i32
    %27 = vector.broadcast %c8_i32_5 : i32 to vector<1x896xi32>
    %28 = arith.cmpi sle, %13, %27 : vector<1x896xi32>
    %29 = arith.andi %26, %28 : vector<1x896xi1>
    %c1_i32_6 = arith.constant 1 : i32
    %30 = vector.broadcast %c1_i32_6 : i32 to vector<1x896xi32>
    %31 = arith.cmpi sge, %18, %30 : vector<1x896xi32>
    %32 = arith.andi %29, %31 : vector<1x896xi1>
    %c8_i32_7 = arith.constant 8 : i32
    %33 = vector.broadcast %c8_i32_7 : i32 to vector<1x896xi32>
    %34 = arith.cmpi sle, %18, %33 : vector<1x896xi32>
    %35 = arith.andi %32, %34 : vector<1x896xi1>
    %36 = arith.extui %35 : vector<1x896xi1> to vector<1x896xi32>
    %37 = arith.sitofp %36 : vector<1x896xi32> to vector<1x896xf32>
    %cst_8 = arith.constant 0.000000e+00 : f32
    %38 = vector.broadcast %cst_8 : f32 to vector<8x1135xf32>
    %c0 = arith.constant 0 : index
    %c0_9 = arith.constant 0 : index
    %39 = vector.load %arg6[%c0, %c0_9] : memref<8x1135xf32, #tpu.memory_space<vmem>>, vector<8x1135xf32>
    tpu.vector_store %arg6[%c0, %c0_9], %38 {strides = array<i32>} : memref<8x1135xf32, #tpu.memory_space<vmem>>, vector<8x1135xf32>,
    %cst_10 = arith.constant 0.000000e+00 : bf16
    %40 = vector.broadcast %cst_10 : bf16 to vector<324x896xbf16>
    %c0_11 = arith.constant 0 : index
    %c0_12 = arith.constant 0 : index
    %41 = vector.load %arg7[%c0_11, %c0_12] : memref<324x896xbf16, #tpu.memory_space<vmem>>, vector<324x896xbf16>
    tpu.vector_store %arg7[%c0_11, %c0_12], %40 {strides = array<i32>} : memref<324x896xbf16, #tpu.memory_space<vmem>>, vector<324x896xbf16>,
    %c0_13 = arith.constant 0 : index
    %c0_14 = arith.constant 0 : index
    %c17 = arith.constant 17 : index
    %42 = vector.load %arg1[%c0_13, %c0_14, %c17] : memref<1x4x1135xf32, #tpu.memory_space<vmem>>, vector<1x4x896xf32>
    %43 = vector.shape_cast %42 : vector<1x4x896xf32> to vector<4x896xf32>
    %44 = arith.truncf %43 : vector<4x896xf32> to vector<4x896xbf16>
    %c0_15 = arith.constant 0 : index
    %c0_16 = arith.constant 0 : index
    %45 = vector.load %arg7[%c0_15, %c0_16] : memref<324x896xbf16, #tpu.memory_space<vmem>>, vector<4x896xbf16>
    tpu.vector_store %arg7[%c0_15, %c0_16], %44 {strides = array<i32>} : memref<324x896xbf16, #tpu.memory_space<vmem>>, vector<4x896xbf16>,
    %c0_17 = arith.constant 0 : index
    %c0_18 = arith.constant 0 : index
    %c18 = arith.constant 18 : index
    %46 = vector.load %arg1[%c0_17, %c0_18, %c18] : memref<1x4x1135xf32, #tpu.memory_space<vmem>>, vector<1x4x896xf32>
    %47 = vector.shape_cast %46 : vector<1x4x896xf32> to vector<4x896xf32>
    %48 = arith.truncf %47 : vector<4x896xf32> to vector<4x896xbf16>
    %c12 = arith.constant 12 : index
    %c0_19 = arith.constant 0 : index
    %49 = vector.load %arg7[%c12, %c0_19] : memref<324x896xbf16, #tpu.memory_space<vmem>>, vector<4x896xbf16>
    tpu.vector_store %arg7[%c12, %c0_19], %48 {strides = array<i32>} : memref<324x896xbf16, #tpu.memory_space<vmem>>, vector<4x896xbf16>,
    %c0_20 = arith.constant 0 : index
    %c0_21 = arith.constant 0 : index
    %c19 = arith.constant 19 : index
    %50 = vector.load %arg1[%c0_20, %c0_21, %c19] : memref<1x4x1135xf32, #tpu.memory_space<vmem>>, vector<1x4x896xf32>
    %51 = vector.shape_cast %50 : vector<1x4x896xf32> to vector<4x896xf32>
    %52 = arith.truncf %51 : vector<4x896xf32> to vector<4x896xbf16>
    %c24 = arith.constant 24 : index
    %c0_22 = arith.constant 0 : index
    %53 = vector.load %arg7[%c24, %c0_22] : memref<324x896xbf16, #tpu.memory_space<vmem>>, vector<4x896xbf16>
    tpu.vector_store %arg7[%c24, %c0_22], %52 {strides = array<i32>} : memref<324x896xbf16, #tpu.memory_space<vmem>>, vector<4x896xbf16>,
    %c0_23 = arith.constant 0 : index
    %c0_24 = arith.constant 0 : index
    %c27 = arith.constant 27 : index
    %54 = vector.load %arg1[%c0_23, %c0_24, %c27] : memref<1x4x1135xf32, #tpu.memory_space<vmem>>, vector<1x4x896xf32>
    %55 = vector.shape_cast %54 : vector<1x4x896xf32> to vector<4x896xf32>
    %56 = arith.truncf %55 : vector<4x896xf32> to vector<4x896xbf16>
    %c36 = arith.constant 36 : index
    %c0_25 = arith.constant 0 : index
    %57 = vector.load %arg7[%c36, %c0_25] : memref<324x896xbf16, #tpu.memory_space<vmem>>, vector<4x896xbf16>
    tpu.vector_store %arg7[%c36, %c0_25], %56 {strides = array<i32>} : memref<324x896xbf16, #tpu.memory_space<vmem>>, vector<4x896xbf16>,
    %c0_26 = arith.constant 0 : index
    %c0_27 = arith.constant 0 : index
    %c28 = arith.constant 28 : index
    %58 = vector.load %arg1[%c0_26, %c0_27, %c28] : memref<1x4x1135xf32, #tpu.memory_space<vmem>>, vector<1x4x896xf32>
    %59 = vector.shape_cast %58 : vector<1x4x896xf32> to vector<4x896xf32>
    %60 = arith.truncf %59 : vector<4x896xf32> to vector<4x896xbf16>
    %c48 = arith.constant 48 : index
    %c0_28 = arith.constant 0 : index
    %61 = vector.load %arg7[%c48, %c0_28] : memref<324x896xbf16, #tpu.memory_space<vmem>>, vector<4x896xbf16>
    tpu.vector_store %arg7[%c48, %c0_28], %60 {strides = array<i32>} : memref<324x896xbf16, #tpu.memory_space<vmem>>, vector<4x896xbf16>,
    %c0_29 = arith.constant 0 : index
    %c0_30 = arith.constant 0 : index
    %c29 = arith.constant 29 : index
    %62 = vector.load %arg1[%c0_29, %c0_30, %c29] : memref<1x4x1135xf32, #tpu.memory_space<vmem>>, vector<1x4x896xf32>
    %63 = vector.shape_cast %62 : vector<1x4x896xf32> to vector<4x896xf32>
    %64 = arith.truncf %63 : vector<4x896xf32> to vector<4x896xbf16>
    %c60 = arith.constant 60 : index
    %c0_31 = arith.constant 0 : index
    %65 = vector.load %arg7[%c60, %c0_31] : memref<324x896xbf16, #tpu.memory_space<vmem>>, vector<4x896xbf16>
    tpu.vector_store %arg7[%c60, %c0_31], %64 {strides = array<i32>} : memref<324x896xbf16, #tpu.memory_space<vmem>>, vector<4x896xbf16>,
    %c0_32 = arith.constant 0 : index
    %c0_33 = arith.constant 0 : index
    %c37 = arith.constant 37 : index
    %66 = vector.load %arg1[%c0_32, %c0_33, %c37] : memref<1x4x1135xf32, #tpu.memory_space<vmem>>, vector<1x4x896xf32>
    %67 = vector.shape_cast %66 : vector<1x4x896xf32> to vector<4x896xf32>
    %68 = arith.truncf %67 : vector<4x896xf32> to vector<4x896xbf16>
    %c72 = arith.constant 72 : index
    %c0_34 = arith.constant 0 : index
    %69 = vector.load %arg7[%c72, %c0_34] : memref<324x896xbf16, #tpu.memory_space<vmem>>, vector<4x896xbf16>
    tpu.vector_store %arg7[%c72, %c0_34], %68 {strides = array<i32>} : memref<324x896xbf16, #tpu.memory_space<vmem>>, vector<4x896xbf16>,
    %c0_35 = arith.constant 0 : index
    %c0_36 = arith.constant 0 : index
    %c38 = arith.constant 38 : index
    %70 = vector.load %arg1[%c0_35, %c0_36, %c38] : memref<1x4x1135xf32, #tpu.memory_space<vmem>>, vector<1x4x896xf32>
    %71 = vector.shape_cast %70 : vector<1x4x896xf32> to vector<4x896xf32>
    %72 = arith.truncf %71 : vector<4x896xf32> to vector<4x896xbf16>
    %c84 = arith.constant 84 : index
    %c0_37 = arith.constant 0 : index
    %73 = vector.load %arg7[%c84, %c0_37] : memref<324x896xbf16, #tpu.memory_space<vmem>>, vector<4x896xbf16>
    tpu.vector_store %arg7[%c84, %c0_37], %72 {strides = array<i32>} : memref<324x896xbf16, #tpu.memory_space<vmem>>, vector<4x896xbf16>,
    %c0_38 = arith.constant 0 : index
    %c0_39 = arith.constant 0 : index
    %c39 = arith.constant 39 : index
    %74 = vector.load %arg1[%c0_38, %c0_39, %c39] : memref<1x4x1135xf32, #tpu.memory_space<vmem>>, vector<1x4x896xf32>
    %75 = vector.shape_cast %74 : vector<1x4x896xf32> to vector<4x896xf32>
    %76 = arith.truncf %75 : vector<4x896xf32> to vector<4x896xbf16>
    %c96 = arith.constant 96 : index
    %c0_40 = arith.constant 0 : index
    %77 = vector.load %arg7[%c96, %c0_40] : memref<324x896xbf16, #tpu.memory_space<vmem>>, vector<4x896xbf16>
    tpu.vector_store %arg7[%c96, %c0_40], %76 {strides = array<i32>} : memref<324x896xbf16, #tpu.memory_space<vmem>>, vector<4x896xbf16>,
    %c0_41 = arith.constant 0 : index
    %c0_42 = arith.constant 0 : index
    %c117 = arith.constant 117 : index
    %78 = vector.load %arg1[%c0_41, %c0_42, %c117] : memref<1x4x1135xf32, #tpu.memory_space<vmem>>, vector<1x4x896xf32>
    %79 = vector.shape_cast %78 : vector<1x4x896xf32> to vector<4x896xf32>
    %80 = arith.truncf %79 : vector<4x896xf32> to vector<4x896xbf16>
    %c108 = arith.constant 108 : index
    %c0_43 = arith.constant 0 : index
    %81 = vector.load %arg7[%c108, %c0_43] : memref<324x896xbf16, #tpu.memory_space<vmem>>, vector<4x896xbf16>
    tpu.vector_store %arg7[%c108, %c0_43], %80 {strides = array<i32>} : memref<324x896xbf16, #tpu.memory_space<vmem>>, vector<4x896xbf16>,
    %c0_44 = arith.constant 0 : index
    %c0_45 = arith.constant 0 : index
    %c118 = arith.constant 118 : index
    %82 = vector.load %arg1[%c0_44, %c0_45, %c118] : memref<1x4x1135xf32, #tpu.memory_space<vmem>>, vector<1x4x896xf32>
    %83 = vector.shape_cast %82 : vector<1x4x896xf32> to vector<4x896xf32>
    %84 = arith.truncf %83 : vector<4x896xf32> to vector<4x896xbf16>
    %c120 = arith.constant 120 : index
    %c0_46 = arith.constant 0 : index
    %85 = vector.load %arg7[%c120, %c0_46] : memref<324x896xbf16, #tpu.memory_space<vmem>>, vector<4x896xbf16>
    tpu.vector_store %arg7[%c120, %c0_46], %84 {strides = array<i32>} : memref<324x896xbf16, #tpu.memory_space<vmem>>, vector<4x896xbf16>,
    %c0_47 = arith.constant 0 : index
    %c0_48 = arith.constant 0 : index
    %c119 = arith.constant 119 : index
    %86 = vector.load %arg1[%c0_47, %c0_48, %c119] : memref<1x4x1135xf32, #tpu.memory_space<vmem>>, vector<1x4x896xf32>
    %87 = vector.shape_cast %86 : vector<1x4x896xf32> to vector<4x896xf32>
    %88 = arith.truncf %87 : vector<4x896xf32> to vector<4x896xbf16>
    %c132 = arith.constant 132 : index
    %c0_49 = arith.constant 0 : index
    %89 = vector.load %arg7[%c132, %c0_49] : memref<324x896xbf16, #tpu.memory_space<vmem>>, vector<4x896xbf16>
    tpu.vector_store %arg7[%c132, %c0_49], %88 {strides = array<i32>} : memref<324x896xbf16, #tpu.memory_space<vmem>>, vector<4x896xbf16>,
    %c0_50 = arith.constant 0 : index
    %c0_51 = arith.constant 0 : index
    %c127 = arith.constant 127 : index
    %90 = vector.load %arg1[%c0_50, %c0_51, %c127] : memref<1x4x1135xf32, #tpu.memory_space<vmem>>, vector<1x4x896xf32>
    %91 = vector.shape_cast %90 : vector<1x4x896xf32> to vector<4x896xf32>
    %92 = arith.truncf %91 : vector<4x896xf32> to vector<4x896xbf16>
    %c144 = arith.constant 144 : index
    %c0_52 = arith.constant 0 : index
    %93 = vector.load %arg7[%c144, %c0_52] : memref<324x896xbf16, #tpu.memory_space<vmem>>, vector<4x896xbf16>
    tpu.vector_store %arg7[%c144, %c0_52], %92 {strides = array<i32>} : memref<324x896xbf16, #tpu.memory_space<vmem>>, vector<4x896xbf16>,
    %c0_53 = arith.constant 0 : index
    %c0_54 = arith.constant 0 : index
    %c128 = arith.constant 128 : index
    %94 = vector.load %arg1[%c0_53, %c0_54, %c128] : memref<1x4x1135xf32, #tpu.memory_space<vmem>>, vector<1x4x896xf32>
    %95 = vector.shape_cast %94 : vector<1x4x896xf32> to vector<4x896xf32>
    %96 = arith.truncf %95 : vector<4x896xf32> to vector<4x896xbf16>
    %c156 = arith.constant 156 : index
    %c0_55 = arith.constant 0 : index
    %97 = vector.load %arg7[%c156, %c0_55] : memref<324x896xbf16, #tpu.memory_space<vmem>>, vector<4x896xbf16>
    tpu.vector_store %arg7[%c156, %c0_55], %96 {strides = array<i32>} : memref<324x896xbf16, #tpu.memory_space<vmem>>, vector<4x896xbf16>,
    %c0_56 = arith.constant 0 : index
    %c0_57 = arith.constant 0 : index
    %c129 = arith.constant 129 : index
    %98 = vector.load %arg1[%c0_56, %c0_57, %c129] : memref<1x4x1135xf32, #tpu.memory_space<vmem>>, vector<1x4x896xf32>
    %99 = vector.shape_cast %98 : vector<1x4x896xf32> to vector<4x896xf32>
    %100 = arith.truncf %99 : vector<4x896xf32> to vector<4x896xbf16>
    %c168 = arith.constant 168 : index
    %c0_58 = arith.constant 0 : index
    %101 = vector.load %arg7[%c168, %c0_58] : memref<324x896xbf16, #tpu.memory_space<vmem>>, vector<4x896xbf16>
    tpu.vector_store %arg7[%c168, %c0_58], %100 {strides = array<i32>} : memref<324x896xbf16, #tpu.memory_space<vmem>>, vector<4x896xbf16>,
    %c0_59 = arith.constant 0 : index
    %c0_60 = arith.constant 0 : index
    %c137 = arith.constant 137 : index
    %102 = vector.load %arg1[%c0_59, %c0_60, %c137] : memref<1x4x1135xf32, #tpu.memory_space<vmem>>, vector<1x4x896xf32>
    %103 = vector.shape_cast %102 : vector<1x4x896xf32> to vector<4x896xf32>
    %104 = arith.truncf %103 : vector<4x896xf32> to vector<4x896xbf16>
    %c180 = arith.constant 180 : index
    %c0_61 = arith.constant 0 : index
    %105 = vector.load %arg7[%c180, %c0_61] : memref<324x896xbf16, #tpu.memory_space<vmem>>, vector<4x896xbf16>
    tpu.vector_store %arg7[%c180, %c0_61], %104 {strides = array<i32>} : memref<324x896xbf16, #tpu.memory_space<vmem>>, vector<4x896xbf16>,
    %c0_62 = arith.constant 0 : index
    %c0_63 = arith.constant 0 : index
    %c138 = arith.constant 138 : index
    %106 = vector.load %arg1[%c0_62, %c0_63, %c138] : memref<1x4x1135xf32, #tpu.memory_space<vmem>>, vector<1x4x896xf32>
    %107 = vector.shape_cast %106 : vector<1x4x896xf32> to vector<4x896xf32>
    %108 = arith.truncf %107 : vector<4x896xf32> to vector<4x896xbf16>
    %c192 = arith.constant 192 : index
    %c0_64 = arith.constant 0 : index
    %109 = vector.load %arg7[%c192, %c0_64] : memref<324x896xbf16, #tpu.memory_space<vmem>>, vector<4x896xbf16>
    tpu.vector_store %arg7[%c192, %c0_64], %108 {strides = array<i32>} : memref<324x896xbf16, #tpu.memory_space<vmem>>, vector<4x896xbf16>,
    %c0_65 = arith.constant 0 : index
    %c0_66 = arith.constant 0 : index
    %c139 = arith.constant 139 : index
    %110 = vector.load %arg1[%c0_65, %c0_66, %c139] : memref<1x4x1135xf32, #tpu.memory_space<vmem>>, vector<1x4x896xf32>
    %111 = vector.shape_cast %110 : vector<1x4x896xf32> to vector<4x896xf32>
    %112 = arith.truncf %111 : vector<4x896xf32> to vector<4x896xbf16>
    %c204 = arith.constant 204 : index
    %c0_67 = arith.constant 0 : index
    %113 = vector.load %arg7[%c204, %c0_67] : memref<324x896xbf16, #tpu.memory_space<vmem>>, vector<4x896xbf16>
    tpu.vector_store %arg7[%c204, %c0_67], %112 {strides = array<i32>} : memref<324x896xbf16, #tpu.memory_space<vmem>>, vector<4x896xbf16>,
    %c0_68 = arith.constant 0 : index
    %c0_69 = arith.constant 0 : index
    %c217 = arith.constant 217 : index
    %114 = vector.load %arg1[%c0_68, %c0_69, %c217] : memref<1x4x1135xf32, #tpu.memory_space<vmem>>, vector<1x4x896xf32>
    %115 = vector.shape_cast %114 : vector<1x4x896xf32> to vector<4x896xf32>
    %116 = arith.truncf %115 : vector<4x896xf32> to vector<4x896xbf16>
    %c216 = arith.constant 216 : index
    %c0_70 = arith.constant 0 : index
    %117 = vector.load %arg7[%c216, %c0_70] : memref<324x896xbf16, #tpu.memory_space<vmem>>, vector<4x896xbf16>
    tpu.vector_store %arg7[%c216, %c0_70], %116 {strides = array<i32>} : memref<324x896xbf16, #tpu.memory_space<vmem>>, vector<4x896xbf16>,
    %c0_71 = arith.constant 0 : index
    %c0_72 = arith.constant 0 : index
    %c218 = arith.constant 218 : index
    %118 = vector.load %arg1[%c0_71, %c0_72, %c218] : memref<1x4x1135xf32, #tpu.memory_space<vmem>>, vector<1x4x896xf32>
    %119 = vector.shape_cast %118 : vector<1x4x896xf32> to vector<4x896xf32>
    %120 = arith.truncf %119 : vector<4x896xf32> to vector<4x896xbf16>
    %c228 = arith.constant 228 : index
    %c0_73 = arith.constant 0 : index
    %121 = vector.load %arg7[%c228, %c0_73] : memref<324x896xbf16, #tpu.memory_space<vmem>>, vector<4x896xbf16>
    tpu.vector_store %arg7[%c228, %c0_73], %120 {strides = array<i32>} : memref<324x896xbf16, #tpu.memory_space<vmem>>, vector<4x896xbf16>,
    %c0_74 = arith.constant 0 : index
    %c0_75 = arith.constant 0 : index
    %c219 = arith.constant 219 : index
    %122 = vector.load %arg1[%c0_74, %c0_75, %c219] : memref<1x4x1135xf32, #tpu.memory_space<vmem>>, vector<1x4x896xf32>
    %123 = vector.shape_cast %122 : vector<1x4x896xf32> to vector<4x896xf32>
    %124 = arith.truncf %123 : vector<4x896xf32> to vector<4x896xbf16>
    %c240 = arith.constant 240 : index
    %c0_76 = arith.constant 0 : index
    %125 = vector.load %arg7[%c240, %c0_76] : memref<324x896xbf16, #tpu.memory_space<vmem>>, vector<4x896xbf16>
    tpu.vector_store %arg7[%c240, %c0_76], %124 {strides = array<i32>} : memref<324x896xbf16, #tpu.memory_space<vmem>>, vector<4x896xbf16>,
    %c0_77 = arith.constant 0 : index
    %c0_78 = arith.constant 0 : index
    %c227 = arith.constant 227 : index
    %126 = vector.load %arg1[%c0_77, %c0_78, %c227] : memref<1x4x1135xf32, #tpu.memory_space<vmem>>, vector<1x4x896xf32>
    %127 = vector.shape_cast %126 : vector<1x4x896xf32> to vector<4x896xf32>
    %128 = arith.truncf %127 : vector<4x896xf32> to vector<4x896xbf16>
    %c252 = arith.constant 252 : index
    %c0_79 = arith.constant 0 : index
    %129 = vector.load %arg7[%c252, %c0_79] : memref<324x896xbf16, #tpu.memory_space<vmem>>, vector<4x896xbf16>
    tpu.vector_store %arg7[%c252, %c0_79], %128 {strides = array<i32>} : memref<324x896xbf16, #tpu.memory_space<vmem>>, vector<4x896xbf16>,
    %c0_80 = arith.constant 0 : index
    %c0_81 = arith.constant 0 : index
    %c228_82 = arith.constant 228 : index
    %130 = vector.load %arg1[%c0_80, %c0_81, %c228_82] : memref<1x4x1135xf32, #tpu.memory_space<vmem>>, vector<1x4x896xf32>
    %131 = vector.shape_cast %130 : vector<1x4x896xf32> to vector<4x896xf32>
    %132 = arith.truncf %131 : vector<4x896xf32> to vector<4x896xbf16>
    %c264 = arith.constant 264 : index
    %c0_83 = arith.constant 0 : index
    %133 = vector.load %arg7[%c264, %c0_83] : memref<324x896xbf16, #tpu.memory_space<vmem>>, vector<4x896xbf16>
    tpu.vector_store %arg7[%c264, %c0_83], %132 {strides = array<i32>} : memref<324x896xbf16, #tpu.memory_space<vmem>>, vector<4x896xbf16>,
    %c0_84 = arith.constant 0 : index
    %c0_85 = arith.constant 0 : index
    %c229 = arith.constant 229 : index
    %134 = vector.load %arg1[%c0_84, %c0_85, %c229] : memref<1x4x1135xf32, #tpu.memory_space<vmem>>, vector<1x4x896xf32>
    %135 = vector.shape_cast %134 : vector<1x4x896xf32> to vector<4x896xf32>
    %136 = arith.truncf %135 : vector<4x896xf32> to vector<4x896xbf16>
    %c276 = arith.constant 276 : index
    %c0_86 = arith.constant 0 : index
    %137 = vector.load %arg7[%c276, %c0_86] : memref<324x896xbf16, #tpu.memory_space<vmem>>, vector<4x896xbf16>
    tpu.vector_store %arg7[%c276, %c0_86], %136 {strides = array<i32>} : memref<324x896xbf16, #tpu.memory_space<vmem>>, vector<4x896xbf16>,
    %c0_87 = arith.constant 0 : index
    %c0_88 = arith.constant 0 : index
    %c237 = arith.constant 237 : index
    %138 = vector.load %arg1[%c0_87, %c0_88, %c237] : memref<1x4x1135xf32, #tpu.memory_space<vmem>>, vector<1x4x896xf32>
    %139 = vector.shape_cast %138 : vector<1x4x896xf32> to vector<4x896xf32>
    %140 = arith.truncf %139 : vector<4x896xf32> to vector<4x896xbf16>
    %c288 = arith.constant 288 : index
    %c0_89 = arith.constant 0 : index
    %141 = vector.load %arg7[%c288, %c0_89] : memref<324x896xbf16, #tpu.memory_space<vmem>>, vector<4x896xbf16>
    tpu.vector_store %arg7[%c288, %c0_89], %140 {strides = array<i32>} : memref<324x896xbf16, #tpu.memory_space<vmem>>, vector<4x896xbf16>,
    %c0_90 = arith.constant 0 : index
    %c0_91 = arith.constant 0 : index
    %c238 = arith.constant 238 : index
    %142 = vector.load %arg1[%c0_90, %c0_91, %c238] : memref<1x4x1135xf32, #tpu.memory_space<vmem>>, vector<1x4x896xf32>
    %143 = vector.shape_cast %142 : vector<1x4x896xf32> to vector<4x896xf32>
    %144 = arith.truncf %143 : vector<4x896xf32> to vector<4x896xbf16>
    %c300 = arith.constant 300 : index
    %c0_92 = arith.constant 0 : index
    %145 = vector.load %arg7[%c300, %c0_92] : memref<324x896xbf16, #tpu.memory_space<vmem>>, vector<4x896xbf16>
    tpu.vector_store %arg7[%c300, %c0_92], %144 {strides = array<i32>} : memref<324x896xbf16, #tpu.memory_space<vmem>>, vector<4x896xbf16>,
    %c0_93 = arith.constant 0 : index
    %c0_94 = arith.constant 0 : index
    %c239 = arith.constant 239 : index
    %146 = vector.load %arg1[%c0_93, %c0_94, %c239] : memref<1x4x1135xf32, #tpu.memory_space<vmem>>, vector<1x4x896xf32>
    %147 = vector.shape_cast %146 : vector<1x4x896xf32> to vector<4x896xf32>
    %148 = arith.truncf %147 : vector<4x896xf32> to vector<4x896xbf16>
    %c312 = arith.constant 312 : index
    %c0_95 = arith.constant 0 : index
    %149 = vector.load %arg7[%c312, %c0_95] : memref<324x896xbf16, #tpu.memory_space<vmem>>, vector<4x896xbf16>
    tpu.vector_store %arg7[%c312, %c0_95], %148 {strides = array<i32>} : memref<324x896xbf16, #tpu.memory_space<vmem>>, vector<4x896xbf16>,
    %c0_96 = arith.constant 0 : index
    %c0_97 = arith.constant 0 : index
    %150 = vector.load %arg2[%c0_96, %c0_97] : memref<4x324xbf16, #tpu.memory_space<vmem>>, vector<4x324xbf16>
    %c0_98 = arith.constant 0 : index
    %c0_99 = arith.constant 0 : index
    %151 = vector.load %arg7[%c0_98, %c0_99] : memref<324x896xbf16, #tpu.memory_space<vmem>>, vector<324x896xbf16>
    %cst_100 = arith.constant dense<0.000000e+00> : vector<4x896xf32>
    %152 = tpu.matmul %150, %151, %cst_100 {dimension_numbers = #tpu.dot_dimension_numbers<[1], [0], [0], [1], [0, 0, 1, 1], [], []>} : vector<4x324xbf16>, vector<324x896xbf16>, vector<4x896xf32> -> vector<4x896xf32>
    %cst_101 = arith.constant 0.000000e+00 : f32
    %153 = vector.broadcast %cst_101 : f32 to vector<4x896xf32>
    %154 = arith.maximumf %152, %153 : vector<4x896xf32>
    %155 = vector.broadcast %37 : vector<1x896xf32> to vector<4x896xf32>
    %156 = arith.mulf %154, %155 : vector<4x896xf32>
    %c0_102 = arith.constant 0 : index
    %c128_103 = arith.constant 128 : index
    %157 = vector.load %arg6[%c0_102, %c128_103] : memref<8x1135xf32, #tpu.memory_space<vmem>>, vector<4x896xf32>
    tpu.vector_store %arg6[%c0_102, %c128_103], %156 {strides = array<i32>} : memref<8x1135xf32, #tpu.memory_space<vmem>>, vector<4x896xf32>,
    %c0_104 = arith.constant 0 : index
    %c17_105 = arith.constant 17 : index
    %158 = vector.load %arg6[%c0_104, %c17_105] : memref<8x1135xf32, #tpu.memory_space<vmem>>, vector<4x896xf32>
    %159 = arith.truncf %158 : vector<4x896xf32> to vector<4x896xbf16>
    %c4 = arith.constant 4 : index
    %c0_106 = arith.constant 0 : index
    %160 = vector.load %arg7[%c4, %c0_106] : memref<324x896xbf16, #tpu.memory_space<vmem>>, vector<4x896xbf16>
    tpu.vector_store %arg7[%c4, %c0_106], %159 {strides = array<i32>} : memref<324x896xbf16, #tpu.memory_space<vmem>>, vector<4x896xbf16>,
    %c0_107 = arith.constant 0 : index
    %c18_108 = arith.constant 18 : index
    %161 = vector.load %arg6[%c0_107, %c18_108] : memref<8x1135xf32, #tpu.memory_space<vmem>>, vector<4x896xf32>
    %162 = arith.truncf %161 : vector<4x896xf32> to vector<4x896xbf16>
    %c16 = arith.constant 16 : index
    %c0_109 = arith.constant 0 : index
    %163 = vector.load %arg7[%c16, %c0_109] : memref<324x896xbf16, #tpu.memory_space<vmem>>, vector<4x896xbf16>
    tpu.vector_store %arg7[%c16, %c0_109], %162 {strides = array<i32>} : memref<324x896xbf16, #tpu.memory_space<vmem>>, vector<4x896xbf16>,
    %c0_110 = arith.constant 0 : index
    %c19_111 = arith.constant 19 : index
    %164 = vector.load %arg6[%c0_110, %c19_111] : memref<8x1135xf32, #tpu.memory_space<vmem>>, vector<4x896xf32>
    %165 = arith.truncf %164 : vector<4x896xf32> to vector<4x896xbf16>
    %c28_112 = arith.constant 28 : index
    %c0_113 = arith.constant 0 : index
    %166 = vector.load %arg7[%c28_112, %c0_113] : memref<324x896xbf16, #tpu.memory_space<vmem>>, vector<4x896xbf16>
    tpu.vector_store %arg7[%c28_112, %c0_113], %165 {strides = array<i32>} : memref<324x896xbf16, #tpu.memory_space<vmem>>, vector<4x896xbf16>,
    %c0_114 = arith.constant 0 : index
    %c27_115 = arith.constant 27 : index
    %167 = vector.load %arg6[%c0_114, %c27_115] : memref<8x1135xf32, #tpu.memory_space<vmem>>, vector<4x896xf32>
    %168 = arith.truncf %167 : vector<4x896xf32> to vector<4x896xbf16>
    %c40 = arith.constant 40 : index
    %c0_116 = arith.constant 0 : index
    %169 = vector.load %arg7[%c40, %c0_116] : memref<324x896xbf16, #tpu.memory_space<vmem>>, vector<4x896xbf16>
    tpu.vector_store %arg7[%c40, %c0_116], %168 {strides = array<i32>} : memref<324x896xbf16, #tpu.memory_space<vmem>>, vector<4x896xbf16>,
    %c0_117 = arith.constant 0 : index
    %c28_118 = arith.constant 28 : index
    %170 = vector.load %arg6[%c0_117, %c28_118] : memref<8x1135xf32, #tpu.memory_space<vmem>>, vector<4x896xf32>
    %171 = arith.truncf %170 : vector<4x896xf32> to vector<4x896xbf16>
    %c52 = arith.constant 52 : index
    %c0_119 = arith.constant 0 : index
    %172 = vector.load %arg7[%c52, %c0_119] : memref<324x896xbf16, #tpu.memory_space<vmem>>, vector<4x896xbf16>
    tpu.vector_store %arg7[%c52, %c0_119], %171 {strides = array<i32>} : memref<324x896xbf16, #tpu.memory_space<vmem>>, vector<4x896xbf16>,
    %c0_120 = arith.constant 0 : index
    %c29_121 = arith.constant 29 : index
    %173 = vector.load %arg6[%c0_120, %c29_121] : memref<8x1135xf32, #tpu.memory_space<vmem>>, vector<4x896xf32>
    %174 = arith.truncf %173 : vector<4x896xf32> to vector<4x896xbf16>
    %c64 = arith.constant 64 : index
    %c0_122 = arith.constant 0 : index
    %175 = vector.load %arg7[%c64, %c0_122] : memref<324x896xbf16, #tpu.memory_space<vmem>>, vector<4x896xbf16>
    tpu.vector_store %arg7[%c64, %c0_122], %174 {strides = array<i32>} : memref<324x896xbf16, #tpu.memory_space<vmem>>, vector<4x896xbf16>,
    %c0_123 = arith.constant 0 : index
    %c37_124 = arith.constant 37 : index
    %176 = vector.load %arg6[%c0_123, %c37_124] : memref<8x1135xf32, #tpu.memory_space<vmem>>, vector<4x896xf32>
    %177 = arith.truncf %176 : vector<4x896xf32> to vector<4x896xbf16>
    %c76 = arith.constant 76 : index
    %c0_125 = arith.constant 0 : index
    %178 = vector.load %arg7[%c76, %c0_125] : memref<324x896xbf16, #tpu.memory_space<vmem>>, vector<4x896xbf16>
    tpu.vector_store %arg7[%c76, %c0_125], %177 {strides = array<i32>} : memref<324x896xbf16, #tpu.memory_space<vmem>>, vector<4x896xbf16>,
    %c0_126 = arith.constant 0 : index
    %c38_127 = arith.constant 38 : index
    %179 = vector.load %arg6[%c0_126, %c38_127] : memref<8x1135xf32, #tpu.memory_space<vmem>>, vector<4x896xf32>
    %180 = arith.truncf %179 : vector<4x896xf32> to vector<4x896xbf16>
    %c88 = arith.constant 88 : index
    %c0_128 = arith.constant 0 : index
    %181 = vector.load %arg7[%c88, %c0_128] : memref<324x896xbf16, #tpu.memory_space<vmem>>, vector<4x896xbf16>
    tpu.vector_store %arg7[%c88, %c0_128], %180 {strides = array<i32>} : memref<324x896xbf16, #tpu.memory_space<vmem>>, vector<4x896xbf16>,
    %c0_129 = arith.constant 0 : index
    %c39_130 = arith.constant 39 : index
    %182 = vector.load %arg6[%c0_129, %c39_130] : memref<8x1135xf32, #tpu.memory_space<vmem>>, vector<4x896xf32>
    %183 = arith.truncf %182 : vector<4x896xf32> to vector<4x896xbf16>
    %c100 = arith.constant 100 : index
    %c0_131 = arith.constant 0 : index
    %184 = vector.load %arg7[%c100, %c0_131] : memref<324x896xbf16, #tpu.memory_space<vmem>>, vector<4x896xbf16>
    tpu.vector_store %arg7[%c100, %c0_131], %183 {strides = array<i32>} : memref<324x896xbf16, #tpu.memory_space<vmem>>, vector<4x896xbf16>,
    %c0_132 = arith.constant 0 : index
    %c117_133 = arith.constant 117 : index
    %185 = vector.load %arg6[%c0_132, %c117_133] : memref<8x1135xf32, #tpu.memory_space<vmem>>, vector<4x896xf32>
    %186 = arith.truncf %185 : vector<4x896xf32> to vector<4x896xbf16>
    %c112 = arith.constant 112 : index
    %c0_134 = arith.constant 0 : index
    %187 = vector.load %arg7[%c112, %c0_134] : memref<324x896xbf16, #tpu.memory_space<vmem>>, vector<4x896xbf16>
    tpu.vector_store %arg7[%c112, %c0_134], %186 {strides = array<i32>} : memref<324x896xbf16, #tpu.memory_space<vmem>>, vector<4x896xbf16>,
    %c0_135 = arith.constant 0 : index
    %c118_136 = arith.constant 118 : index
    %188 = vector.load %arg6[%c0_135, %c118_136] : memref<8x1135xf32, #tpu.memory_space<vmem>>, vector<4x896xf32>
    %189 = arith.truncf %188 : vector<4x896xf32> to vector<4x896xbf16>
    %c124 = arith.constant 124 : index
    %c0_137 = arith.constant 0 : index
    %190 = vector.load %arg7[%c124, %c0_137] : memref<324x896xbf16, #tpu.memory_space<vmem>>, vector<4x896xbf16>
    tpu.vector_store %arg7[%c124, %c0_137], %189 {strides = array<i32>} : memref<324x896xbf16, #tpu.memory_space<vmem>>, vector<4x896xbf16>,
    %c0_138 = arith.constant 0 : index
    %c119_139 = arith.constant 119 : index
    %191 = vector.load %arg6[%c0_138, %c119_139] : memref<8x1135xf32, #tpu.memory_space<vmem>>, vector<4x896xf32>
    %192 = arith.truncf %191 : vector<4x896xf32> to vector<4x896xbf16>
    %c136 = arith.constant 136 : index
    %c0_140 = arith.constant 0 : index
    %193 = vector.load %arg7[%c136, %c0_140] : memref<324x896xbf16, #tpu.memory_space<vmem>>, vector<4x896xbf16>
    tpu.vector_store %arg7[%c136, %c0_140], %192 {strides = array<i32>} : memref<324x896xbf16, #tpu.memory_space<vmem>>, vector<4x896xbf16>,
    %c0_141 = arith.constant 0 : index
    %c127_142 = arith.constant 127 : index
    %194 = vector.load %arg6[%c0_141, %c127_142] : memref<8x1135xf32, #tpu.memory_space<vmem>>, vector<4x896xf32>
    %195 = arith.truncf %194 : vector<4x896xf32> to vector<4x896xbf16>
    %c148 = arith.constant 148 : index
    %c0_143 = arith.constant 0 : index
    %196 = vector.load %arg7[%c148, %c0_143] : memref<324x896xbf16, #tpu.memory_space<vmem>>, vector<4x896xbf16>
    tpu.vector_store %arg7[%c148, %c0_143], %195 {strides = array<i32>} : memref<324x896xbf16, #tpu.memory_space<vmem>>, vector<4x896xbf16>,
    %c0_144 = arith.constant 0 : index
    %c128_145 = arith.constant 128 : index
    %197 = vector.load %arg6[%c0_144, %c128_145] : memref<8x1135xf32, #tpu.memory_space<vmem>>, vector<4x896xf32>
    %198 = arith.truncf %197 : vector<4x896xf32> to vector<4x896xbf16>
    %c160 = arith.constant 160 : index
    %c0_146 = arith.constant 0 : index
    %199 = vector.load %arg7[%c160, %c0_146] : memref<324x896xbf16, #tpu.memory_space<vmem>>, vector<4x896xbf16>
    tpu.vector_store %arg7[%c160, %c0_146], %198 {strides = array<i32>} : memref<324x896xbf16, #tpu.memory_space<vmem>>, vector<4x896xbf16>,
    %c0_147 = arith.constant 0 : index
    %c129_148 = arith.constant 129 : index
    %200 = vector.load %arg6[%c0_147, %c129_148] : memref<8x1135xf32, #tpu.memory_space<vmem>>, vector<4x896xf32>
    %201 = arith.truncf %200 : vector<4x896xf32> to vector<4x896xbf16>
    %c172 = arith.constant 172 : index
    %c0_149 = arith.constant 0 : index
    %202 = vector.load %arg7[%c172, %c0_149] : memref<324x896xbf16, #tpu.memory_space<vmem>>, vector<4x896xbf16>
    tpu.vector_store %arg7[%c172, %c0_149], %201 {strides = array<i32>} : memref<324x896xbf16, #tpu.memory_space<vmem>>, vector<4x896xbf16>,
    %c0_150 = arith.constant 0 : index
    %c137_151 = arith.constant 137 : index
    %203 = vector.load %arg6[%c0_150, %c137_151] : memref<8x1135xf32, #tpu.memory_space<vmem>>, vector<4x896xf32>
    %204 = arith.truncf %203 : vector<4x896xf32> to vector<4x896xbf16>
    %c184 = arith.constant 184 : index
    %c0_152 = arith.constant 0 : index
    %205 = vector.load %arg7[%c184, %c0_152] : memref<324x896xbf16, #tpu.memory_space<vmem>>, vector<4x896xbf16>
    tpu.vector_store %arg7[%c184, %c0_152], %204 {strides = array<i32>} : memref<324x896xbf16, #tpu.memory_space<vmem>>, vector<4x896xbf16>,
    %c0_153 = arith.constant 0 : index
    %c138_154 = arith.constant 138 : index
    %206 = vector.load %arg6[%c0_153, %c138_154] : memref<8x1135xf32, #tpu.memory_space<vmem>>, vector<4x896xf32>
    %207 = arith.truncf %206 : vector<4x896xf32> to vector<4x896xbf16>
    %c196 = arith.constant 196 : index
    %c0_155 = arith.constant 0 : index
    %208 = vector.load %arg7[%c196, %c0_155] : memref<324x896xbf16, #tpu.memory_space<vmem>>, vector<4x896xbf16>
    tpu.vector_store %arg7[%c196, %c0_155], %207 {strides = array<i32>} : memref<324x896xbf16, #tpu.memory_space<vmem>>, vector<4x896xbf16>,
    %c0_156 = arith.constant 0 : index
    %c139_157 = arith.constant 139 : index
    %209 = vector.load %arg6[%c0_156, %c139_157] : memref<8x1135xf32, #tpu.memory_space<vmem>>, vector<4x896xf32>
    %210 = arith.truncf %209 : vector<4x896xf32> to vector<4x896xbf16>
    %c208 = arith.constant 208 : index
    %c0_158 = arith.constant 0 : index
    %211 = vector.load %arg7[%c208, %c0_158] : memref<324x896xbf16, #tpu.memory_space<vmem>>, vector<4x896xbf16>
    tpu.vector_store %arg7[%c208, %c0_158], %210 {strides = array<i32>} : memref<324x896xbf16, #tpu.memory_space<vmem>>, vector<4x896xbf16>,
    %c0_159 = arith.constant 0 : index
    %c217_160 = arith.constant 217 : index
    %212 = vector.load %arg6[%c0_159, %c217_160] : memref<8x1135xf32, #tpu.memory_space<vmem>>, vector<4x896xf32>
    %213 = arith.truncf %212 : vector<4x896xf32> to vector<4x896xbf16>
    %c220 = arith.constant 220 : index
    %c0_161 = arith.constant 0 : index
    %214 = vector.load %arg7[%c220, %c0_161] : memref<324x896xbf16, #tpu.memory_space<vmem>>, vector<4x896xbf16>
    tpu.vector_store %arg7[%c220, %c0_161], %213 {strides = array<i32>} : memref<324x896xbf16, #tpu.memory_space<vmem>>, vector<4x896xbf16>,
    %c0_162 = arith.constant 0 : index
    %c218_163 = arith.constant 218 : index
    %215 = vector.load %arg6[%c0_162, %c218_163] : memref<8x1135xf32, #tpu.memory_space<vmem>>, vector<4x896xf32>
    %216 = arith.truncf %215 : vector<4x896xf32> to vector<4x896xbf16>
    %c232 = arith.constant 232 : index
    %c0_164 = arith.constant 0 : index
    %217 = vector.load %arg7[%c232, %c0_164] : memref<324x896xbf16, #tpu.memory_space<vmem>>, vector<4x896xbf16>
    tpu.vector_store %arg7[%c232, %c0_164], %216 {strides = array<i32>} : memref<324x896xbf16, #tpu.memory_space<vmem>>, vector<4x896xbf16>,
    %c0_165 = arith.constant 0 : index
    %c219_166 = arith.constant 219 : index
    %218 = vector.load %arg6[%c0_165, %c219_166] : memref<8x1135xf32, #tpu.memory_space<vmem>>, vector<4x896xf32>
    %219 = arith.truncf %218 : vector<4x896xf32> to vector<4x896xbf16>
    %c244 = arith.constant 244 : index
    %c0_167 = arith.constant 0 : index
    %220 = vector.load %arg7[%c244, %c0_167] : memref<324x896xbf16, #tpu.memory_space<vmem>>, vector<4x896xbf16>
    tpu.vector_store %arg7[%c244, %c0_167], %219 {strides = array<i32>} : memref<324x896xbf16, #tpu.memory_space<vmem>>, vector<4x896xbf16>,
    %c0_168 = arith.constant 0 : index
    %c227_169 = arith.constant 227 : index
    %221 = vector.load %arg6[%c0_168, %c227_169] : memref<8x1135xf32, #tpu.memory_space<vmem>>, vector<4x896xf32>
    %222 = arith.truncf %221 : vector<4x896xf32> to vector<4x896xbf16>
    %c256 = arith.constant 256 : index
    %c0_170 = arith.constant 0 : index
    %223 = vector.load %arg7[%c256, %c0_170] : memref<324x896xbf16, #tpu.memory_space<vmem>>, vector<4x896xbf16>
    tpu.vector_store %arg7[%c256, %c0_170], %222 {strides = array<i32>} : memref<324x896xbf16, #tpu.memory_space<vmem>>, vector<4x896xbf16>,
    %c0_171 = arith.constant 0 : index
    %c228_172 = arith.constant 228 : index
    %224 = vector.load %arg6[%c0_171, %c228_172] : memref<8x1135xf32, #tpu.memory_space<vmem>>, vector<4x896xf32>
    %225 = arith.truncf %224 : vector<4x896xf32> to vector<4x896xbf16>
    %c268 = arith.constant 268 : index
    %c0_173 = arith.constant 0 : index
    %226 = vector.load %arg7[%c268, %c0_173] : memref<324x896xbf16, #tpu.memory_space<vmem>>, vector<4x896xbf16>
    tpu.vector_store %arg7[%c268, %c0_173], %225 {strides = array<i32>} : memref<324x896xbf16, #tpu.memory_space<vmem>>, vector<4x896xbf16>,
    %c0_174 = arith.constant 0 : index
    %c229_175 = arith.constant 229 : index
    %227 = vector.load %arg6[%c0_174, %c229_175] : memref<8x1135xf32, #tpu.memory_space<vmem>>, vector<4x896xf32>
    %228 = arith.truncf %227 : vector<4x896xf32> to vector<4x896xbf16>
    %c280 = arith.constant 280 : index
    %c0_176 = arith.constant 0 : index
    %229 = vector.load %arg7[%c280, %c0_176] : memref<324x896xbf16, #tpu.memory_space<vmem>>, vector<4x896xbf16>
    tpu.vector_store %arg7[%c280, %c0_176], %228 {strides = array<i32>} : memref<324x896xbf16, #tpu.memory_space<vmem>>, vector<4x896xbf16>,
    %c0_177 = arith.constant 0 : index
    %c237_178 = arith.constant 237 : index
    %230 = vector.load %arg6[%c0_177, %c237_178] : memref<8x1135xf32, #tpu.memory_space<vmem>>, vector<4x896xf32>
    %231 = arith.truncf %230 : vector<4x896xf32> to vector<4x896xbf16>
    %c292 = arith.constant 292 : index
    %c0_179 = arith.constant 0 : index
    %232 = vector.load %arg7[%c292, %c0_179] : memref<324x896xbf16, #tpu.memory_space<vmem>>, vector<4x896xbf16>
    tpu.vector_store %arg7[%c292, %c0_179], %231 {strides = array<i32>} : memref<324x896xbf16, #tpu.memory_space<vmem>>, vector<4x896xbf16>,
    %c0_180 = arith.constant 0 : index
    %c238_181 = arith.constant 238 : index
    %233 = vector.load %arg6[%c0_180, %c238_181] : memref<8x1135xf32, #tpu.memory_space<vmem>>, vector<4x896xf32>
    %234 = arith.truncf %233 : vector<4x896xf32> to vector<4x896xbf16>
    %c304 = arith.constant 304 : index
    %c0_182 = arith.constant 0 : index
    %235 = vector.load %arg7[%c304, %c0_182] : memref<324x896xbf16, #tpu.memory_space<vmem>>, vector<4x896xbf16>
    tpu.vector_store %arg7[%c304, %c0_182], %234 {strides = array<i32>} : memref<324x896xbf16, #tpu.memory_space<vmem>>, vector<4x896xbf16>,
    %c0_183 = arith.constant 0 : index
    %c239_184 = arith.constant 239 : index
    %236 = vector.load %arg6[%c0_183, %c239_184] : memref<8x1135xf32, #tpu.memory_space<vmem>>, vector<4x896xf32>
    %237 = arith.truncf %236 : vector<4x896xf32> to vector<4x896xbf16>
    %c316 = arith.constant 316 : index
    %c0_185 = arith.constant 0 : index
    %238 = vector.load %arg7[%c316, %c0_185] : memref<324x896xbf16, #tpu.memory_space<vmem>>, vector<4x896xbf16>
    tpu.vector_store %arg7[%c316, %c0_185], %237 {strides = array<i32>} : memref<324x896xbf16, #tpu.memory_space<vmem>>, vector<4x896xbf16>,
    %c0_186 = arith.constant 0 : index
    %c0_187 = arith.constant 0 : index
    %239 = vector.load %arg3[%c0_186, %c0_187] : memref<4x324xbf16, #tpu.memory_space<vmem>>, vector<4x324xbf16>
    %c0_188 = arith.constant 0 : index
    %c0_189 = arith.constant 0 : index
    %240 = vector.load %arg7[%c0_188, %c0_189] : memref<324x896xbf16, #tpu.memory_space<vmem>>, vector<324x896xbf16>
    %cst_190 = arith.constant dense<0.000000e+00> : vector<4x896xf32>
    %241 = tpu.matmul %239, %240, %cst_190 {dimension_numbers = #tpu.dot_dimension_numbers<[1], [0], [0], [1], [0, 0, 1, 1], [], []>} : vector<4x324xbf16>, vector<324x896xbf16>, vector<4x896xf32> -> vector<4x896xf32>
    %cst_191 = arith.constant 0.000000e+00 : f32
    %242 = vector.broadcast %cst_191 : f32 to vector<4x896xf32>
    %243 = arith.maximumf %241, %242 : vector<4x896xf32>
    %244 = vector.broadcast %37 : vector<1x896xf32> to vector<4x896xf32>
    %245 = arith.mulf %243, %244 : vector<4x896xf32>
    %c4_192 = arith.constant 4 : index
    %c128_193 = arith.constant 128 : index
    %246 = vector.load %arg6[%c4_192, %c128_193] : memref<8x1135xf32, #tpu.memory_space<vmem>>, vector<4x896xf32>
    tpu.vector_store %arg6[%c4_192, %c128_193], %245 {strides = array<i32>} : memref<8x1135xf32, #tpu.memory_space<vmem>>, vector<4x896xf32>,
    %c0_194 = arith.constant 0 : index
    %c0_195 = arith.constant 0 : index
    %c128_196 = arith.constant 128 : index
    %247 = vector.load %arg1[%c0_194, %c0_195, %c128_196] : memref<1x4x1135xf32, #tpu.memory_space<vmem>>, vector<1x4x896xf32>
    %248 = vector.shape_cast %247 : vector<1x4x896xf32> to vector<4x896xf32>
    %c0_197 = arith.constant 0 : index
    %c128_198 = arith.constant 128 : index
    %249 = vector.load %arg6[%c0_197, %c128_198] : memref<8x1135xf32, #tpu.memory_space<vmem>>, vector<8x896xf32>
    %c0_199 = arith.constant 0 : index
    %c0_200 = arith.constant 0 : index
    %250 = vector.load %arg4[%c0_199, %c0_200] : memref<4x12xbf16, #tpu.memory_space<vmem>>, vector<4x4xbf16>
    %251 = arith.truncf %248 : vector<4x896xf32> to vector<4x896xbf16>
    %cst_201 = arith.constant dense<0.000000e+00> : vector<4x896xf32>
    %252 = tpu.matmul %250, %251, %cst_201 {dimension_numbers = #tpu.dot_dimension_numbers<[1], [0], [0], [1], [0, 0, 1, 1], [], []>} : vector<4x4xbf16>, vector<4x896xbf16>, vector<4x896xf32> -> vector<4x896xf32>
    %c0_202 = arith.constant 0 : index
    %c4_203 = arith.constant 4 : index
    %253 = vector.load %arg4[%c0_202, %c4_203] : memref<4x12xbf16, #tpu.memory_space<vmem>>, vector<4x8xbf16>
    %254 = arith.truncf %249 : vector<8x896xf32> to vector<8x896xbf16>
    %cst_204 = arith.constant dense<0.000000e+00> : vector<4x896xf32>
    %255 = tpu.matmul %253, %254, %cst_204 {dimension_numbers = #tpu.dot_dimension_numbers<[1], [0], [0], [1], [0, 0, 1, 1], [], []>} : vector<4x8xbf16>, vector<8x896xbf16>, vector<4x896xf32> -> vector<4x896xf32>
    %256 = arith.addf %252, %255 : vector<4x896xf32>
    %257 = arith.addf %256, %248 : vector<4x896xf32>
    %c0_205 = arith.constant 0 : index
    %c0_206 = arith.constant 0 : index
    %c0_207 = arith.constant 0 : index
    %258 = vector.load %arg5[%c0_205, %c0_206, %c0_207] : memref<1x4x896xf32, #tpu.memory_space<vmem>>, vector<1x4x896xf32>
    %259 = vector.shape_cast %258 : vector<1x4x896xf32> to vector<4x896xf32>
    %260 = vector.shape_cast %257 : vector<4x896xf32> to vector<1x4x896xf32>
    tpu.vector_store %arg5[%c0_205, %c0_206, %c0_207], %260 {strides = array<i32>} : memref<1x4x896xf32, #tpu.memory_space<vmem>>, vector<1x4x896xf32>,
    return
  }
  func.func @transform_0(%arg0: i32) -> (i32, i32, i32) {
    %c0_i32 = arith.constant 0 : i32
    %c0_i32_0 = arith.constant 0 : i32
    %c0_i32_1 = arith.constant 0 : i32
    return %arg0, %c0_i32, %c0_i32_0 : i32, i32, i32
  }
  func.func @transform_1(%arg0: i32) -> (i32, i32) {
    %c0_i32 = arith.constant 0 : i32
    %c0_i32_0 = arith.constant 0 : i32
    %c0_i32_1 = arith.constant 0 : i32
    return %c0_i32, %c0_i32_0 : i32, i32
  }
  func.func @transform_2(%arg0: i32) -> (i32, i32) {
    %c0_i32 = arith.constant 0 : i32
    %c0_i32_0 = arith.constant 0 : i32
    %c0_i32_1 = arith.constant 0 : i32
    return %c0_i32, %c0_i32_0 : i32, i32
  }
  func.func @transform_3(%arg0: i32) -> (i32, i32) {
    %c0_i32 = arith.constant 0 : i32
    %c0_i32_0 = arith.constant 0 : i32
    %c0_i32_1 = arith.constant 0 : i32
    return %c0_i32, %c0_i32_0 : i32, i32
  }
  func.func @transform_4(%arg0: i32) -> (i32, i32, i32) {
    %c0_i32 = arith.constant 0 : i32
    %c0_i32_0 = arith.constant 0 : i32
    %c0_i32_1 = arith.constant 0 : i32
    return %arg0, %c0_i32, %c0_i32_0 : i32, i32, i32
  }
}

</mosaic_0001>

<bundles_post_ra>
// kernel: rdb_forward.1
= control target key start
LH: loop header
LB: loop body
LE: loop exit
PB: predicated region body
PF: predicated region fallthrough
CT: control target
= control target key end

     0   :  { %s8744_s15 = smov 0   ;;  %s10945_s0 = inlined_call_operand.vmem [shape: f32[2,4,1135], index: 0, kind: input, shape index: {}]   ;;  %s10946_s1 = inlined_call_operand.vmem [shape: bf16[4,324], index: 1, kind: input, shape index: {}]   ;;  %s10947_s2 = inlined_call_operand.vmem [shape: bf16[4,324], index: 2, kind: input, shape index: {}]   ;;  %s10948_s3 = inlined_call_operand.vmem [shape: bf16[4,12], index: 3, kind: input, shape index: {}]   ;;  %s10949_s4 = inlined_call_operand.vmem [shape: f32[2,4,896], index: 4, kind: output, shape index: {}]  }
   0x1 LB: > { %s7379_s16 = sadd.s32 4294967295, %s8686_s15   ;;  %p7383_p0 = scmp.ge.s32.totalorder %s8686_s15, 1  ;;  %s8686_s15 = sphi %s8744_s15, %s14_s15  }
   0x2   : > { %p162_p1 = scmp.lt.s32.totalorder %s8686_s15, 3 }
   0x4   : > { %p163_p2 = pnand %p7383_p0, %p162_p1 }
   0x5   : > { %p188_p3 = scmp.lt.s32.totalorder (!%p163_p2), %s7379_s16, 1  ;;  %v8688_v0 = vmov (!%p163_p2), 0   ;;  %s8689_s21 = smov (!%p163_p2), 109   ;;  %v10972_v25 = vlaneseq (!%p163_p2)  ;;  %v8710_v26 = vmov (!%p163_p2), 1983009808   ;;  %vm11005_vm0 = vcmask (!%p163_p2), 1043456  }
   0x6   : > { %166 = sbr.rel (%p163_p2) target bundleno = 1393 (0x571), region = 36  ;;  %401 = vst [vmem:[#allocation3] sm:$0xff] (!%p163_p2), %v8688_v0  ;;  %402 = vst [vmem:[#allocation3 + $0x8] sm:$0xff] (!%p163_p2), %v8688_v0  ;;  %s8690_s22 = smov (!%p163_p2), 111   ;;  %v2704_v27 = vunpack.c.l.s4 (!%p163_p2), %v8710_v26  ;;  %vm10988_vm1 = vcmask (!%p163_p2), 908288   ;;  %vm11004_vm2 = vcmask (!%p163_p2), 900096  }
   0x7   : > { %403 = vst [vmem:[#allocation3 + $0x10] sm:$0xff] (!%p163_p2), %v8688_v0  ;;  %404 = vst [vmem:[#allocation3 + $0x18] sm:$0xf] (!%p163_p2), %v8688_v0  ;;  %s8691_s23 = smov (!%p163_p2), 110   ;;  %s8692_s24 = smov (!%p163_p2), 101   ;;  %v2707_v29 = vshrl.u32 (!%p163_p2), %v10972_v25, 7 }
   0x8   : > { %405 = vst [vmem:[#allocation3 + $0x1c] sm:$0xff] (!%p163_p2), %v8688_v0  ;;  %406 = vst [vmem:[#allocation3 + $0x24] sm:$0xff] (!%p163_p2), %v8688_v0  ;;  %s8693_s25 = smov (!%p163_p2), 100   ;;  %s8694_s26 = smov (!%p163_p2), 99   ;;  %v2705_v28 = vunpack.c.0.s8 (!%p163_p2), %v2704_v27  ;;  %vm10987_vm3 = vcmask (!%p163_p2), 891904   ;;  %vm11003_vm4 = vcmask (!%p163_p2), 826368  }
   0x9   : > { %407 = vst [vmem:[#allocation3 + $0x2c] sm:$0xff] (!%p163_p2), %v8688_v0  ;;  %408 = vst [vmem:[#allocation3 + $0x34] sm:$0xf] (!%p163_p2), %v8688_v0  ;;  %s10958_s27 = smov (!%p163_p2), 91   ;;  %s8696_s28 = smov (!%p163_p2), 90   ;;  %vm10997_vm5 = vcmask (!%p163_p2), 818176  }
   0xa   : > { %409 = vst [vmem:[#allocation3 + $0x38] sm:$0xff] (!%p163_p2), %v8688_v0  ;;  %410 = vst [vmem:[#allocation3 + $0x40] sm:$0xff] (!%p163_p2), %v8688_v0  ;;  %s10956_s29 = smov (!%p163_p2), 89   ;;  %s8698_s30 = smov (!%p163_p2), 11   ;;  %v9006_v30 = vsub.s32 (!%p163_p2), %v2705_v28, %v2707_v29  ;;  %vm11002_vm6 = vcmask (!%p163_p2), 809984   ;;  %vm10991_vm7 = vcmask (!%p163_p2), 744448  }
   0xb   : > { %411 = vst [vmem:[#allocation3 + $0x48] sm:$0xff] (!%p163_p2), %v8688_v0  ;;  %412 = vst [vmem:[#allocation3 + $0x50] sm:$0xf] (!%p163_p2), %v8688_v0  ;;  %s8699_s5 = smov (!%p163_p2), 10   ;;  %s8700_s6 = smov (!%p163_p2), 9   ;;  %vm11001_vm8 = vcmask (!%p163_p2), 736256  }
   0xc   : > { %413 = vst [vmem:[#allocation3 + $0x54] sm:$0xff] (!%p163_p2), %v8688_v0  ;;  %414 = vst [vmem:[#allocation3 + $0x5c] sm:$0xff] (!%p163_p2), %v8688_v0  ;;  %s10961_s7 = smov (!%p163_p2), 1   ;;  %s8702_s8 = smov (!%p163_p2), 127   ;;  %vm10990_vm9 = vcmask (!%p163_p2), 728064   ;;  %vm11000_vm10 = vcmask (!%p163_p2), 89088  }
   0xd   : > { %s11320_s16 = smov (!%p188_p3, %s7379_s16), 1  ;;  %415 = vst [vmem:[#allocation3 + $0x64] sm:$0xff] %v8688_v0  ;;  %416 = vst [vmem:[#allocation3 + $0x6c] sm:$0xf] %v8688_v0  ;;  %s8703_s9 = smov 119   ;;  %vm10989_vm11 = vcmask 80896  }
   0xe   : > { %s8273_s17 = smul.u32 36, %s11320_s16  ;;  %417 = vst [vmem:[#allocation3 + $0x70] sm:$0xff] %v8688_v0  ;;  %418 = vst [vmem:[#allocation3 + $0x78] sm:$0xff] %v8688_v0  ;;  %s11010_s10 = smov 118   ;;  %vm10999_vm12 = vcmask 72704   ;;  %vm10998_vm13 = vcmask 7168  }
   0xf   : > { %419 = vst [vmem:[#allocation3 + $0x80] sm:$0xff] %v8688_v0  ;;  %420 = vst [vmem:[#allocation3 + $0x88] sm:$0xf] %v8688_v0  ;;  %s8705_s11 = smov 117   ;;  %s8706_s12 = smov 39   ;;  %vm10960_vm14 = vcmask 1039360  }
  0x10   : > { %421 = vst [vmem:[#allocation3 + $0x8c] sm:$0xff] %v8688_v0  ;;  %422 = vst [vmem:[#allocation3 + $0x94] sm:$0xff] %v8688_v0  ;;  %s8924_s20 = scalar_lea.vmem %s10945_s0, %s8273_s17  ;;  %s11006_s13 = smov 38   ;;  %vm10963_vm15 = vcmask 973824  }
  0x11   : > { %423 = vst [vmem:[#allocation3 + $0x9c] sm:$0xff] %v8688_v0  ;;  %424 = vst [vmem:[#allocation3 + $0xa4] sm:$0xf] %v8688_v0  ;;  %v715_v1 = vld [vmem:[%s8924_s20 + $0x8] sm:$0xff]  ;;  %v565_v2 = vld [vmem:[%s8924_s20] sm:$0xff]  ;;  %s10952_s14 = smov 37  }
  0x12   : > { %425 = vst [vmem:[#allocation3 + $0xa8] sm:$0xff] %v8688_v0  ;;  %426 = vst [vmem:[#allocation3 + $0xb0] sm:$0xff] %v8688_v0  ;;  %v723_v3 = vcombine.high %v715_v1, %v715_v1  ;;  %v573_v4 = vcombine.high %v565_v2, %v565_v2  ;;  %v1526_v9 = vld [vmem:[%s8924_s20 + $0x4] sm:$0xff]  ;;  %v1577_v13 = vld [vmem:[%s8924_s20 + $0xc] sm:$0xff]  ;;  %s10950_s17 = smov 29   ;;  %s10954_s18 = smov 19  }
  0x13   : > { %427 = vst [vmem:[#allocation3 + $0xb8] sm:$0xff] %v8688_v0  ;;  %428 = vst [vmem:[#allocation3 + $0xc0] sm:$0xf] %v8688_v0  ;;  %v1533_v10 = vcombine.high %v1526_v9, %v1526_v9  ;;  %v1576_v14 = vld [vmem:[%s8924_s20 + $0x4] sm:$0xff]  ;;  %v1585_v15 = vcombine.high %v1577_v13, %v1577_v13  ;;  %v640_v21 = vld [vmem:[%s8924_s20 + $0x10] sm:$0xff]  ;;  %s10985_s19 = smov 18  }
  0x14   : > { %429 = vst [vmem:[#allocation3 + $0xc4] sm:$0xff] %v8688_v0  ;;  %430 = vst [vmem:[#allocation3 + $0xcc] sm:$0xff] %v8688_v0  ;;  %v7942_v5 = vpack.c.bf16 %v723_v3, %v715_v1  ;;  %v7933_v6 = vpack.c.bf16 %v573_v4, %v565_v2  ;;  %v1584_v16 = vcombine.high %v1576_v14, %v1576_v14  ;;  %v9011_v31 = vld.sshfl [vmem:[%s10946_s1] sm:$0x3f pattern:$0x76325410] }
  0x15   : > { %431 = vst [vmem:[#allocation3 + $0xd4] sm:$0xff] %v8688_v0  ;;  %432 = vst [vmem:[#allocation3 + $0xdc] sm:$0xf] %v8688_v0  ;;  %v7985_v11 = vpack.c.bf16 %v1533_v10, %v1526_v9  ;;  %v8957_v17 = vpack.c.bf16 %v1585_v15, %v1577_v13  ;;  %v648_v22 = vcombine.high %v640_v21, %v640_v21  ;;  %v641_v33 = vld [vmem:[%s8924_s20 + $0x18] sm:$0xff]  ;;  %v1527_v37 = vld [vmem:[%s8924_s20 + $0xc] sm:$0xff] }
  0x16   : > { %433 = vst [vmem:[#allocation3 + $0xe0] sm:$0xff] %v8688_v0  ;;  %434 = vst [vmem:[#allocation3 + $0xe8] sm:$0xff] %v8688_v0  ;;  %760 = vrot.lane.b32.xlu1 %v7942_v5, %s8689_s21  ;;  %609 = vrot.lane.b32.xlu0 %v7933_v6, %s8690_s22  ;;  %v682_v7 = vrot.slane %v7933_v6, 6  ;;  %v683_v8 = vrot.slane %v7942_v5, 6  ;;  %v8959_v18 = vpack.c.bf16 %v1584_v16, %v1576_v14  ;;  %v1578_v57 = vld [vmem:[%s8924_s20 + $0x14] sm:$0xff] }
  0x17   : > { %435 = vst [vmem:[#allocation3 + $0xf0] sm:$0xff] %v8688_v0  ;;  %436 = vst [vmem:[#allocation3 + $0xf8] sm:$0xf] %v8688_v0  ;;  %v1564_v12 = vrot.slane %v7985_v11, 6  ;;  %v1693_v19 = vrot.slane %v8957_v17, 6  ;;  %v8974_v23 = vpack.c.bf16 %v648_v22, %v640_v21  ;;  %v9019_v32 = vcombine.high %v9011_v31, %v9011_v31 }
  0x18   : > { %437 = vst [vmem:[#allocation3 + $0xfc] sm:$0xff] %v8688_v0  ;;  %438 = vst [vmem:[#allocation3 + $0x104] sm:$0xff] %v8688_v0  ;;  %v1692_v20 = vrot.slane %v8959_v18, 6  ;;  %v649_v36 = vcombine.high %v641_v33, %v641_v33  ;;  %v1534_v40 = vcombine.high %v1527_v37, %v1527_v37  ;;  %v1586_v1 = vcombine.high %v1578_v57, %v1578_v57 }
  0x19   : > { %439 = vst [vmem:[#allocation3 + $0x10c] sm:$0xff] %v8688_v0  ;;  %440 = vst [vmem:[#allocation3 + $0x114] sm:$0xf] %v8688_v0  ;;  %v8979_v24 = vrot.slane %v8974_v23, 6  ;;  %3516 = vmatprep.mubr.bf16.mxu0 %v9019_v32  ;;  %3598 = vmatprep.mubr.bf16.mxu1 %v9019_v32 }
  0x1a   : > { %441 = vst [vmem:[#allocation3 + $0x118] sm:$0xff] %v8688_v0  ;;  %442 = vst [vmem:[#allocation3 + $0x120] sm:$0xff] %v8688_v0  ;;  %686 = vrot.lane.b32.xlu1 %v682_v7, %s8691_s23  ;;  %611 = vrot.lane.b32.xlu0 %v7942_v5, %s8690_s22  ;;  %v9050_v43 = vpack.c.bf16 %v649_v36, %v641_v33  ;;  %v7986_v44 = vpack.c.bf16 %v1534_v40, %v1527_v37 }
  0x1b   : > { %443 = vst [vmem:[#allocation3 + $0x128] sm:$0xff] %v8688_v0  ;;  %444 = vst [vmem:[#allocation3 + $0x130] sm:$0xf] %v8688_v0 }
  0x1c   : > { %445 = vst [vmem:[#allocation3 + $0x134] sm:$0xff] %v8688_v0  ;;  %446 = vst [vmem:[#allocation3 + $0x13c] sm:$0xff] %v8688_v0  ;;  %v1565_v49 = vrot.slane %v7986_v44, 6  ;;  %v9065_v54 = vrot.slane %v9050_v43, 6 }
  0x1d   : > { %447 = vst [vmem:[#allocation3 + $0x144] sm:$0xff] %v8688_v0  ;;  %448 = vst [vmem:[#allocation3 + $0x14c] sm:$0xf] %v8688_v0 }
  0x1e   : > { %449 = vst [vmem:[#allocation3 + $0x150] sm:$0xff] %v8688_v0  ;;  %450 = vst [vmem:[#allocation3 + $0x158] sm:$0xff] %v8688_v0  ;;  %688 = vrot.lane.b32.xlu1 %v683_v8, %s8691_s23  ;;  %758 = vrot.lane.b32.xlu0 %v7933_v6, %s8689_s21 }
  0x1f   : > { %451 = vst [vmem:[#allocation3 + $0x160] sm:$0xff] %v8688_v0  ;;  %452 = vst [vmem:[#allocation3 + $0x168] sm:$0xf] %v8688_v0 }
  0x20   : > { %453 = vst [vmem:[#allocation3 + $0x16c] sm:$0xff] %v8688_v0  ;;  %454 = vst [vmem:[#allocation3 + $0x174] sm:$0xff] %v8688_v0 }
  0x21   : > { %455 = vst [vmem:[#allocation3 + $0x17c] sm:$0xff] %v8688_v0  ;;  %456 = vst [vmem:[#allocation3 + $0x184] sm:$0xf] %v8688_v0 }
  0x22   : > { %457 = vst [vmem:[#allocation3 + $0x188] sm:$0xff] %v8688_v0  ;;  %458 = vst [vmem:[#allocation3 + $0x190] sm:$0xff] %v8688_v0  ;;  %836 = vrot.lane.b32.xlu1 %v683_v8, %s8692_s24  ;;  %834 = vrot.lane.b32.xlu0 %v682_v7, %s8692_s24 }
  0x23   : > { %459 = vst [vmem:[#allocation3 + $0x198] sm:$0xff] %v8688_v0  ;;  %460 = vst [vmem:[#allocation3 + $0x1a0] sm:$0xf] %v8688_v0 }
  0x24   : > { %461 = vst [vmem:[#allocation3 + $0x1a4] sm:$0xff] %v8688_v0  ;;  %462 = vst [vmem:[#allocation3 + $0x1ac] sm:$0xff] %v8688_v0 }
  0x25   : > { %463 = vst [vmem:[#allocation3 + $0x1b4] sm:$0xff] %v8688_v0  ;;  %464 = vst [vmem:[#allocation3 + $0x1bc] sm:$0xf] %v8688_v0 }
  0x26   : > { %465 = vst [vmem:[#allocation3 + $0x1c0] sm:$0xff] %v8688_v0  ;;  %466 = vst [vmem:[#allocation3 + $0x1c8] sm:$0xff] %v8688_v0  ;;  %908 = vrot.lane.b32.xlu1 %v7942_v5, %s8693_s25  ;;  %906 = vrot.lane.b32.xlu0 %v7933_v6, %s8693_s25 }
  0x27   : > { %467 = vst [vmem:[#allocation3 + $0x1d0] sm:$0xff] %v8688_v0  ;;  %468 = vst [vmem:[#allocation3 + $0x1d8] sm:$0xf] %v8688_v0 }
  0x28   : > { %469 = vst [vmem:[#allocation3 + $0x1dc] sm:$0xff] %v8688_v0  ;;  %470 = vst [vmem:[#allocation3 + $0x1e4] sm:$0xff] %v8688_v0 }
  0x29   : > { %471 = vst [vmem:[#allocation3 + $0x1ec] sm:$0xff] %v8688_v0  ;;  %472 = vst [vmem:[#allocation3 + $0x1f4] sm:$0xf] %v8688_v0 }
  0x2a   : > { %473 = vst [vmem:[#allocation3 + $0x1f8] sm:$0xff] %v8688_v0  ;;  %474 = vst [vmem:[#allocation3 + $0x200] sm:$0xff] %v8688_v0  ;;  %984 = vrot.lane.b32.xlu1 %v683_v8, %s8694_s26  ;;  %982 = vrot.lane.b32.xlu0 %v682_v7, %s8694_s26 }
  0x2b   : > { %475 = vst [vmem:[#allocation3 + $0x208] sm:$0xff] %v8688_v0  ;;  %476 = vst [vmem:[#allocation3 + $0x210] sm:$0xf] %v8688_v0 }
  0x2c   : > { %477 = vst [vmem:[#allocation3 + $0x214] sm:$0xff] %v8688_v0  ;;  %478 = vst [vmem:[#allocation3 + $0x21c] sm:$0xff] %v8688_v0 }
  0x2d   : > { %479 = vst [vmem:[#allocation3 + $0x224] sm:$0xff] %v8688_v0  ;;  %480 = vst [vmem:[#allocation3 + $0x22c] sm:$0xf] %v8688_v0 }
  0x2e   : > { %481 = vst [vmem:[#allocation3 + $0x230] sm:$0xff] %v8688_v0  ;;  %482 = vst [vmem:[#allocation3 + $0x238] sm:$0xff] %v8688_v0  ;;  %1056 = vrot.lane.b32.xlu1 %v7942_v5, %s10958_s27  ;;  %1054 = vrot.lane.b32.xlu0 %v7933_v6, %s10958_s27 }
  0x2f   : > { %483 = vst [vmem:[#allocation3 + $0x240] sm:$0xff] %v8688_v0  ;;  %484 = vst [vmem:[#allocation3 + $0x248] sm:$0xf] %v8688_v0 }
  0x30   : > { %485 = vst [vmem:[#allocation3 + $0x24c] sm:$0xff] %v8688_v0  ;;  %486 = vst [vmem:[#allocation3 + $0x254] sm:$0xff] %v8688_v0 }
  0x31   : > { %487 = vst [vmem:[#allocation3 + $0x25c] sm:$0xff] %v8688_v0  ;;  %488 = vst [vmem:[#allocation3 + $0x264] sm:$0xf] %v8688_v0 }
  0x32   : > { %489 = vst [vmem:[#allocation3 + $0x268] sm:$0xff] %v8688_v0  ;;  %490 = vst [vmem:[#allocation3 + $0x270] sm:$0xff] %v8688_v0  ;;  %1132 = vrot.lane.b32.xlu1 %v683_v8, %s8696_s28  ;;  %1130 = vrot.lane.b32.xlu0 %v682_v7, %s8696_s28 }
  0x33   : > { %491 = vst [vmem:[#allocation3 + $0x278] sm:$0xff] %v8688_v0  ;;  %492 = vst [vmem:[#allocation3 + $0x280] sm:$0xf] %v8688_v0 }
  0x34   : > { %493 = vst [vmem:[#allocation3 + $0x284] sm:$0xff] %v8688_v0  ;;  %494 = vst [vmem:[#allocation3 + $0x28c] sm:$0xff] %v8688_v0 }
  0x35   : > { %495 = vst [vmem:[#allocation3 + $0x294] sm:$0xff] %v8688_v0  ;;  %496 = vst [vmem:[#allocation3 + $0x29c] sm:$0xf] %v8688_v0 }
  0x36   : > { %497 = vst [vmem:[#allocation3 + $0x2a0] sm:$0xff] %v8688_v0  ;;  %498 = vst [vmem:[#allocation3 + $0x2a8] sm:$0xff] %v8688_v0  ;;  %1204 = vrot.lane.b32.xlu1 %v7942_v5, %s10956_s29  ;;  %1202 = vrot.lane.b32.xlu0 %v7933_v6, %s10956_s29 }
  0x37   : > { %499 = vst [vmem:[#allocation3 + $0x2b0] sm:$0xff] %v8688_v0  ;;  %500 = vst [vmem:[#allocation3 + $0x2b8] sm:$0xf] %v8688_v0 }
  0x38   : > { %501 = vst [vmem:[#allocation3 + $0x2bc] sm:$0xff] %v8688_v0  ;;  %502 = vst [vmem:[#allocation3 + $0x2c4] sm:$0xff] %v8688_v0 }
  0x39   : > { %503 = vst [vmem:[#allocation3 + $0x2cc] sm:$0xff] %v8688_v0  ;;  %504 = vst [vmem:[#allocation3 + $0x2d4] sm:$0xf] %v8688_v0 }
  0x3a   : > { %505 = vst [vmem:[#allocation3 + $0x2d8] sm:$0xff] %v8688_v0  ;;  %506 = vst [vmem:[#allocation3 + $0x2e0] sm:$0xff] %v8688_v0  ;;  %1280 = vrot.lane.b32.xlu1 %v683_v8, %s8698_s30  ;;  %1278 = vrot.lane.b32.xlu0 %v682_v7, %s8698_s30 }
  0x3b   : > { %507 = vst [vmem:[#allocation3 + $0x2e8] sm:$0xff] %v8688_v0  ;;  %508 = vst [vmem:[#allocation3 + $0x2f0] sm:$0xf] %v8688_v0 }
  0x3c   : > { %509 = vst [vmem:[#allocation3 + $0x2f4] sm:$0xff] %v8688_v0  ;;  %510 = vst [vmem:[#allocation3 + $0x2fc] sm:$0xff] %v8688_v0 }
  0x3d   : > { %511 = vst [vmem:[#allocation3 + $0x304] sm:$0xff] %v8688_v0  ;;  %512 = vst [vmem:[#allocation3 + $0x30c] sm:$0xf] %v8688_v0 }
  0x3e   : > { %513 = vst [vmem:[#allocation3 + $0x310] sm:$0xff] %v8688_v0  ;;  %514 = vst [vmem:[#allocation3 + $0x318] sm:$0xff] %v8688_v0  ;;  %1352 = vrot.lane.b32.xlu1 %v7942_v5, %s8699_s5  ;;  %1350 = vrot.lane.b32.xlu0 %v7933_v6, %s8699_s5 }
  0x3f   : > { %515 = vst [vmem:[#allocation3 + $0x320] sm:$0xff] %v8688_v0  ;;  %516 = vst [vmem:[#allocation3 + $0x328] sm:$0xf] %v8688_v0 }
  0x40   : > { %517 = vst [vmem:[#allocation3 + $0x32c] sm:$0xff] %v8688_v0  ;;  %518 = vst [vmem:[#allocation3 + $0x334] sm:$0xff] %v8688_v0 }
  0x41   : > { %519 = vst [vmem:[#allocation3 + $0x33c] sm:$0xff] %v8688_v0  ;;  %520 = vst [vmem:[#allocation3 + $0x344] sm:$0xf] %v8688_v0 }
  0x42   : > { %521 = vst [vmem:[#allocation3 + $0x348] sm:$0xff] %v8688_v0  ;;  %522 = vst [vmem:[#allocation3 + $0x350] sm:$0xff] %v8688_v0  ;;  %1428 = vrot.lane.b32.xlu1 %v683_v8, %s8700_s6  ;;  %1426 = vrot.lane.b32.xlu0 %v682_v7, %s8700_s6  ;;  %v9094_v8 = vpack.c.bf16 %v1586_v1, %v1578_v57 }
  0x43   : > { %523 = vst [vmem:[#allocation3 + $0x358] sm:$0xff] %v8688_v0  ;;  %524 = vst [vmem:[#allocation3 + $0x360] sm:$0xf] %v8688_v0 }
  0x44   : > { %525 = vst [vmem:[#allocation3 + $0x364] sm:$0xff] %v8688_v0  ;;  %526 = vst [vmem:[#allocation3 + $0x36c] sm:$0xff] %v8688_v0 }
  0x45   : > { %527 = vst [vmem:[#allocation3 + $0x374] sm:$0xff] %v8688_v0  ;;  %528 = vst [vmem:[#allocation3 + $0x37c] sm:$0xf] %v8688_v0 }
  0x46   : > { %529 = vst [vmem:[#allocation3 + $0x380] sm:$0xff] %v8688_v0  ;;  %530 = vst [vmem:[#allocation3 + $0x388] sm:$0xff] %v8688_v0  ;;  %1500 = vrot.lane.b32.xlu1 %v7942_v5, %s10961_s7  ;;  %1498 = vrot.lane.b32.xlu0 %v7933_v6, %s10961_s7 }
  0x47   : > { %531 = vst [vmem:[#allocation3 + $0x390] sm:$0xff] %v8688_v0  ;;  %532 = vst [vmem:[#allocation3 + $0x398] sm:$0xf] %v8688_v0 }
  0x48   : > { %533 = vst [vmem:[#allocation3 + $0x39c] sm:$0xff] %v8688_v0  ;;  %534 = vst [vmem:[#allocation3 + $0x3a4] sm:$0xff] %v8688_v0 }
  0x49   : > { %535 = vst [vmem:[#allocation3 + $0x3ac] sm:$0xff] %v8688_v0  ;;  %536 = vst [vmem:[#allocation3 + $0x3b4] sm:$0xf] %v8688_v0 }
  0x4a   : > { %537 = vst [vmem:[#allocation3 + $0x3b8] sm:$0xff] %v8688_v0  ;;  %538 = vst [vmem:[#allocation3 + $0x3c0] sm:$0xff] %v8688_v0  ;;  %1622 = vrot.lane.b32.xlu1 %v8957_v17, %s8702_s8  ;;  %1620 = vrot.lane.b32.xlu0 %v8959_v18, %s8702_s8 }
  0x4b   : > { %539 = vst [vmem:[#allocation3 + $0x3c8] sm:$0xff] %v8688_v0  ;;  %540 = vst [vmem:[#allocation3 + $0x3d0] sm:$0xf] %v8688_v0 }
  0x4c   : > { %541 = vst [vmem:[#allocation3 + $0x3d4] sm:$0xff] %v8688_v0  ;;  %542 = vst [vmem:[#allocation3 + $0x3dc] sm:$0xff] %v8688_v0 }
  0x4d   : > { %543 = vst [vmem:[#allocation3 + $0x3e4] sm:$0xff] %v8688_v0  ;;  %544 = vst [vmem:[#allocation3 + $0x3ec] sm:$0xf] %v8688_v0 }
  0x4e   : > { %545 = vst [vmem:[#allocation3 + $0x3f0] sm:$0xff] %v8688_v0  ;;  %546 = vst [vmem:[#allocation3 + $0x3f8] sm:$0xff] %v8688_v0  ;;  %1698 = vrot.lane.b32.xlu1 %v1693_v19, %s8703_s9  ;;  %1696 = vrot.lane.b32.xlu0 %v1692_v20, %s8703_s9 }
  0x4f   : > { %547 = vst [vmem:[#allocation3 + $0x400] sm:$0xff] %v8688_v0  ;;  %548 = vst [vmem:[#allocation3 + $0x408] sm:$0xf] %v8688_v0 }
  0x50   : > { %549 = vst [vmem:[#allocation3 + $0x40c] sm:$0xff] %v8688_v0  ;;  %550 = vst [vmem:[#allocation3 + $0x414] sm:$0xff] %v8688_v0 }
  0x51   : > { %551 = vst [vmem:[#allocation3 + $0x41c] sm:$0xff] %v8688_v0  ;;  %552 = vst [vmem:[#allocation3 + $0x424] sm:$0xf] %v8688_v0 }
  0x52   : > { %553 = vst [vmem:[#allocation3 + $0x428] sm:$0xff] %v8688_v0  ;;  %554 = vst [vmem:[#allocation3 + $0x430] sm:$0xff] %v8688_v0  ;;  %1770 = vrot.lane.b32.xlu1 %v8957_v17, %s11010_s10  ;;  %1768 = vrot.lane.b32.xlu0 %v8959_v18, %s11010_s10 }
  0x53   : > { %555 = vst [vmem:[#allocation3 + $0x438] sm:$0xff] %v8688_v0  ;;  %556 = vst [vmem:[#allocation3 + $0x440] sm:$0xf] %v8688_v0 }
  0x54   : > { %557 = vst [vmem:[#allocation3 + $0x444] sm:$0xff] %v8688_v0  ;;  %558 = vst [vmem:[#allocation3 + $0x44c] sm:$0xff] %v8688_v0 }
  0x55   : > { %559 = vst [vmem:[#allocation3 + $0x454] sm:$0xff] %v8688_v0  ;;  %560 = vst [vmem:[#allocation3 + $0x45c] sm:$0xf] %v8688_v0 }
  0x56   : > { %561 = vst [vmem:[#allocation3 + $0x460] sm:$0x33] %v8688_v0  ;;  %562 = vst [vmem:[#allocation3 + $0x468] sm:$0x33] %v8688_v0  ;;  %1846 = vrot.lane.b32.xlu1 %v1693_v19, %s8705_s11  ;;  %1844 = vrot.lane.b32.xlu0 %v1692_v20, %s8705_s11 }
  0x57   : > { %563 = vst [vmem:[#allocation3 + $0x470] sm:$0x33] %v8688_v0  ;;  %564 = vst [vmem:[#allocation3 + $0x478] sm:$0x3] %v8688_v0 }
  0x58   : > { %1572 = vst [vmem:[#allocation3 + $0x214] sm:$0xcc] %v1564_v12  ;;  %1573 = vst [vmem:[#allocation3 + $0x21c] sm:$0xcc] %v1565_v49 }
  0x5a   : > { %690 = vrot.lane.b32.xlu1 %v8979_v24, %s8691_s23  ;;  %613 = vrot.lane.b32.xlu0 %v8974_v23, %s8690_s22 }
  0x5e   : > { %1918 = vrot.lane.b32.xlu1 %v8957_v17, %s8706_s12  ;;  %1916 = vrot.lane.b32.xlu0 %v8959_v18, %s8706_s12 }
  0x62   : > { %1992 = vrot.lane.b32.xlu1 %v1692_v20, %s11006_s13  ;;  %762 = vrot.lane.b32.xlu0 %v8974_v23, %s8689_s21 }
  0x66   : > { %838 = vrot.lane.b32.xlu1 %v8979_v24, %s8692_s24  ;;  %1994 = vrot.lane.b32.xlu0 %v1693_v19, %s11006_s13 }
  0x6a   : > { %2066 = vrot.lane.b32.xlu1 %v8957_v17, %s10952_s14  ;;  %2064 = vrot.lane.b32.xlu0 %v8959_v18, %s10952_s14  ;;  %s11008_s14 = smov 27  }
  0x6e   : > { %2142 = vrot.lane.b32.xlu1 %v1693_v19, %s10950_s17  ;;  %2140 = vrot.lane.b32.xlu0 %v1692_v20, %s10950_s17  ;;  %s8711_s17 = smov 28  }
  0x72   : > { %986 = vrot.lane.b32.xlu1 %v8979_v24, %s8694_s26  ;;  %910 = vrot.lane.b32.xlu0 %v8974_v23, %s8693_s25 }
  0x76   : > { %2214 = vrot.lane.b32.xlu1 %v8957_v17, %s8711_s17  ;;  %2212 = vrot.lane.b32.xlu0 %v8959_v18, %s8711_s17 }
  0x7a   : > { %2288 = vrot.lane.b32.xlu1 %v1692_v20, %s11008_s14  ;;  %1058 = vrot.lane.b32.xlu0 %v8974_v23, %s10958_s27 }
  0x7e   : > { %1134 = vrot.lane.b32.xlu1 %v8979_v24, %s8696_s28  ;;  %2290 = vrot.lane.b32.xlu0 %v1693_v19, %s11008_s14 }
  0x82   : > { %2362 = vrot.lane.b32.xlu1 %v8957_v17, %s10954_s18  ;;  %2360 = vrot.lane.b32.xlu0 %v8959_v18, %s10954_s18  ;;  %s10983_s18 = smov 17  }
  0x86   : > { %2438 = vrot.lane.b32.xlu1 %v1693_v19, %s10985_s19  ;;  %2436 = vrot.lane.b32.xlu0 %v1692_v20, %s10985_s19  ;;  %v9109_v19 = vrot.slane %v9094_v8, 6 }
  0x88   : > { %v9036_v34 = vpop.permute.xlu1 %760  ;;  %v610_v35 = vpop.permute.xlu0 %609 }
  0x89   : > { %v617_v41 = vrot.slane %v610_v35, 4  ;;  %v767_v50 = vrot.slane %v9036_v34, 4 }
  0x8a   : > { %1282 = vrot.lane.b32.xlu1 %v8979_v24, %s8698_s30  ;;  %1206 = vrot.lane.b32.xlu0 %v8974_v23, %s10956_s29 }
  0x8c   : > { %v687_v38 = vpop.permute.xlu1 %686  ;;  %v9043_v39 = vpop.permute.xlu0 %611 }
  0x8d   : > { %v618_v42 = vrot.slane %v9043_v39, 4  ;;  %v694_v51 = vrot.slane %v687_v38, 4 }
  0x8e   : > { %2510 = vrot.lane.b32.xlu1 %v8957_v17, %s10983_s18  ;;  %2508 = vrot.lane.b32.xlu0 %v8959_v18, %s10983_s18 }
  0x8f   : > { %v622_v45 = vsel %vm11005_vm0, %v617_v41, %v618_v42 }
  0x90   : > { %v624_v46 = vsel %vm10988_vm1, %v610_v35, %v622_v45  ;;  %v9056_v47 = vpop.permute.xlu1 %688  ;;  %v759_v48 = vpop.permute.xlu0 %758 }
  0x91   : > { %634 = vst [vmem:[#allocation3] sm:$0x33] %v624_v46  ;;  %v695_v52 = vrot.slane %v9056_v47, 4  ;;  %v766_v53 = vrot.slane %v759_v48, 4 }
  0x92   : > { %1430 = vrot.lane.b32.xlu1 %v8979_v24, %s8700_s6  ;;  %1354 = vrot.lane.b32.xlu0 %v8974_v23, %s8699_s5 }
  0x93   : > { %v698_v55 = vsel %vm11005_vm0, %v694_v51, %v695_v52  ;;  %v770_v56 = vsel %vm11005_vm0, %v766_v53, %v767_v50 }
  0x94   : > { %v700_v58 = vsel %vm11004_vm2, %v687_v38, %v698_v55  ;;  %v772_v59 = vsel %vm10987_vm3, %v759_v48, %v770_v56  ;;  %v9076_v60 = vpop.permute.xlu1 %836  ;;  %v835_v61 = vpop.permute.xlu0 %834 }
  0x95   : > { %710 = vst [vmem:[#allocation3 + $0x1c] sm:$0xcc] %v700_v58  ;;  %782 = vst [vmem:[#allocation3 + $0x54] sm:$0x33] %v772_v59  ;;  %v843_v62 = vrot.slane %v9076_v60, 4  ;;  %v842_v63 = vrot.slane %v835_v61, 4 }
  0x96   : > { %692 = vrot.lane.b32.xlu1 %v9065_v54, %s8691_s23  ;;  %615 = vrot.lane.b32.xlu0 %v9050_v43, %s8690_s22 }
  0x97   : > { %v846_v2 = vsel %vm11005_vm0, %v842_v63, %v843_v62 }
  0x98   : > { %v848_v3 = vsel %vm11003_vm4, %v835_v61, %v846_v2  ;;  %v9087_v4 = vpop.permute.xlu1 %908  ;;  %v907_v5 = vpop.permute.xlu0 %906 }
  0x99   : > { %858 = vst [vmem:[#allocation3 + $0x70] sm:$0xcc] %v848_v3  ;;  %v915_v6 = vrot.slane %v9087_v4, 4  ;;  %v914_v7 = vrot.slane %v907_v5, 4 }
  0x9a   : > { %764 = vrot.lane.b32.xlu1 %v9050_v43, %s8689_s21  ;;  %1502 = vrot.lane.b32.xlu0 %v8974_v23, %s10961_s7 }
  0x9b   : > { %v918_v9 = vsel %vm11005_vm0, %v914_v7, %v915_v6 }
  0x9c   : > { %v920_v10 = vsel %vm10997_vm5, %v907_v5, %v918_v9  ;;  %v9100_v11 = vpop.permute.xlu1 %984  ;;  %v983_v12 = vpop.permute.xlu0 %982  ;;  %v8363_v13 = vld [vmem:[#allocation3 + $0x4] ss:$28 sps:$4 sm:$0xff]   ;;  %v2549_v17 = vld [vmem:[#allocation3 + $0x54] sm:$0xff] }
  0x9d   : > { %v8365_v14 = vld [vmem:[#allocation3] ss:$28 sps:$4 sm:$0xff]   ;;  %930 = vst [vmem:[#allocation3 + $0xa8] sm:$0x33] %v920_v10  ;;  %v991_v15 = vrot.slane %v9100_v11, 4  ;;  %v990_v16 = vrot.slane %v983_v12, 4  ;;  %v7509_v18 = vcombine.high %v8688_v0, %v2549_v17  ;;  %3484 = vmatprep.subr.bf16.mxu0 %v8363_v13  ;;  %v7508_v29 = vcombine.low %v8688_v0, %v2549_v17 }
  0x9e   : > { %840 = vrot.lane.b32.xlu1 %v9065_v54, %s8692_s24  ;;  %1624 = vrot.lane.b32.xlu0 %v9094_v8, %s8702_s8 }
  0x9f   : > { %v994_v20 = vsel %vm11005_vm0, %v990_v16, %v991_v15  ;;  %3485 = vmatpush1.bf16.msra.mxu0 %v8365_v14 }
  0xa0   : > { %v996_v21 = vsel %vm11002_vm6, %v983_v12, %v994_v20  ;;  %v9115_v22 = vpop.permute.xlu1 %1056  ;;  %v1055_v23 = vpop.permute.xlu0 %1054  ;;  %v2553_v24 = vld [vmem:[#allocation3 + $0x70] sm:$0xff]  ;;  %3486 = vmatprep.subr.bf16.mxu0 %v7509_v18 }
  0xa1   : > { %1006 = vst [vmem:[#allocation3 + $0xc4] sm:$0xcc] %v996_v21  ;;  %v1063_v26 = vrot.slane %v9115_v22, 4  ;;  %v1062_v27 = vrot.slane %v1055_v23, 4  ;;  %v7516_v28 = vcombine.high %v2553_v24, %v8688_v0  ;;  %v7515_v41 = vcombine.low %v2553_v24, %v8688_v0  ;;  %v1528_v20 = vld [vmem:[%s8924_s20 + $0x14] sm:$0xff] }
  0xa2   : > { %912 = vrot.lane.b32.xlu1 %v9050_v43, %s8693_s25  ;;  %1700 = vrot.lane.b32.xlu0 %v9109_v19, %s8703_s9 }
  0xa3   : > { %v1066_v33 = vsel %vm11005_vm0, %v1062_v27, %v1063_v26  ;;  %3487 = vmatpush1.bf16.msra.mxu0 %v7508_v29  ;;  %v1535_v27 = vcombine.high %v1528_v20, %v1528_v20  ;;  %v1529_v29 = vld [vmem:[%s8924_s20 + $0x1c] sm:$0xf] }
  0xa4   : > { %v1068_v35 = vsel %vm10991_vm7, %v1055_v23, %v1066_v33  ;;  %v9128_v36 = vpop.permute.xlu1 %1132  ;;  %v1131_v37 = vpop.permute.xlu0 %1130  ;;  %3488 = vmatprep.subr.bf16.mxu0 %v7516_v28 }
  0xa5   : > { %1078 = vst [vmem:[#allocation3 + $0xfc] sm:$0x33] %v1068_v35  ;;  %v1139_v38 = vrot.slane %v9128_v36, 4  ;;  %v1138_v40 = vrot.slane %v1131_v37, 4  ;;  %v7987_v33 = vpack.c.bf16 %v1535_v27, %v1528_v20  ;;  %v7988_v35 = vpack.c.bf16 %v1529_v29, %v1529_v29 }
  0xa6   : > { %1772 = vrot.lane.b32.xlu1 %v9094_v8, %s11010_s10  ;;  %988 = vrot.lane.b32.xlu0 %v9065_v54, %s8694_s26 }
  0xa7   : > { %v1142_v44 = vsel %vm11005_vm0, %v1138_v40, %v1139_v38  ;;  %3489 = vmatpush1.bf16.msra.mxu0 %v7515_v41 }
  0xa8   : > { %v1144_v45 = vsel %vm11001_vm8, %v1131_v37, %v1142_v44  ;;  %v9140_v46 = vpop.permute.xlu1 %1204  ;;  %v1203_v48 = vpop.permute.xlu0 %1202  ;;  %v8366_v49 = vld [vmem:[#allocation3 + $0xac] ss:$28 sps:$4 sm:$0xff]  }
  0xa9   : > { %v8368_v51 = vld [vmem:[#allocation3 + $0xa8] ss:$28 sps:$4 sm:$0xff]   ;;  %1154 = vst [vmem:[#allocation3 + $0x118] sm:$0xcc] %v1144_v45  ;;  %v1211_v53 = vrot.slane %v9140_v46, 4  ;;  %v1210_v55 = vrot.slane %v1203_v48, 4  ;;  %3490 = vmatprep.subr.bf16.mxu0 %v8366_v49 }
  0xaa   : > { %1060 = vrot.lane.b32.xlu1 %v9050_v43, %s10958_s27  ;;  %1848 = vrot.lane.b32.xlu0 %v9109_v19, %s8705_s11  ;;  %v1566_v49 = vrot.slane %v7987_v33, 6  ;;  %s11028_s27 = smov 29  }
  0xab   : > { %v1214_v56 = vsel %vm11005_vm0, %v1210_v55, %v1211_v53  ;;  %3491 = vmatpush1.bf16.msra.mxu0 %v8368_v51 }
  0xac   : > { %v1216_v57 = vsel %vm10990_vm9, %v1203_v48, %v1214_v56  ;;  %v9151_v58 = vpop.permute.xlu1 %1280  ;;  %v1279_v59 = vpop.permute.xlu0 %1278  ;;  %v2573_v61 = vld [vmem:[#allocation3 + $0xfc] sm:$0xff]  ;;  %v1567_v56 = vrot.slane %v7988_v35, 6  ;;  %1574 = vst [vmem:[#allocation3 + $0x224] sm:$0xcc] %v1566_v49 }
  0xad   : > { %1226 = vst [vmem:[#allocation3 + $0x150] sm:$0x33] %v1216_v57  ;;  %v1287_v63 = vrot.slane %v9151_v58, 4  ;;  %v1286_v1 = vrot.slane %v1279_v59, 4  ;;  %v7530_v2 = vcombine.high %v8688_v0, %v2573_v61  ;;  %v7529_v3 = vcombine.low %v8688_v0, %v2573_v61 }
  0xae   : > { %1136 = vrot.lane.b32.xlu1 %v9065_v54, %s8696_s28  ;;  %1920 = vrot.lane.b32.xlu0 %v9094_v8, %s8706_s12  ;;  %1575 = vst [vmem:[#allocation3 + $0x22c] sm:$0xc] %v1567_v56 }
  0xaf   : > { %v1290_v5 = vsel %vm11005_vm0, %v1286_v1, %v1287_v63  ;;  %3492 = vmatprep.subr.bf16.mxu0 %v7530_v2 }
  0xb0   : > { %v1292_v7 = vsel %vm11000_vm10, %v1279_v59, %v1290_v5  ;;  %v9164_v9 = vpop.permute.xlu1 %1352  ;;  %3493 = vmatpush1.bf16.msra.mxu0 %v7529_v3  ;;  %v1351_v10 = vpop.permute.xlu0 %1350  ;;  %v2577_v12 = vld [vmem:[#allocation3 + $0x118] sm:$0xff] }
  0xb1   : > { %1302 = vst [vmem:[#allocation3 + $0x16c] sm:$0xcc] %v1292_v7  ;;  %v1359_v13 = vrot.slane %v9164_v9, 4  ;;  %v1358_v14 = vrot.slane %v1351_v10, 4  ;;  %v7537_v16 = vcombine.high %v2577_v12, %v8688_v0  ;;  %v7536_v17 = vcombine.low %v2577_v12, %v8688_v0  ;;  %v9204_v7 = vld [vmem:[#allocation3 + $0x8] sm:$0xff] }
  0xb2   : > { %1208 = vrot.lane.b32.xlu1 %v9050_v43, %s10956_s29  ;;  %1996 = vrot.lane.b32.xlu0 %v9109_v19, %s11006_s13  ;;  %s11027_s29 = smov 37  }
  0xb3   : > { %v1362_v18 = vsel %vm11005_vm0, %v1358_v14, %v1359_v13  ;;  %3494 = vmatprep.subr.bf16.mxu0 %v7537_v16  ;;  %v1579_v16 = vld [vmem:[%s8924_s20 + $0x1c] sm:$0xff] }
  0xb4   : > { %v1364_v21 = vsel %vm10989_vm11, %v1351_v10, %v1362_v18  ;;  %v9178_v23 = vpop.permute.xlu1 %1428  ;;  %3495 = vmatpush1.bf16.msra.mxu0 %v7536_v17  ;;  %v1427_v24 = vpop.permute.xlu0 %1426  ;;  %v1587_v29 = vcombine.high %v1579_v16, %v1579_v16 }
  0xb5   : > { %1374 = vst [vmem:[#allocation3 + $0x1a4] sm:$0x33] %v1364_v21  ;;  %v1435_v0 = vrot.slane %v9178_v23, 4  ;;  %v1434_v28 = vrot.slane %v1427_v24, 4 }
  0xb6   : > { %2068 = vrot.lane.b32.xlu1 %v9094_v8, %s11027_s29  ;;  %1284 = vrot.lane.b32.xlu0 %v9065_v54, %s8698_s30  ;;  %v9237_v49 = vpack.c.bf16 %v1587_v29, %v1579_v16 }
  0xb7   : > { %v1438_v37 = vsel %vm11005_vm0, %v1434_v28, %v1435_v0 }
  0xb8   : > { %v1440_v40 = vsel %vm10999_vm12, %v1427_v24, %v1438_v37  ;;  %v9190_v41 = vpop.permute.xlu1 %1500  ;;  %v1499_v44 = vpop.permute.xlu0 %1498  ;;  %v8369_v45 = vld [vmem:[#allocation3 + $0x154] ss:$28 sps:$4 sm:$0xff]  }
  0xb9   : > { %v8371_v48 = vld [vmem:[#allocation3 + $0x150] ss:$28 sps:$4 sm:$0xff]   ;;  %1450 = vst [vmem:[#allocation3 + $0x1c0] sm:$0xcc] %v1440_v40  ;;  %v1507_v51 = vrot.slane %v9190_v41, 4  ;;  %v1506_v55 = vrot.slane %v1499_v44, 4  ;;  %3496 = vmatprep.subr.bf16.mxu0 %v8369_v45 }
  0xba   : > { %1356 = vrot.lane.b32.xlu1 %v9050_v43, %s8699_s5  ;;  %2144 = vrot.lane.b32.xlu0 %v9109_v19, %s11028_s27 }
  0xbb   : > { %v1510_v57 = vsel %vm11005_vm0, %v1506_v55, %v1507_v51  ;;  %3497 = vmatpush1.bf16.msra.mxu0 %v8371_v48 }
  0xbc   : > { %v1512_v59 = vsel %vm10998_vm13, %v1499_v44, %v1510_v57  ;;  %v9201_v61 = vpop.permute.xlu1 %1622  ;;  %v1621_v1 = vpop.permute.xlu0 %1620  ;;  %v2597_v2 = vld [vmem:[#allocation3 + $0x1a4] sm:$0xff] }
  0xbd   : > { %1522 = vst [vmem:[#allocation3 + $0x1f8] sm:$0x33] %v1512_v59  ;;  %v1629_v3 = vrot.slane %v9201_v61, 4  ;;  %v1628_v5 = vrot.slane %v1621_v1, 4  ;;  %v7551_v10 = vcombine.high %v9204_v7, %v2597_v2  ;;  %v7550_v12 = vcombine.low %v9204_v7, %v2597_v2 }
  0xbe   : > { %1432 = vrot.lane.b32.xlu1 %v9065_v54, %s8700_s6  ;;  %2216 = vrot.lane.b32.xlu0 %v9094_v8, %s8711_s17 }
  0xbf   : > { %v1632_v14 = vsel %vm11005_vm0, %v1628_v5, %v1629_v3  ;;  %3498 = vmatprep.subr.bf16.mxu0 %v7551_v10 }
  0xc0   : > { %v1634_v17 = vsel %vm10960_vm14, %v1621_v1, %v1632_v14  ;;  %v9217_v18 = vpop.permute.xlu1 %1698  ;;  %3499 = vmatpush1.bf16.msra.mxu0 %v7550_v12  ;;  %v1697_v20 = vpop.permute.xlu0 %1696  ;;  %v2601_v21 = vld [vmem:[#allocation3 + $0x1c0] sm:$0xff]  ;;  %vm10966_vm14 = vcmask 965632   ;;  %v9253_v12 = vrot.slane %v9237_v49, 6 }
  0xc1   : > { %1644 = vst [vmem:[#allocation3 + $0x24c] sm:$0x33] %v1634_v17  ;;  %v1705_v54 = vrot.slane %v9217_v18, 4  ;;  %v1704_v24 = vrot.slane %v1697_v20, 4  ;;  %v7558_v27 = vcombine.high %v2601_v21, %v9204_v7  ;;  %v7557_v28 = vcombine.low %v2601_v21, %v9204_v7 }
  0xc2   : > { %1504 = vrot.lane.b32.xlu1 %v9050_v43, %s10961_s7  ;;  %2292 = vrot.lane.b32.xlu0 %v9109_v19, %s11008_s14  ;;  %s11029_s7 = smov 19  }
  0xc3   : > { %v1708_v33 = vsel %vm11005_vm0, %v1704_v24, %v1705_v54  ;;  %3500 = vmatprep.subr.bf16.mxu0 %v7558_v27 }
  0xc4   : > { %v1710_v35 = vsel %vm10963_vm15, %v1697_v20, %v1708_v33  ;;  %v9230_v37 = vpop.permute.xlu1 %1770  ;;  %3501 = vmatpush1.bf16.msra.mxu0 %v7557_v28  ;;  %v1769_v40 = vpop.permute.xlu0 %1768  ;;  %v8373_v44 = vld [vmem:[#allocation3 + $0x1fc] ss:$28 sps:$4 sm:$0xff]   ;;  %vm10964_vm15 = vcmask 957440  }
  0xc5   : > { %1720 = vst [vmem:[#allocation3 + $0x268] sm:$0xcc] %v1710_v35  ;;  %v1777_v45 = vrot.slane %v9230_v37, 4  ;;  %v1776_v43 = vrot.slane %v1769_v40, 4  ;;  %v8375_v48 = vld [vmem:[#allocation3 + $0x1f8] ss:$28 sps:$4 sm:$0xff]   ;;  %3502 = vmatprep.subr.bf16.mxu0 %v8373_v44 }
  0xc6   : > { %2440 = vrot.lane.b32.xlu1 %v9109_v19, %s10985_s19  ;;  %2364 = vrot.lane.b32.xlu0 %v9094_v8, %s11029_s7 }
  0xc7   : > { %v1780_v55 = vsel %vm11005_vm0, %v1776_v43, %v1777_v45 }
  0xc8   : > { %v1782_v56 = vsel %vm10966_vm14, %v1769_v40, %v1780_v55  ;;  %v9243_v57 = vpop.permute.xlu1 %1846  ;;  %3503 = vmatpush1.bf16.msra.mxu0 %v8375_v48  ;;  %v1845_v59 = vpop.permute.xlu0 %1844  ;;  %v2621_v1 = vld [vmem:[#allocation3 + $0x24c] sm:$0xff]  ;;  %vm10970_vm14 = vcmask 302080  }
  0xc9   : > { %1792 = vst [vmem:[#allocation3 + $0x2a0] sm:$0x33] %v1782_v56  ;;  %v1853_v19 = vrot.slane %v9243_v57, 4  ;;  %v1852_v2 = vrot.slane %v1845_v59, 4  ;;  %v7572_v5 = vcombine.high %v9204_v7, %v2621_v1  ;;  %v7571_v10 = vcombine.low %v9204_v7, %v2621_v1 }
  0xca   : > { %2512 = vrot.lane.b32.xlu1 %v9094_v8, %s10983_s18  ;;  %1626 = vrot.lane.b32.xlu0 %v9237_v49, %s8702_s8 }
  0xcb   : > { %v1856_v14 = vsel %vm11005_vm0, %v1852_v2, %v1853_v19  ;;  %3504 = vmatprep.subr.bf16.mxu0 %v7572_v5 }
  0xcc   : > { %v1858_v16 = vsel %vm10964_vm15, %v1845_v59, %v1856_v14  ;;  %v9259_v17 = vpop.permute.xlu1 %690  ;;  %3505 = vmatpush1.bf16.msra.mxu0 %v7571_v10  ;;  %v9261_v20 = vpop.permute.xlu0 %613  ;;  %v2625_v21 = vld [vmem:[#allocation3 + $0x268] sm:$0xff]  ;;  %vm10965_vm15 = vcmask 318464  }
  0xcd   : > { %1868 = vst [vmem:[#allocation3 + $0x2bc] sm:$0xcc] %v1858_v16  ;;  %v696_v8 = vrot.slane %v9259_v17, 4  ;;  %v619_v24 = vrot.slane %v9261_v20, 4  ;;  %v7579_v27 = vcombine.high %v2625_v21, %v9204_v7  ;;  %v7578_v28 = vcombine.low %v2625_v21, %v9204_v7 }
  0xce   : > { %1774 = vrot.lane.b32.xlu1 %v9237_v49, %s11010_s10  ;;  %1702 = vrot.lane.b32.xlu0 %v9253_v12, %s8703_s9 }
  0xcf   : > { %v701_v29 = vsel %vm11005_vm0, %v695_v52, %v696_v8  ;;  %v625_v33 = vsel %vm11005_vm0, %v618_v42, %v619_v24  ;;  %3506 = vmatprep.subr.bf16.mxu0 %v7579_v27 }
  0xd0   : > { %v702_v35 = vsel %vm11004_vm2, %v9056_v47, %v701_v29  ;;  %v626_v40 = vsel %vm10988_vm1, %v9043_v39, %v625_v33  ;;  %v9285_v44 = vpop.permute.xlu1 %1918  ;;  %3507 = vmatpush1.bf16.msra.mxu0 %v7578_v28  ;;  %v1917_v43 = vpop.permute.xlu0 %1916 }
  0xd1   : > { %711 = vst [vmem:[#allocation3 + $0x24] sm:$0xcc] %v702_v35  ;;  %635 = vst [vmem:[#allocation3 + $0x8] sm:$0x33] %v626_v40  ;;  %v1925_v52 = vrot.slane %v9285_v44, 4  ;;  %v1924_v48 = vrot.slane %v1917_v43, 4 }
  0xd2   : > { %1922 = vrot.lane.b32.xlu1 %v9237_v49, %s8706_s12  ;;  %1850 = vrot.lane.b32.xlu0 %v9253_v12, %s8705_s11 }
  0xd3   : > { %v1928_v39 = vsel %vm11005_vm0, %v1924_v48, %v1925_v52 }
  0xd4   : > { %v1930_v42 = vsel %vm10965_vm15, %v1917_v43, %v1928_v39  ;;  %v1993_v47 = vpop.permute.xlu1 %1992  ;;  %v9296_v55 = vpop.permute.xlu0 %762  ;;  %v8377_v56 = vld [vmem:[#allocation3 + $0x2a4] ss:$28 sps:$4 sm:$0xff]   ;;  %vm10967_vm15 = vcmask 310272  }
  0xd5   : > { %v8379_v59 = vld [vmem:[#allocation3 + $0x2a0] ss:$28 sps:$4 sm:$0xff]   ;;  %1940 = vst [vmem:[#allocation3 + $0x2f4] sm:$0x33] %v1930_v42  ;;  %v768_v1 = vrot.slane %v9296_v55, 4  ;;  %3508 = vmatprep.subr.bf16.mxu0 %v8377_v56  ;;  %v2000_v21 = vrot.slane %v1993_v47, 4 }
  0xd6   : > { %2070 = vrot.lane.b32.xlu1 %v9237_v49, %s11027_s29  ;;  %1998 = vrot.lane.b32.xlu0 %v9253_v12, %s11006_s13 }
  0xd7   : > { %v773_v2 = vsel %vm11005_vm0, %v767_v50, %v768_v1  ;;  %3509 = vmatpush1.bf16.msra.mxu0 %v8379_v59 }
  0xd8   : > { %v774_v5 = vsel %vm10987_vm3, %v9036_v34, %v773_v2  ;;  %v9310_v10 = vpop.permute.xlu1 %838  ;;  %v9312_v14 = vpop.permute.xlu0 %1994  ;;  %v8380_v16 = vld [vmem:[#allocation3 + $0xc] ss:$28 sps:$4 sm:$0xff]  }
  0xd9   : > { %783 = vst [vmem:[#allocation3 + $0x5c] sm:$0x33] %v774_v5  ;;  %v844_v27 = vrot.slane %v9310_v10, 4  ;;  %v2001_v28 = vrot.slane %v9312_v14, 4  ;;  %v8382_v29 = vld [vmem:[#allocation3 + $0x8] ss:$28 sps:$4 sm:$0xff]   ;;  %3566 = vmatprep.subr.bf16.mxu1 %v8380_v16 }
  0xda   : > { %2218 = vrot.lane.b32.xlu1 %v9237_v49, %s8711_s17  ;;  %2146 = vrot.lane.b32.xlu0 %v9253_v12, %s11028_s27 }
  0xdb   : > { %v849_v34 = vsel %vm11005_vm0, %v843_v62, %v844_v27  ;;  %v2004_v50 = vsel %vm11005_vm0, %v2000_v21, %v2001_v28  ;;  %3567 = vmatpush1.bf16.msra.mxu1 %v8382_v29 }
  0xdc   : > { %v850_v33 = vsel %vm11003_vm4, %v9076_v60, %v849_v34  ;;  %v2006_v35 = vsel %vm10967_vm15, %v1993_v47, %v2004_v50  ;;  %v9331_v40 = vpop.permute.xlu1 %2066  ;;  %v2065_v43 = vpop.permute.xlu0 %2064  ;;  %v2645_v48 = vld [vmem:[#allocation3 + $0x2f4] sm:$0xff]  ;;  %vm10968_vm15 = vcmask 236544  }
  0xdd   : > { %859 = vst [vmem:[#allocation3 + $0x78] sm:$0xcc] %v850_v33  ;;  %2016 = vst [vmem:[#allocation3 + $0x310] sm:$0xcc] %v2006_v35  ;;  %v2073_v62 = vrot.slane %v9331_v40, 4  ;;  %v2072_v39 = vrot.slane %v2065_v43, 4  ;;  %v7593_v42 = vcombine.high %v9204_v7, %v2645_v48  ;;  %v7592_v56 = vcombine.low %v9204_v7, %v2645_v48 }
  0xde   : > { %2366 = vrot.lane.b32.xlu1 %v9237_v49, %s11029_s7  ;;  %2294 = vrot.lane.b32.xlu0 %v9253_v12, %s11008_s14 }
  0xdf   : > { %v2076_v60 = vsel %vm11005_vm0, %v2072_v39, %v2073_v62  ;;  %3510 = vmatprep.subr.bf16.mxu0 %v7593_v42 }
  0xe0   : > { %v2078_v47 = vsel %vm10970_vm14, %v2065_v43, %v2076_v60  ;;  %v9344_v59 = vpop.permute.xlu1 %2142  ;;  %3511 = vmatpush1.bf16.msra.mxu0 %v7592_v56  ;;  %v2141_v2 = vpop.permute.xlu0 %2140  ;;  %v2550_v5 = vld [vmem:[#allocation3 + $0x5c] sm:$0xff]  ;;  %vm10977_vm14 = vcmask 154624  }
  0xe1   : > { %2088 = vst [vmem:[#allocation3 + $0x348] sm:$0x33] %v2078_v47  ;;  %v10976_v16 = vrot.slane %v9344_v59, 4  ;;  %v2148_v21 = vrot.slane %v2141_v2, 4  ;;  %v7511_v29 = vcombine.high %v9204_v7, %v2550_v5  ;;  %v7510_v34 = vcombine.low %v9204_v7, %v2550_v5 }
  0xe2   : > { %2514 = vrot.lane.b32.xlu1 %v9237_v49, %s10983_s18  ;;  %2442 = vrot.lane.b32.xlu0 %v9253_v12, %s10985_s19  ;;  %s11091_s18 = smov 91   ;;  %s11096_s19 = smov 89  }
  0xe3   : > { %v2152_v50 = vsel %vm11005_vm0, %v2148_v21, %v10976_v16  ;;  %3568 = vmatprep.subr.bf16.mxu1 %v7511_v29 }
  0xe4   : > { %v2154_v33 = vsel %vm10968_vm15, %v2141_v2, %v2152_v50  ;;  %v9357_v35 = vpop.permute.xlu1 %986  ;;  %3569 = vmatpush1.bf16.msra.mxu1 %v7510_v34  ;;  %v9359_v43 = vpop.permute.xlu0 %910  ;;  %v2649_v48 = vld [vmem:[#allocation3 + $0x310] sm:$0xff]  ;;  %v2554_v39 = vld [vmem:[#allocation3 + $0x78] sm:$0xff]  ;;  %vm10969_vm15 = vcmask 228352  }
  0xe5   : > { %2164 = vst [vmem:[#allocation3 + $0x364] sm:$0xcc] %v2154_v33  ;;  %v992_v49 = vrot.slane %v9357_v35, 4  ;;  %v916_v42 = vrot.slane %v9359_v43, 4  ;;  %v7600_v12 = vcombine.high %v2649_v48, %v9204_v7  ;;  %v7518_v56 = vcombine.high %v2554_v39, %v9204_v7 }
  0xe6   : > { %v7599_v60 = vcombine.low %v2649_v48, %v9204_v7  ;;  %v7517_v47 = vcombine.low %v2554_v39, %v9204_v7 }
  0xe7   : > { %v997_v2 = vsel %vm11005_vm0, %v991_v15, %v992_v49  ;;  %v921_v5 = vsel %vm11005_vm0, %v915_v6, %v916_v42  ;;  %3512 = vmatprep.subr.bf16.mxu0 %v7600_v12  ;;  %3570 = vmatprep.subr.bf16.mxu1 %v7518_v56 }
  0xe8   : > { %v998_v21 = vsel %vm11002_vm6, %v9100_v11, %v997_v2  ;;  %v922_v29 = vsel %vm10997_vm5, %v9087_v4, %v921_v5  ;;  %v9381_v34 = vpop.permute.xlu1 %2214  ;;  %3513 = vmatpush1.bf16.msra.mxu0 %v7599_v60  ;;  %3571 = vmatpush1.bf16.msra.mxu1 %v7517_v47  ;;  %v2213_v50 = vpop.permute.xlu0 %2212 }
  0xe9   : > { %1007 = vst [vmem:[#allocation3 + $0xcc] sm:$0xcc] %v998_v21  ;;  %931 = vst [vmem:[#allocation3 + $0xb0] sm:$0x33] %v922_v29  ;;  %v10974_v15 = vrot.slane %v9381_v34, 4  ;;  %v2220_v33 = vrot.slane %v2213_v50, 4 }
  0xeb   : > { %v2224_v6 = vsel %vm11005_vm0, %v2220_v33, %v10974_v15  ;;  %v8716_v15 = vmov 0.0  }
  0xec   : > { %v2226_v11 = vsel %vm10969_vm15, %v2213_v50, %v2224_v6  ;;  %v2289_v48 = vpop.permute.xlu1 %2288  ;;  %v9388_v39 = vpop.permute.xlu0 %1058  ;;  %v8383_v4 = vld [vmem:[#allocation3 + $0x34c] ss:$28 sps:$4 sm:$0xff]   ;;  %vm10971_vm15 = vcmask 220160   ;;  %391 = vst [vmem:[#allocation2] sm:$0xff] %v8716_v15  ;;  %392 = vst [vmem:[#allocation2 + $0x8] sm:$0xff] %v8716_v15 }
  0xed   : > { %v8385_v12 = vld [vmem:[#allocation3 + $0x348] ss:$28 sps:$4 sm:$0xff]   ;;  %2236 = vst [vmem:[#allocation3 + $0x39c] sm:$0x33] %v2226_v11  ;;  %v1064_v56 = vrot.slane %v9388_v39, 4  ;;  %3514 = vmatprep.subr.bf16.mxu0 %v8383_v4  ;;  %v2296_v29 = vrot.slane %v2289_v48, 4 }
  0xee   : > { %3515 = vmatpush1.bf16.msra.mxu0 %v8385_v12  ;;  %393 = vst [vmem:[#allocation2 + $0x10] sm:$0xff] %v8716_v15  ;;  %394 = vst [vmem:[#allocation2 + $0x18] sm:$0xff] %v8716_v15 }
  0xef   : > { %v1069_v60 = vsel %vm11005_vm0, %v1063_v26, %v1064_v56  ;;  %395 = vst [vmem:[#allocation2 + $0x20] sm:$0xff] %v8716_v15  ;;  %396 = vst [vmem:[#allocation2 + $0x28] sm:$0xff] %v8716_v15 }
  0xf0   : > { %v1070_v47 = vsel %vm10991_vm7, %v9115_v22, %v1069_v60  ;;  %v9398_v2 = vpop.permute.xlu1 %1134  ;;  %v9400_v5 = vpop.permute.xlu0 %2290  ;;  %v8386_v21 = vld [vmem:[#allocation3 + $0xb4] ss:$28 sps:$4 sm:$0xff]   ;;  %397 = vst [vmem:[#allocation2 + $0x30] sm:$0xff] %v8716_v15  ;;  %398 = vst [vmem:[#allocation2 + $0x38] sm:$0xff] %v8716_v15 }
  0xf1   : > { %1079 = vst [vmem:[#allocation3 + $0x104] sm:$0x33] %v1070_v47  ;;  %v1140_v50 = vrot.slane %v9398_v2, 4  ;;  %v10973_v33 = vrot.slane %v9400_v5, 4  ;;  %v8388_v6 = vld [vmem:[#allocation3 + $0xb0] ss:$28 sps:$4 sm:$0xff]   ;;  %3572 = vmatprep.subr.bf16.mxu1 %v8386_v21  ;;  %3517 = vmatmul.mubr.bf16.vlgmr.msra.gmra.mrb[0].mxu0 %v9011_v31 }
  0xf2   : > { %3573 = vmatpush1.bf16.msra.mxu1 %v8388_v6  ;;  %3557 = vmatprep.mubr.bf16.mxu0 %v9204_v7  ;;  %400 = vst.msk [vmem:[#allocation2 + $0x40] sm:$0xff] %vm10988_vm1, %v8716_v15 }
  0xf3   : > { %v1145_v22 = vsel %vm11005_vm0, %v1139_v38, %v1140_v50  ;;  %v2300_v26 = vsel %vm11005_vm0, %v2296_v29, %v10973_v33 }
  0xf4   : > { %v1146_v11 = vsel %vm11001_vm8, %v9128_v36, %v1145_v22  ;;  %v2302_v4 = vsel %vm10971_vm15, %v2289_v48, %v2300_v26  ;;  %v9417_v12 = vpop.permute.xlu1 %2362  ;;  %v2361_v60 = vpop.permute.xlu0 %2360  ;;  %v2669_v47 = vld [vmem:[#allocation3 + $0x39c] sm:$0xff]  ;;  %vm10996_vm15 = vcmask 146432  }
  0xf5   : > { %1155 = vst [vmem:[#allocation3 + $0x120] sm:$0xcc] %v1146_v11  ;;  %2312 = vst [vmem:[#allocation3 + $0x3b8] sm:$0xcc] %v2302_v4  ;;  %v10975_v38 = vrot.slane %v9417_v12, 4  ;;  %v2368_v21 = vrot.slane %v2361_v60, 4  ;;  %v7614_v29 = vcombine.high %v9204_v7, %v2669_v47  ;;  %v7613_v6 = vcombine.low %v9204_v7, %v2669_v47 }
  0xf7   : > { %v2372_v36 = vsel %vm11005_vm0, %v2368_v21, %v10975_v38  ;;  %3525 = vmatprep.subr.bf16.mxu0 %v7614_v29 }
  0xf8   : > { %v2374_v48 = vsel %vm10977_vm14, %v2361_v60, %v2372_v36  ;;  %v9426_v22 = vpop.permute.xlu1 %2438  ;;  %3526 = vmatpush1.bf16.msra.mxu0 %v7613_v6  ;;  %v2437_v26 = vpop.permute.xlu0 %2436  ;;  %v2574_v11 = vld [vmem:[#allocation3 + $0x104] sm:$0xff]  ;;  %vm10982_vm14 = vcmask 138240  }
  0xf9   : > { %2384 = vst [vmem:[#allocation3 + $0x3f0] sm:$0x33] %v2374_v48  ;;  %v10978_v4 = vrot.slane %v9426_v22, 4  ;;  %v2444_v25 = vrot.slane %v2437_v26, 4  ;;  %v7532_v33 = vcombine.high %v9204_v7, %v2574_v11  ;;  %v7531_v47 = vcombine.low %v9204_v7, %v2574_v11 }
  0xfb   : > { %v2448_v60 = vsel %vm11005_vm0, %v2444_v25, %v10978_v4  ;;  %3574 = vmatprep.subr.bf16.mxu1 %v7532_v33 }
  0xfc   : > { %v2450_v21 = vsel %vm10996_vm15, %v2437_v26, %v2448_v60  ;;  %v9436_v29 = vpop.permute.xlu1 %1282  ;;  %3575 = vmatpush1.bf16.msra.mxu1 %v7531_v47  ;;  %v9438_v6 = vpop.permute.xlu0 %1206  ;;  %v2673_v36 = vld [vmem:[#allocation3 + $0x3b8] sm:$0xff]  ;;  %v2578_v48 = vld [vmem:[#allocation3 + $0x120] sm:$0xff] }
  0xfd   : > { %2460 = vst [vmem:[#allocation3 + $0x40c] sm:$0xcc] %v2450_v21  ;;  %v10981_v11 = vrot.slane %v9436_v29, 4  ;;  %v1212_v38 = vrot.slane %v9438_v6, 4  ;;  %v7620_v15 = vcombine.low %v2673_v36, %v9204_v7  ;;  %v7621_v16 = vcombine.high %v2673_v36, %v9204_v7 }
  0xfe   : > { %v7539_v25 = vcombine.high %v2578_v48, %v9204_v7  ;;  %v7538_v33 = vcombine.low %v2578_v48, %v9204_v7 }
  0xff   : > { %v1293_v26 = vsel %vm11005_vm0, %v1287_v63, %v10981_v11  ;;  %v1217_v47 = vsel %vm11005_vm0, %v1211_v53, %v1212_v38  ;;  %3527 = vmatprep.subr.bf16.mxu0 %v7621_v16 }
 0x100   : > { %v1294_v60 = vsel %vm11000_vm10, %v9151_v58, %v1293_v26  ;;  %v1218_v21 = vsel %vm10990_vm9, %v9140_v46, %v1217_v47  ;;  %3576 = vmatprep.subr.bf16.mxu1 %v7539_v25  ;;  %v9460_v36 = vpop.permute.xlu1 %2510  ;;  %3528 = vmatpush1.bf16.msra.mxu0 %v7620_v15  ;;  %v2509_v48 = vpop.permute.xlu0 %2508 }
 0x101   : > { %1303 = vst [vmem:[#allocation3 + $0x174] sm:$0xcc] %v1294_v60  ;;  %1227 = vst [vmem:[#allocation3 + $0x158] sm:$0x33] %v1218_v21  ;;  %v10979_v63 = vrot.slane %v9460_v36, 4  ;;  %3577 = vmatpush1.bf16.msra.mxu1 %v7538_v33  ;;  %v2516_v4 = vrot.slane %v2509_v48, 4 }
 0x102   : > { %v2697_v60 = vld [vmem:[#allocation3 + $0x460] sm:$0x33] }
 0x103   : > { %v2520_v53 = vsel %vm11005_vm0, %v2516_v4, %v10979_v63  ;;  %v7642_v11 = vcombine.high %v2697_v60, %v2697_v60 }
 0x104   : > { %v2522_v58 = vsel %vm10982_vm14, %v2509_v48, %v2520_v53  ;;  %v9467_v16 = vpop.permute.xlu1 %1430  ;;  %v9469_v46 = vpop.permute.xlu0 %1354  ;;  %v8389_v25 = vld [vmem:[#allocation3 + $0x3f0] ss:$28 sps:$4 sm:$0xff]   ;;  %vm10995_vm14 = vcmask 1041408  }
 0x105   : > { %v8391_v15 = vld [vmem:[#allocation3 + $0x3f4] ss:$28 sps:$4 sm:$0xff]   ;;  %2532 = vst [vmem:[#allocation3 + $0x444] sm:$0x33] %v2522_v58  ;;  %v10980_v26 = vrot.slane %v9467_v16, 4  ;;  %v1360_v47 = vrot.slane %v9469_v46, 4 }
 0x106   : > { %3529 = vmatprep.subr.bf16.mxu0 %v8391_v15 }
 0x107   : > { %v1441_v4 = vsel %vm11005_vm0, %v1435_v0, %v10980_v26  ;;  %v1365_v33 = vsel %vm11005_vm0, %v1359_v13, %v1360_v47  ;;  %3530 = vmatpush1.bf16.msra.mxu0 %v8389_v25 }
 0x108   : > { %v1442_v21 = vsel %vm10999_vm12, %v9178_v23, %v1441_v4  ;;  %v1366_v48 = vsel %vm10989_vm11, %v9164_v9, %v1365_v33  ;;  %v693_v53 = vpop.permute.xlu1 %692  ;;  %v616_v58 = vpop.permute.xlu0 %615  ;;  %v8392_v15 = vld [vmem:[#allocation3 + $0x15c] ss:$28 sps:$4 sm:$0xff]  }
 0x109   : > { %1451 = vst [vmem:[#allocation3 + $0x1c8] sm:$0xcc] %v1442_v21  ;;  %1375 = vst [vmem:[#allocation3 + $0x1ac] sm:$0x33] %v1366_v48  ;;  %v697_v0 = vrot.slane %v693_v53, 4  ;;  %v620_v63 = vrot.slane %v616_v58, 4  ;;  %3578 = vmatprep.subr.bf16.mxu1 %v8392_v15 }
 0x10a   : > { %v8394_v26 = vld [vmem:[#allocation3 + $0x158] ss:$28 sps:$4 sm:$0xff]  }
 0x10b   : > { %v703_v13 = vsel %vm11005_vm0, %v696_v8, %v697_v0  ;;  %v705_v25 = vsel %vm11004_vm2, %v693_v53, %v697_v0  ;;  %v627_v9 = vsel %vm11005_vm0, %v619_v24, %v620_v63  ;;  %v629_v23 = vsel %vm10988_vm1, %v616_v58, %v620_v63  ;;  %3579 = vmatpush1.bf16.msra.mxu1 %v8394_v26 }
 0x10c   : > { %v704_v4 = vsel %vm11004_vm2, %v9259_v17, %v703_v13  ;;  %713 = vst [vmem:[#allocation3 + $0x34] sm:$0xc] %v705_v25  ;;  %v628_v33 = vsel %vm10988_vm1, %v9261_v20, %v627_v9  ;;  %637 = vst [vmem:[#allocation3 + $0x18] sm:$0x3] %v629_v23  ;;  %v765_v21 = vpop.permute.xlu1 %764  ;;  %v9499_v48 = vpop.permute.xlu0 %1502  ;;  %v2693_v8 = vld [vmem:[#allocation3 + $0x444] sm:$0xff]  ;;  %v7641_v53 = vcombine.low %v2697_v60, %v2697_v60  ;;  %vm10994_vm1 = vcmask 556032  }
 0x10d   : > { %712 = vst [vmem:[#allocation3 + $0x2c] sm:$0xcc] %v704_v4  ;;  %636 = vst [vmem:[#allocation3 + $0x10] sm:$0x33] %v628_v33  ;;  %v769_v24 = vrot.slane %v765_v21, 4  ;;  %v1508_v63 = vrot.slane %v9499_v48, 4  ;;  %v7635_v26 = vcombine.high %v9204_v7, %v2693_v8  ;;  %v7634_v17 = vcombine.low %v9204_v7, %v2693_v8 }
 0x10e   : > { %v8670_v20 = vld [vmem:[%s10946_s1] sm:$0x3f]  ;;  %v3464_v4 = vsel %vm10995_vm14, %v7641_v53, 0 }
 0x10f   : > { %v2702_v58 = vcombine.high %v8670_v20, %v8670_v20  ;;  %v775_v15 = vsel %vm11005_vm0, %v768_v1, %v769_v24  ;;  %v777_v60 = vsel %vm10987_vm3, %v765_v21, %v769_v24  ;;  %v1513_v0 = vsel %vm11005_vm0, %v1507_v51, %v1508_v63  ;;  %3531 = vmatprep.subr.bf16.mxu0 %v7635_v26 }
 0x110   : > { %v776_v13 = vsel %vm10987_vm3, %v9296_v55, %v775_v15  ;;  %785 = vst [vmem:[#allocation3 + $0x6c] sm:$0x3] %v777_v60  ;;  %v1514_v25 = vsel %vm10998_vm13, %v9190_v41, %v1513_v0  ;;  %v841_v9 = vpop.permute.xlu1 %840  ;;  %3532 = vmatpush1.bf16.msra.mxu0 %v7634_v17  ;;  %v9520_v23 = vpop.permute.xlu0 %1624  ;;  %v2598_v1 = vld [vmem:[#allocation3 + $0x1ac] sm:$0xff]  ;;  %vm11030_vm3 = vcmask 1039360  }
 0x111   : > { %v2602_v33 = vld [vmem:[#allocation3 + $0x1c8] sm:$0xff]  ;;  %784 = vst [vmem:[#allocation3 + $0x64] sm:$0x33] %v776_v13  ;;  %1523 = vst [vmem:[#allocation3 + $0x200] sm:$0x33] %v1514_v25  ;;  %v845_v21 = vrot.slane %v841_v9, 4  ;;  %7648 = vmatprep.subr.msk.bf16.mxu0 %vm10995_vm14, %v7642_v11  ;;  %v7553_v55 = vcombine.high %v9204_v7, %v2598_v1  ;;  %v7552_v8 = vcombine.low %v9204_v7, %v2598_v1 }
 0x112   : > { %v1630_v51 = vrot.slane %v9520_v23, 4  ;;  %v9528_v41 = vrot.slane %v2702_v58, %v9006_v30  ;;  %v7560_v11 = vcombine.high %v2602_v33, %v9204_v7 }
 0x113   : > { %v851_v24 = vsel %vm11005_vm0, %v844_v27, %v845_v21  ;;  %v853_v53 = vsel %vm11003_vm4, %v841_v9, %v845_v21  ;;  %3580 = vmatprep.subr.bf16.mxu1 %v7553_v55 }
 0x114   : > { %v1635_v26 = vsel %vm11005_vm0, %v1629_v3, %v1630_v51  ;;  %v852_v17 = vsel %vm11003_vm4, %v9310_v10, %v851_v24  ;;  %861 = vst [vmem:[#allocation3 + $0x88] sm:$0xc] %v853_v53  ;;  %v913_v58 = vpop.permute.xlu1 %912  ;;  %3534 = vmatpush1.bf16.msra.mxu0 %v3464_v4  ;;  %3581 = vmatpush1.bf16.msra.mxu1 %v7552_v8  ;;  %v9544_v27 = vpop.permute.xlu0 %1700  ;;  %v8399_v60 = vld [vmem:[#allocation3 + $0x14] ss:$28 sps:$4 sm:$0xff]  }
 0x115   : > { %v1636_v20 = vsel %vm11030_vm3, %v9201_v61, %v1635_v26  ;;  %860 = vst [vmem:[#allocation3 + $0x80] sm:$0xcc] %v852_v17  ;;  %v917_v15 = vrot.slane %v913_v58, 4  ;;  %v1706_v3 = vrot.slane %v9544_v27, 4  ;;  %3582 = vmatprep.subr.bf16.mxu1 %v7560_v11  ;;  %v8397_v0 = vld [vmem:[#allocation3 + $0x10] ss:$28 sps:$4 sm:$0xff]   ;;  %v7559_v10 = vcombine.low %v2602_v33, %v9204_v7  ;;  %3648 = vmatprep.subr.bf16.mxu0 %v8399_v60 }
 0x116   : > { %1645 = vst [vmem:[#allocation3 + $0x254] sm:$0x33] %v1636_v20  ;;  %vm11031_vm3 = vcmask 973824  }
 0x117   : > { %v923_v61 = vsel %vm11005_vm0, %v916_v42, %v917_v15  ;;  %v925_v13 = vsel %vm10997_vm5, %v913_v58, %v917_v15  ;;  %v1711_v25 = vsel %vm11005_vm0, %v1705_v54, %v1706_v3  ;;  %7649 = vmatmul.mubr.msk.bf16.vlgmr.msra.gmra.mrb[0].mxu0 %vm10994_vm1, %v9528_v41 }
 0x118   : > { %v924_v9 = vsel %vm10997_vm5, %v9359_v43, %v923_v61  ;;  %933 = vst [vmem:[#allocation3 + $0xc0] sm:$0x3] %v925_v13  ;;  %v1712_v1 = vsel %vm11031_vm3, %v9217_v18, %v1711_v25  ;;  %v9563_v42 = vpop.permute.xlu1 %1772  ;;  %3583 = vmatpush1.bf16.msra.mxu1 %v7559_v10  ;;  %3649 = vmatpush1.bf16.msra.mxu0 %v8397_v0  ;;  %v989_v4 = vpop.permute.xlu0 %988  ;;  %v8402_v33 = vld [vmem:[#allocation3 + $0x204] ss:$28 sps:$4 sm:$0xff]   ;;  %vm11032_vm3 = vcmask 965632  }
 0x119   : > { %v2551_v21 = vld [vmem:[#allocation3 + $0x64] sm:$0xff]  ;;  %932 = vst [vmem:[#allocation3 + $0xb8] sm:$0x33] %v924_v9  ;;  %1721 = vst [vmem:[#allocation3 + $0x270] sm:$0xcc] %v1712_v1  ;;  %v1778_v54 = vrot.slane %v9563_v42, 4  ;;  %3680 = vmatprep.mubr.bf16.mxu0 %v9019_v32  ;;  %3584 = vmatprep.subr.bf16.mxu1 %v8402_v33 }
 0x11a   : > { %v993_v55 = vrot.slane %v989_v4, 4  ;;  %v7513_v8 = vcombine.high %v9204_v7, %v2551_v21  ;;  %v7512_v43 = vcombine.low %v9204_v7, %v2551_v21  ;;  %v8404_v18 = vld [vmem:[#allocation3 + $0x200] ss:$28 sps:$4 sm:$0xff]  }
 0x11b   : > { %v1783_v24 = vsel %vm11005_vm0, %v1777_v45, %v1778_v54 }
 0x11c   : > { %v999_v53 = vsel %vm11005_vm0, %v992_v49, %v993_v55  ;;  %v1001_v26 = vsel %vm11002_vm6, %v989_v4, %v993_v55  ;;  %3650 = vmatprep.subr.bf16.mxu0 %v7513_v8  ;;  %v1784_v11 = vsel %vm11032_vm3, %v9230_v37, %v1783_v24  ;;  %v1061_v20 = vpop.permute.xlu1 %1060  ;;  %3585 = vmatpush1.bf16.msra.mxu1 %v8404_v18  ;;  %v9582_v58 = vpop.permute.xlu0 %1848  ;;  %v2555_v15 = vld [vmem:[#allocation3 + $0x80] sm:$0xff]  ;;  %vm11033_vm3 = vcmask 957440  }
 0x11d   : > { %v1000_v17 = vsel %vm11002_vm6, %v9357_v35, %v999_v53  ;;  %1009 = vst [vmem:[#allocation3 + $0xdc] sm:$0xc] %v1001_v26  ;;  %3651 = vmatpush1.bf16.msra.mxu0 %v7512_v43  ;;  %v2622_v45 = vld [vmem:[#allocation3 + $0x254] sm:$0xff]  ;;  %1793 = vst [vmem:[#allocation3 + $0x2a8] sm:$0x33] %v1784_v11  ;;  %v1065_v49 = vrot.slane %v1061_v20, 4  ;;  %v7519_v37 = vcombine.low %v2555_v15, %v9204_v7 }
 0x11e   : > { %1008 = vst [vmem:[#allocation3 + $0xd4] sm:$0xcc] %v1000_v17  ;;  %v1854_v60 = vrot.slane %v9582_v58, 4  ;;  %v7574_v0 = vcombine.high %v9204_v7, %v2622_v45  ;;  %v7520_v10 = vcombine.high %v2555_v15, %v9204_v7  ;;  %v7573_v35 = vcombine.low %v9204_v7, %v2622_v45 }
 0x11f   : > { %v1071_v61 = vsel %vm11005_vm0, %v1064_v56, %v1065_v49  ;;  %v1073_v13 = vsel %vm10991_vm7, %v1061_v20, %v1065_v49 }
 0x120   : > { %v1859_v25 = vsel %vm11005_vm0, %v1853_v19, %v1854_v60  ;;  %3586 = vmatprep.subr.bf16.mxu1 %v7574_v0  ;;  %v1072_v9 = vsel %vm10991_vm7, %v9388_v39, %v1071_v61  ;;  %1081 = vst [vmem:[#allocation3 + $0x114] sm:$0x3] %v1073_v13  ;;  %3652 = vmatprep.subr.bf16.mxu0 %v7520_v10  ;;  %v1137_v4 = vpop.permute.xlu1 %1136  ;;  %v9602_v56 = vpop.permute.xlu0 %1920  ;;  %v2626_v33 = vld [vmem:[#allocation3 + $0x270] sm:$0xff] }
 0x121   : > { %v1860_v1 = vsel %vm11033_vm3, %v9243_v57, %v1859_v25  ;;  %3587 = vmatpush1.bf16.msra.mxu1 %v7573_v35  ;;  %1080 = vst [vmem:[#allocation3 + $0x10c] sm:$0x33] %v1072_v9  ;;  %v1141_v21 = vrot.slane %v1137_v4, 4  ;;  %3653 = vmatpush1.bf16.msra.mxu0 %v7519_v37  ;;  %v1926_v19 = vrot.slane %v9602_v56, 4  ;;  %v7581_v55 = vcombine.high %v2626_v33, %v9204_v7 }
 0x122   : > { %1869 = vst [vmem:[#allocation3 + $0x2c4] sm:$0xcc] %v1860_v1  ;;  %v7580_v39 = vcombine.low %v2626_v33, %v9204_v7  ;;  %vm11034_vm3 = vcmask 318464  }
 0x123   : > { %v1147_v57 = vsel %vm11005_vm0, %v1140_v50, %v1141_v21  ;;  %v1149_v8 = vsel %vm11001_vm8, %v1137_v4, %v1141_v21  ;;  %v1931_v43 = vsel %vm11005_vm0, %v1925_v52, %v1926_v19  ;;  %3588 = vmatprep.subr.bf16.mxu1 %v7581_v55 }
 0x124   : > { %v1148_v18 = vsel %vm11001_vm8, %v9398_v2, %v1147_v57  ;;  %1157 = vst [vmem:[#allocation3 + $0x130] sm:$0xc] %v1149_v8  ;;  %v1932_v24 = vsel %vm11034_vm3, %v9285_v44, %v1931_v43  ;;  %v1209_v53 = vpop.permute.xlu1 %1208  ;;  %v9620_v26 = vpop.permute.xlu0 %1996  ;;  %vm11035_vm3 = vcmask 310272   ;;  %v9657_v57 = vld [vmem:[#allocation3 + $0x38] sm:$0xff] }
 0x125   : > { %3589 = vmatpush1.bf16.msra.mxu1 %v7580_v39  ;;  %v8405_v50 = vld [vmem:[#allocation3 + $0xb8] ss:$28 sps:$4 sm:$0xff]   ;;  %1156 = vst [vmem:[#allocation3 + $0x128] sm:$0xcc] %v1148_v18  ;;  %1941 = vst [vmem:[#allocation3 + $0x2fc] sm:$0x33] %v1932_v24 }
 0x126   : > { %v8407_v11 = vld [vmem:[#allocation3 + $0xbc] ss:$28 sps:$4 sm:$0xff]   ;;  %v1213_v17 = vrot.slane %v1209_v53, 4  ;;  %v2002_v20 = vrot.slane %v9620_v26, 4 }
 0x127   : > { %3654 = vmatprep.subr.bf16.mxu0 %v8407_v11 }
 0x128   : > { %v1219_v52 = vsel %vm11005_vm0, %v1212_v38, %v1213_v17  ;;  %v1221_v2 = vsel %vm10990_vm9, %v1209_v53, %v1213_v17  ;;  %v2007_v44 = vsel %vm11005_vm0, %v2001_v28, %v2002_v20  ;;  %3655 = vmatpush1.bf16.msra.mxu0 %v8405_v50  ;;  %v9636_v49 = vpop.permute.xlu1 %2068  ;;  %v1285_v0 = vpop.permute.xlu0 %1284  ;;  %v2575_v37 = vld [vmem:[#allocation3 + $0x10c] sm:$0xff]  ;;  %v11038_v53 = vrot.slane %v9344_v59, 4 }
 0x129   : > { %v1220_v45 = vsel %vm10990_vm9, %v9438_v6, %v1219_v52  ;;  %1229 = vst [vmem:[#allocation3 + $0x168] sm:$0x3] %v1221_v2  ;;  %v2008_v15 = vsel %vm11035_vm3, %v9312_v14, %v2007_v44  ;;  %v8408_v38 = vld [vmem:[#allocation3 + $0x2ac] ss:$28 sps:$4 sm:$0xff]   ;;  %v2074_v10 = vrot.slane %v9636_v49, 4  ;;  %v1289_v35 = vrot.slane %v1285_v0, 4 }
 0x12a   : > { %1228 = vst [vmem:[#allocation3 + $0x160] sm:$0x33] %v1220_v45  ;;  %2017 = vst [vmem:[#allocation3 + $0x318] sm:$0xcc] %v2008_v15  ;;  %v7534_v28 = vcombine.high %v9204_v7, %v2575_v37  ;;  %v8410_v61 = vld [vmem:[#allocation3 + $0x2a8] ss:$28 sps:$4 sm:$0xff]   ;;  %v7533_v13 = vcombine.low %v9204_v7, %v2575_v37  ;;  %3590 = vmatprep.subr.bf16.mxu1 %v8408_v38 }
 0x12b   : > { %v2079_v14 = vsel %vm11005_vm0, %v2073_v62, %v2074_v10  ;;  %v11036_v6 = vrot.slane %v9436_v29, 4  ;;  %v1297_v9 = vsel %vm11000_vm10, %v1285_v0, %v1289_v35  ;;  %3591 = vmatpush1.bf16.msra.mxu1 %v8410_v61  ;;  %vm11037_vm3 = vcmask 302080  }
 0x12c   : > { %3656 = vmatprep.subr.bf16.mxu0 %v7534_v28  ;;  %v2080_v1 = vsel %vm11037_vm3, %v9331_v40, %v2079_v14  ;;  %1305 = vst [vmem:[#allocation3 + $0x184] sm:$0xc] %v1297_v9  ;;  %v1357_v4 = vpop.permute.xlu1 %1356  ;;  %v9654_v33 = vpop.permute.xlu0 %2144  ;;  %v2646_v62 = vld [vmem:[#allocation3 + $0x2fc] sm:$0xff]  ;;  %v2579_v21 = vld [vmem:[#allocation3 + $0x128] sm:$0xff]  ;;  %vm11039_vm3 = vcmask 236544   ;;  %v11040_v0 = vrot.slane %v9467_v16, 4 }
 0x12d   : > { %v1295_v25 = vsel %vm11005_vm0, %v11036_v6, %v1289_v35  ;;  %3657 = vmatpush1.bf16.msra.mxu0 %v7533_v13  ;;  %2089 = vst [vmem:[#allocation3 + $0x350] sm:$0x33] %v2080_v1  ;;  %v1361_v55 = vrot.slane %v1357_v4, 4  ;;  %v2150_v39 = vrot.slane %v9654_v33, 4  ;;  %v7595_v8 = vcombine.high %v9657_v57, %v2646_v62 }
 0x12e   : > { %v1296_v7 = vsel %vm11000_vm10, %v9436_v29, %v1295_v25  ;;  %v7540_v40 = vcombine.low %v2579_v21, %v9657_v57  ;;  %v7541_v29 = vcombine.high %v2579_v21, %v9657_v57  ;;  %v7594_v43 = vcombine.low %v9657_v57, %v2646_v62 }
 0x12f   : > { %1304 = vst [vmem:[#allocation3 + $0x17c] sm:$0xcc] %v1296_v7  ;;  %v1367_v18 = vsel %vm11005_vm0, %v1360_v47, %v1361_v55  ;;  %v1369_v24 = vsel %vm10989_vm11, %v1357_v4, %v1361_v55  ;;  %v2155_v50 = vsel %vm11005_vm0, %v11038_v53, %v2150_v39  ;;  %3592 = vmatprep.subr.bf16.mxu1 %v7595_v8  ;;  %v11041_v37 = vrot.slane %v9381_v34, 4 }
 0x130   : > { %v1368_v11 = vsel %vm10989_vm11, %v9469_v46, %v1367_v18  ;;  %1377 = vst [vmem:[#allocation3 + $0x1bc] sm:$0x3] %v1369_v24  ;;  %v2156_v17 = vsel %vm11039_vm3, %v9344_v59, %v2155_v50  ;;  %3658 = vmatprep.subr.bf16.mxu0 %v7541_v29  ;;  %v1433_v52 = vpop.permute.xlu1 %1432  ;;  %3593 = vmatpush1.bf16.msra.mxu1 %v7594_v43  ;;  %v9676_v47 = vpop.permute.xlu0 %2216  ;;  %vm11042_vm3 = vcmask 228352   ;;  %v11046_v50 = vrot.slane %v9417_v12, 4 }
 0x131   : > { %v2650_v2 = vld [vmem:[#allocation3 + $0x318] sm:$0xff]  ;;  %1376 = vst [vmem:[#allocation3 + $0x1b4] sm:$0x33] %v1368_v11  ;;  %2165 = vst [vmem:[#allocation3 + $0x36c] sm:$0xcc] %v2156_v17  ;;  %v1437_v44 = vrot.slane %v1433_v52, 4  ;;  %3659 = vmatpush1.bf16.msra.mxu0 %v7540_v40 }
 0x132   : > { %v2222_v45 = vrot.slane %v9676_v47, 4  ;;  %v7602_v15 = vcombine.high %v2650_v2, %v9657_v57  ;;  %v7601_v46 = vcombine.low %v2650_v2, %v9657_v57  ;;  %vm11050_vm11 = vcmask 138240  }
 0x133   : > { %v1443_v59 = vsel %vm11005_vm0, %v11040_v0, %v1437_v44  ;;  %v1445_v38 = vsel %vm10999_vm12, %v1433_v52, %v1437_v44 }
 0x134   : > { %v2227_v35 = vsel %vm11005_vm0, %v11041_v37, %v2222_v45  ;;  %3594 = vmatprep.subr.bf16.mxu1 %v7602_v15  ;;  %v1444_v28 = vsel %vm10999_vm12, %v9467_v16, %v1443_v59  ;;  %1453 = vst [vmem:[#allocation3 + $0x1d8] sm:$0xc] %v1445_v38  ;;  %v1505_v13 = vpop.permute.xlu1 %1504  ;;  %v9694_v14 = vpop.permute.xlu0 %2292 }
 0x135   : > { %v2228_v61 = vsel %vm11042_vm3, %v9381_v34, %v2227_v35  ;;  %3595 = vmatpush1.bf16.msra.mxu1 %v7601_v46  ;;  %1452 = vst [vmem:[#allocation3 + $0x1d0] sm:$0xcc] %v1444_v28  ;;  %v1509_v9 = vrot.slane %v1505_v13, 4  ;;  %v2298_v1 = vrot.slane %v9694_v14, 4  ;;  %v11043_v34 = vrot.slane %v9400_v5, 4 }
 0x136   : > { %v8411_v6 = vld [vmem:[#allocation3 + $0x160] ss:$28 sps:$4 sm:$0xff]   ;;  %2237 = vst [vmem:[#allocation3 + $0x3a4] sm:$0x33] %v2228_v61  ;;  %vm11044_vm3 = vcmask 220160   ;;  %v11048_v35 = vrot.slane %v9460_v36, 4 }
 0x137   : > { %v8413_v25 = vld [vmem:[#allocation3 + $0x164] ss:$28 sps:$4 sm:$0xff]   ;;  %v1515_v16 = vsel %vm11005_vm0, %v1508_v63, %v1509_v9  ;;  %v1517_v7 = vsel %vm10998_vm13, %v1505_v13, %v1509_v9  ;;  %v2303_v4 = vsel %vm11005_vm0, %v11043_v34, %v2298_v1 }
 0x138   : > { %3660 = vmatprep.subr.bf16.mxu0 %v8413_v25  ;;  %v1516_v62 = vsel %vm10998_vm13, %v9499_v48, %v1515_v16  ;;  %1525 = vst [vmem:[#allocation3 + $0x210] sm:$0x3] %v1517_v7  ;;  %v2304_v21 = vsel %vm11044_vm3, %v9400_v5, %v2303_v4  ;;  %v9710_v55 = vpop.permute.xlu1 %2440  ;;  %v9712_v8 = vpop.permute.xlu0 %2364  ;;  %v8414_v63 = vld [vmem:[#allocation3 + $0x354] ss:$28 sps:$4 sm:$0xff]   ;;  %v11045_v5 = vrot.slane %v9426_v22, 4  ;;  %vm11047_vm3 = vcmask 154624  }
 0x139   : > { %3661 = vmatpush1.bf16.msra.mxu0 %v8411_v6  ;;  %v2599_v40 = vld [vmem:[#allocation3 + $0x1b4] sm:$0xff]  ;;  %1524 = vst [vmem:[#allocation3 + $0x208] sm:$0x33] %v1516_v62  ;;  %2313 = vst [vmem:[#allocation3 + $0x3c0] sm:$0xcc] %v2304_v21  ;;  %v2446_v29 = vrot.slane %v9710_v55, 4  ;;  %3596 = vmatprep.subr.bf16.mxu1 %v8414_v63 }
 0x13a   : > { %v2370_v43 = vrot.slane %v9712_v8, 4  ;;  %v7555_v18 = vcombine.high %v9657_v57, %v2599_v40  ;;  %v8416_v24 = vld [vmem:[#allocation3 + $0x350] ss:$28 sps:$4 sm:$0xff]   ;;  %v7554_v48 = vcombine.low %v9657_v57, %v2599_v40 }
 0x13b   : > { %v2451_v53 = vsel %vm11005_vm0, %v11045_v5, %v2446_v29  ;;  %3597 = vmatpush1.bf16.msra.mxu1 %v8416_v24 }
 0x13c   : > { %v2375_v11 = vsel %vm11005_vm0, %v11046_v50, %v2370_v43  ;;  %3662 = vmatprep.subr.bf16.mxu0 %v7555_v18  ;;  %v2452_v17 = vsel %vm10996_vm15, %v9426_v22, %v2451_v53  ;;  %v9732_v2 = vpop.permute.xlu1 %2512  ;;  %v1627_v44 = vpop.permute.xlu0 %1626  ;;  %v2603_v46 = vld [vmem:[#allocation3 + $0x1d0] sm:$0xff]  ;;  %v2698_v53 = vld [vmem:[#allocation3 + $0x468] sm:$0x33] }
 0x13d   : > { %v2376_v52 = vsel %vm11047_vm3, %v9417_v12, %v2375_v11  ;;  %3663 = vmatpush1.bf16.msra.mxu0 %v7554_v48  ;;  %v2670_v15 = vld [vmem:[#allocation3 + $0x3a4] sm:$0xff]  ;;  %2461 = vst [vmem:[#allocation3 + $0x414] sm:$0xcc] %v2452_v17  ;;  %v2518_v0 = vrot.slane %v9732_v2, 4  ;;  %v1631_v59 = vrot.slane %v1627_v44, 4  ;;  %v7561_v37 = vcombine.low %v2603_v46, %v9657_v57 }
 0x13e   : > { %2385 = vst [vmem:[#allocation3 + $0x3f8] sm:$0x33] %v2376_v52  ;;  %v7616_v38 = vcombine.high %v9657_v57, %v2670_v15  ;;  %v7562_v22 = vcombine.high %v2603_v46, %v9657_v57  ;;  %3599 = vmatmul.mubr.bf16.vlgmr.msra.gmra.mrb[0].mxu1 %v9011_v31  ;;  %v7615_v12 = vcombine.low %v9657_v57, %v2670_v15  ;;  %vm11049_vm3 = vcmask 1039360  }
 0x13f   : > { %v2523_v28 = vsel %vm11005_vm0, %v11048_v35, %v2518_v0  ;;  %v1637_v61 = vsel %vm11005_vm0, %v1630_v51, %v1631_v59  ;;  %v1639_v13 = vsel %vm11049_vm3, %v1627_v44, %v1631_v59  ;;  %3639 = vmatprep.mubr.bf16.mxu1 %v9657_v57  ;;  %vm11051_vm9 = vmmov %vm11049_vm3 }
 0x140   : > { %3607 = vmatprep.subr.bf16.mxu1 %v7616_v38  ;;  %v2524_v6 = vsel %vm11050_vm11, %v9460_v36, %v2523_v28  ;;  %v1638_v25 = vsel %vm11051_vm9, %v9520_v23, %v1637_v61  ;;  %1647 = vst [vmem:[#allocation3 + $0x264] sm:$0x3] %v1639_v13  ;;  %3664 = vmatprep.subr.bf16.mxu0 %v7562_v22  ;;  %v1775_v9 = vpop.permute.xlu1 %1774  ;;  %v1703_v16 = vpop.permute.xlu0 %1702  ;;  %v2674_v7 = vld [vmem:[#allocation3 + $0x3c0] sm:$0xff]  ;;  %v8420_v21 = vld [vmem:[#allocation3 + $0x20c] ss:$28 sps:$4 sm:$0xff]   ;;  %vm11052_vm9 = vcmask 965632  }
 0x141   : > { %3608 = vmatpush1.bf16.msra.mxu1 %v7615_v12  ;;  %2533 = vst [vmem:[#allocation3 + $0x44c] sm:$0x33] %v2524_v6  ;;  %1646 = vst [vmem:[#allocation3 + $0x25c] sm:$0x33] %v1638_v25  ;;  %v1779_v51 = vrot.slane %v1775_v9, 4  ;;  %3665 = vmatpush1.bf16.msra.mxu0 %v7561_v37  ;;  %v1707_v34 = vrot.slane %v1703_v16, 4  ;;  %v7622_v4 = vcombine.low %v2674_v7, %v9657_v57 }
 0x142   : > { %v7623_v62 = vcombine.high %v2674_v7, %v9657_v57  ;;  %vm11053_vm11 = vcmask 973824   ;;  %v8418_v18 = vld [vmem:[#allocation3 + $0x208] ss:$28 sps:$4 sm:$0xff]   ;;  %vm11054_vm3 = vmmov %vm11052_vm9  ;;  %3666 = vmatprep.subr.bf16.mxu0 %v8420_v21  ;;  %v7644_v22 = vcombine.high %v2698_v53, %v2698_v53  ;;  %v7643_v12 = vcombine.low %v2698_v53, %v2698_v53 }
 0x143   : > { %v1785_v36 = vsel %vm11005_vm0, %v1778_v54, %v1779_v51  ;;  %v1787_v23 = vsel %vm11052_vm9, %v1775_v9, %v1779_v51  ;;  %v1713_v63 = vsel %vm11005_vm0, %v1706_v3, %v1707_v34  ;;  %v1715_v40 = vsel %vm11053_vm11, %v1703_v16, %v1707_v34  ;;  %vm11055_vm7 = vmmov %vm11053_vm11 }
 0x144   : > { %3609 = vmatprep.subr.bf16.mxu1 %v7623_v62  ;;  %v1786_v24 = vsel %vm11054_vm3, %v9563_v42, %v1785_v36  ;;  %1795 = vst [vmem:[#allocation3 + $0x2b8] sm:$0x3] %v1787_v23  ;;  %v1714_v48 = vsel %vm11055_vm7, %v9544_v27, %v1713_v63  ;;  %1723 = vst [vmem:[#allocation3 + $0x280] sm:$0xc] %v1715_v40  ;;  %v1923_v54 = vpop.permute.xlu1 %1922  ;;  %v1851_v5 = vpop.permute.xlu0 %1850  ;;  %vm11056_vm9 = vcmask 318464   ;;  %vm11057_vm7 = vcmask 957440  }
 0x145   : > { %3610 = vmatpush1.bf16.msra.mxu1 %v7622_v4  ;;  %1794 = vst [vmem:[#allocation3 + $0x2b0] sm:$0x33] %v1786_v24  ;;  %1722 = vst [vmem:[#allocation3 + $0x278] sm:$0xcc] %v1714_v48  ;;  %v1927_v3 = vrot.slane %v1923_v54, 4  ;;  %3667 = vmatpush1.bf16.msra.mxu0 %v8418_v18  ;;  %v1855_v50 = vrot.slane %v1851_v5, 4 }
 0x146   : > { %v8423_v11 = vld [vmem:[#allocation3 + $0x3fc] ss:$28 sps:$4 sm:$0xff]   ;;  %vm11058_vm11 = vmmov %vm11056_vm9  ;;  %v3470_v4 = vsel %vm10995_vm14, %v7643_v12, 0 }
 0x147   : > { %v8421_v17 = vld [vmem:[#allocation3 + $0x3f8] ss:$28 sps:$4 sm:$0xff]   ;;  %v1933_v42 = vsel %vm11005_vm0, %v1926_v19, %v1927_v3  ;;  %v1935_v52 = vsel %vm11056_vm9, %v1923_v54, %v1927_v3  ;;  %v1861_v27 = vsel %vm11005_vm0, %v1854_v60, %v1855_v50  ;;  %v1863_v44 = vsel %vm11057_vm7, %v1851_v5, %v1855_v50  ;;  %3611 = vmatprep.subr.bf16.mxu1 %v8423_v11  ;;  %vm11059_vm3 = vmmov %vm11057_vm7  ;;  %v8431_v50 = vld [vmem:[#allocation3 + $0x210] ss:$28 sps:$4 sm:$0xff]  }
 0x148   : > { %v1934_v15 = vsel %vm11058_vm11, %v9602_v56, %v1933_v42  ;;  %1943 = vst [vmem:[#allocation3 + $0x30c] sm:$0x3] %v1935_v52  ;;  %v1862_v46 = vsel %vm11059_vm3, %v9582_v58, %v1861_v27  ;;  %1871 = vst [vmem:[#allocation3 + $0x2d4] sm:$0xc] %v1863_v44  ;;  %v2071_v59 = vpop.permute.xlu1 %2070  ;;  %v1999_v19 = vpop.permute.xlu0 %1998  ;;  %v2694_v38 = vld [vmem:[#allocation3 + $0x44c] sm:$0xff]  ;;  %v2623_v37 = vld [vmem:[#allocation3 + $0x25c] sm:$0xff] }
 0x149   : > { %3612 = vmatpush1.bf16.msra.mxu1 %v8421_v17  ;;  %1942 = vst [vmem:[#allocation3 + $0x304] sm:$0x33] %v1934_v15  ;;  %1870 = vst [vmem:[#allocation3 + $0x2cc] sm:$0xcc] %v1862_v46  ;;  %v2075_v60 = vrot.slane %v2071_v59, 4  ;;  %v2003_v35 = vrot.slane %v1999_v19, 4  ;;  %v7637_v28 = vcombine.high %v9657_v57, %v2694_v38  ;;  %v7576_v56 = vcombine.high %v9657_v57, %v2623_v37 }
 0x14a   : > { %v7636_v61 = vcombine.low %v9657_v57, %v2694_v38  ;;  %v7575_v58 = vcombine.low %v9657_v57, %v2623_v37  ;;  %vm11060_vm9 = vcmask 302080   ;;  %vm11061_vm7 = vcmask 310272   ;;  %v8426_v40 = vld [vmem:[#allocation3 + $0x1d8] ss:$28 sps:$4 sm:$0xff]  }
 0x14b   : > { %v2081_v13 = vsel %vm11005_vm0, %v2074_v10, %v2075_v60  ;;  %v2083_v6 = vsel %vm11060_vm9, %v2071_v59, %v2075_v60  ;;  %v2009_v25 = vsel %vm11005_vm0, %v2002_v20, %v2003_v35  ;;  %v2011_v9 = vsel %vm11061_vm7, %v1999_v19, %v2003_v35  ;;  %3613 = vmatprep.subr.bf16.mxu1 %v7637_v28  ;;  %vm11062_vm11 = vmmov %vm11060_vm9  ;;  %v8430_v3 = vld [vmem:[#allocation3 + $0x18] ss:$28 sps:$4 sm:$0xff]  }
 0x14c   : > { %v2082_v16 = vsel %vm11062_vm11, %v9636_v49, %v2081_v13  ;;  %2091 = vst [vmem:[#allocation3 + $0x360] sm:$0x3] %v2083_v6  ;;  %vm11063_vm3 = vmmov %vm11061_vm7  ;;  %3668 = vmatprep.subr.bf16.mxu0 %v7576_v56  ;;  %v2219_v51 = vpop.permute.xlu1 %2218  ;;  %v2147_v10 = vpop.permute.xlu0 %2146  ;;  %v2627_v34 = vld [vmem:[#allocation3 + $0x278] sm:$0xff]  ;;  %vm11064_vm9 = vcmask 228352   ;;  %vm11065_vm7 = vcmask 236544  }
 0x14d   : > { %v2010_v7 = vsel %vm11063_vm3, %v9620_v26, %v2009_v25  ;;  %2019 = vst [vmem:[#allocation3 + $0x328] sm:$0xc] %v2011_v9  ;;  %3614 = vmatpush1.bf16.msra.mxu1 %v7636_v61  ;;  %2090 = vst [vmem:[#allocation3 + $0x358] sm:$0x33] %v2082_v16  ;;  %v2223_v20 = vrot.slane %v2219_v51, 4  ;;  %3669 = vmatpush1.bf16.msra.mxu0 %v7575_v58  ;;  %v2151_v62 = vrot.slane %v2147_v10, 4 }
 0x14e   : > { %2018 = vst [vmem:[#allocation3 + $0x320] sm:$0xcc] %v2010_v7  ;;  %7650 = vmatprep.subr.msk.bf16.mxu1 %vm10995_vm14, %v7644_v22  ;;  %v7582_v49 = vcombine.low %v2627_v34, %v9657_v57  ;;  %v7583_v21 = vcombine.high %v2627_v34, %v9657_v57  ;;  %vm11066_vm11 = vmmov %vm11064_vm9  ;;  %v8441_v9 = vld [vmem:[#allocation3 + $0xf8] ss:$28 sps:$4 sm:$0xff]  }
 0x14f   : > { %v2229_v26 = vsel %vm11005_vm0, %v2222_v45, %v2223_v20  ;;  %v2231_v36 = vsel %vm11064_vm9, %v2219_v51, %v2223_v20  ;;  %v2157_v23 = vsel %vm11005_vm0, %v2150_v39, %v2151_v62  ;;  %v2159_v63 = vsel %vm11065_vm7, %v2147_v10, %v2151_v62  ;;  %vm11067_vm3 = vmmov %vm11065_vm7  ;;  %v8440_v61 = vld [vmem:[#allocation3 + $0x2b8] ss:$28 sps:$4 sm:$0xff]   ;;  %v8442_v25 = vld [vmem:[#allocation3 + $0x2f0] ss:$28 sps:$4 sm:$0xff]  }
 0x150   : > { %3670 = vmatprep.subr.bf16.mxu0 %v7583_v21  ;;  %v2230_v18 = vsel %vm11066_vm11, %v9676_v47, %v2229_v26  ;;  %2239 = vst [vmem:[#allocation3 + $0x3b4] sm:$0x3] %v2231_v36  ;;  %v2158_v24 = vsel %vm11067_vm3, %v9654_v33, %v2157_v23  ;;  %2167 = vst [vmem:[#allocation3 + $0x37c] sm:$0xc] %v2159_v63  ;;  %v2367_v48 = vpop.permute.xlu1 %2366  ;;  %v2295_v45 = vpop.permute.xlu0 %2294  ;;  %v8429_v54 = vld [vmem:[#allocation3 + $0x2b4] ss:$28 sps:$4 sm:$0xff]  }
 0x151   : > { %3616 = vmatpush1.bf16.msra.mxu1 %v3470_v4  ;;  %2238 = vst [vmem:[#allocation3 + $0x3ac] sm:$0x33] %v2230_v18  ;;  %2166 = vst [vmem:[#allocation3 + $0x374] sm:$0xcc] %v2158_v24  ;;  %v2371_v5 = vrot.slane %v2367_v48, 4  ;;  %3671 = vmatpush1.bf16.msra.mxu0 %v7582_v49  ;;  %v2299_v39 = vrot.slane %v2295_v45, 4 }
 0x152   : > { %8149 = vmatprep.subr.bf16.mxu1 %v8426_v40  ;;  %v2647_v53 = vld [vmem:[#allocation3 + $0x304] sm:$0xff]  ;;  %3672 = vmatprep.subr.bf16.mxu0 %v8429_v54  ;;  %vm11068_vm9 = vcmask 154624   ;;  %vm11069_vm7 = vcmask 220160   ;;  %v8427_v42 = vld [vmem:[#allocation3 + $0x2b0] ss:$28 sps:$4 sm:$0xff]  }
 0x153   : > { %v2377_v47 = vsel %vm11005_vm0, %v2370_v43, %v2371_v5  ;;  %v2379_v33 = vsel %vm11068_vm9, %v2367_v48, %v2371_v5  ;;  %v2305_v11 = vsel %vm11005_vm0, %v2298_v1, %v2299_v39  ;;  %v2307_v17 = vsel %vm11069_vm7, %v2295_v45, %v2299_v39  ;;  %vm11070_vm11 = vmmov %vm11068_vm9  ;;  %v8433_v1 = vld [vmem:[#allocation3 + $0x248] ss:$28 sps:$4 sm:$0xff]   ;;  %v8443_v10 = vld [vmem:[#allocation3 + $0x130] ss:$28 sps:$4 sm:$0xff]  }
 0x154   : > { %7651 = vmatmul.mubr.msk.bf16.vlgmr.msra.gmra.mrb[0].mxu1 %vm10994_vm1, %v9528_v41  ;;  %v2378_v52 = vsel %vm11070_vm11, %v9712_v8, %v2377_v47  ;;  %2387 = vst [vmem:[#allocation3 + $0x408] sm:$0x3] %v2379_v33  ;;  %vm11071_vm3 = vmmov %vm11069_vm7  ;;  %v2515_v43 = vpop.permute.xlu1 %2514  ;;  %v2443_v44 = vpop.permute.xlu0 %2442  ;;  %v7597_v15 = vcombine.high %v9657_v57, %v2647_v53  ;;  %v7596_v19 = vcombine.low %v9657_v57, %v2647_v53  ;;  %vm11072_vm9 = vcmask 138240   ;;  %v8447_v51 = vld [vmem:[#allocation3 + $0x328] ss:$28 sps:$4 sm:$0xff]   ;;  %v9851_v48 = vld [vmem:[#allocation2] sm:$0xff] }
 0x155   : > { %v2306_v27 = vsel %vm11071_vm3, %v9694_v14, %v2305_v11  ;;  %2315 = vst [vmem:[#allocation3 + $0x3d0] sm:$0xc] %v2307_v17  ;;  %8150 = vmatpush3.bf16.msra.mxu1 %v8430_v3  ;;  %3762 = vmatprep.mubr.bf16.mxu1 %v9019_v32  ;;  %2386 = vst [vmem:[#allocation3 + $0x400] sm:$0x33] %v2378_v52  ;;  %v2519_v46 = vrot.slane %v2515_v43, 4  ;;  %v2447_v59 = vrot.slane %v2443_v44, 4  ;;  %v11074_v53 = vlaneseq }
 0x156   : > { %2314 = vst [vmem:[#allocation3 + $0x3c8] sm:$0xcc] %v2306_v27  ;;  %3673 = vmatpush1.bf16.msra.mxu0 %v8427_v42  ;;  %8151 = vmatprep.subr.bf16.mxu1 %v8431_v50  ;;  %v2651_v8 = vld [vmem:[#allocation3 + $0x320] sm:$0xff]  ;;  %v8432_v14 = vld [vmem:[#allocation3 + $0x50] ss:$28 sps:$4 sm:$0xff]   ;;  %vm11073_vm7 = vmmov %vm11072_vm9  ;;  %vm10992_vm11 = vmmov 0  }
 0x157   : > { %3674 = vmatprep.subr.bf16.mxu0 %v7597_v15  ;;  %v2525_v38 = vsel %vm11005_vm0, %v2518_v0, %v2519_v46  ;;  %v2527_v37 = vsel %vm11072_vm9, %v2515_v43, %v2519_v46  ;;  %v2453_v32 = vsel %vm11005_vm0, %v2446_v29, %v2447_v59  ;;  %v2455_v22 = vsel %vm10996_vm15, %v2443_v44, %v2447_v59  ;;  %v8438_v0 = vld [vmem:[#allocation3 + $0x280] ss:$28 sps:$4 sm:$0xff]   ;;  %v8434_v29 = vld [vmem:[#allocation3 + $0x88] ss:$28 sps:$4 sm:$0xff]   ;;  %v2699_v26 = vld [vmem:[#allocation3 + $0x470] sm:$0x33] }
 0x158   : > { %v2526_v12 = vsel %vm11073_vm7, %v9732_v2, %v2525_v38  ;;  %2535 = vst [vmem:[#allocation3 + $0x45c] sm:$0x3] %v2527_v37  ;;  %v2454_v60 = vsel %vm10996_vm15, %v9710_v55, %v2453_v32  ;;  %2463 = vst [vmem:[#allocation3 + $0x424] sm:$0xc] %v2455_v22  ;;  %v7604_v35 = vcombine.high %v2651_v8, %v9657_v57  ;;  %v8437_v56 = vld [vmem:[#allocation3 + $0x35c] ss:$28 sps:$4 sm:$0xff]  }
 0x159   : > { %8152 = vmatpush3.bf16.msra.mxu1 %v8432_v14  ;;  %2534 = vst [vmem:[#allocation3 + $0x454] sm:$0x33] %v2526_v12  ;;  %2462 = vst [vmem:[#allocation3 + $0x41c] sm:$0xcc] %v2454_v60  ;;  %v7603_v28 = vcombine.low %v2651_v8, %v9657_v57  ;;  %v2671_v2 = vld [vmem:[#allocation3 + $0x3ac] sm:$0xff]  ;;  %v7646_v63 = vcombine.high %v2699_v26, %v2699_v26  ;;  %v7645_v40 = vcombine.low %v2699_v26, %v2699_v26 }
 0x15a   : > { %3675 = vmatpush1.bf16.msra.mxu0 %v7596_v19  ;;  %8153 = vmatprep.subr.bf16.mxu1 %v8433_v1  ;;  %v8439_v55 = vld [vmem:[#allocation3 + $0xc0] ss:$28 sps:$4 sm:$0xff]   ;;  %v8435_v58 = vld [vmem:[#allocation3 + $0x358] ss:$28 sps:$4 sm:$0xff]   ;;  %v7618_v13 = vcombine.high %v9657_v57, %v2671_v2  ;;  %v7617_v16 = vcombine.low %v9657_v57, %v2671_v2  ;;  %v8448_v49 = vld [vmem:[#allocation3 + $0x168] ss:$28 sps:$4 sm:$0xff]  }
 0x15b   : > { %3676 = vmatprep.subr.bf16.mxu0 %v7604_v35  ;;  %v8449_v62 = vld [vmem:[#allocation3 + $0x360] ss:$28 sps:$4 sm:$0xff]   ;;  %v8453_v24 = vld [vmem:[#allocation3 + $0x398] ss:$28 sps:$4 sm:$0xff]   ;;  %v3476_v45 = vsel %vm10995_vm14, %v7645_v40, 0  ;;  %v9869_v3 = vand.u32 127, %v11074_v53 }
 0x15c   : > { %v8450_v23 = vld [vmem:[#allocation3 + $0x1a0] ss:$28 sps:$4 sm:$0xff]   ;;  %v8454_v54 = vld [vmem:[#allocation3 + $0x3d0] ss:$28 sps:$4 sm:$0xff]  }
 0x15d   : > { %8154 = vmatpush3.bf16.msra.mxu1 %v8434_v29  ;;  %v2675_v6 = vld [vmem:[#allocation3 + $0x3c8] sm:$0xff]  ;;  %v201_v50 = vadd.s32 128, %v9869_v3  ;;  %v207_v47 = vcvt.s32.f32 %v9869_v3  ;;  %v202_v2 = vadd.s32 256, %v9869_v3 }
 0x15e   : > { %3677 = vmatpush1.bf16.msra.mxu0 %v7603_v28  ;;  %8155 = vmatprep.subr.bf16.mxu1 %v8438_v0  ;;  %v7625_v7 = vcombine.high %v2675_v6, %v9657_v57  ;;  %v7624_v34 = vcombine.low %v2675_v6, %v9657_v57 }
 0x15f   : > { %3678 = vmatprep.subr.bf16.mxu0 %v8437_v56  ;;  %v8456_v5 = vld [vmem:[#allocation3 + $0x440] ss:$28 sps:$4 sm:$0xff]   ;;  %v208_v33 = vcvt.s32.f32 %v201_v50  ;;  %v214_v11 = vadd.f32 111.5, %v207_v47 }
 0x160   : > { %v8446_v4 = vld [vmem:[#allocation3 + $0x404] ss:$28 sps:$4 sm:$0xff]   ;;  %v2695_v20 = vld [vmem:[#allocation3 + $0x454] sm:$0xff] }
 0x161   : > { %8156 = vmatpush3.bf16.msra.mxu1 %v8439_v55  ;;  %v8444_v21 = vld [vmem:[#allocation3 + $0x400] ss:$28 sps:$4 sm:$0xff]   ;;  %v7639_v36 = vcombine.high %v9657_v57, %v2695_v20  ;;  %v7638_v18 = vcombine.low %v9657_v57, %v2695_v20  ;;  %v215_v17 = vadd.f32 111.5, %v208_v33  ;;  %v222_v42 = vmul.f32 0.01, %v214_v11 }
 0x162   : > { %3679 = vmatpush1.bf16.msra.mxu0 %v8435_v58  ;;  %8157 = vmatprep.subr.bf16.mxu1 %v8440_v61  ;;  %v203_v55 = vadd.s32 384, %v9869_v3 }
 0x163   : > { %3689 = vmatprep.subr.bf16.mxu0 %v7618_v13  ;;  %v223_v52 = vmul.f32 0.01, %v215_v17  ;;  %v8275_v27 = vtrunc.f32 %v222_v42  ;;  %v209_v13 = vcvt.s32.f32 %v202_v2 }
 0x165   : > { %3681 = vmatmul.mubr.bf16.vlgmr.msra.gmra.mrb[4].mxu0 %v9011_v31  ;;  %8158 = vmatpush3.bf16.msra.mxu1 %v8441_v9  ;;  %v8277_v43 = vtrunc.f32 %v223_v52  ;;  %v8276_v44 = vcvt.f32.s32 %v8275_v27 }
 0x166   : > { %3690 = vmatpush1.bf16.msra.mxu0 %v7617_v16  ;;  %8159 = vmatprep.subr.bf16.mxu1 %v8442_v25  ;;  %v210_v25 = vcvt.s32.f32 %v203_v55  ;;  %v216_v16 = vadd.f32 111.5, %v209_v13 }
 0x167   : > { %3691 = vmatprep.subr.bf16.mxu0 %v7625_v7  ;;  %3721 = vmatprep.mubr.bf16.mxu0 %v9657_v57  ;;  %v8455_v57 = vld [vmem:[#allocation3 + $0x408] ss:$28 sps:$4 sm:$0xff]   ;;  %v8278_v15 = vcvt.f32.s32 %v8277_v43  ;;  %v236_v1 = vcvt.s32.f32 %v8276_v44  ;;  %vm300_vm3 = vcmp.ge.s32.totalorder %v8276_v44, 1  ;;  %vm307_vm9 = vcmp.le.s32.totalorder %v8276_v44, 8  ;;  %v4158_v43 = vld [vmem:[#allocation2] sm:$0xf] }
 0x168   : > { %v217_v7 = vadd.f32 111.5, %v210_v25 }
 0x169   : > { %8160 = vmatpush3.bf16.msra.mxu1 %v8443_v10  ;;  %v237_v46 = vcvt.s32.f32 %v8278_v15  ;;  %v243_v59 = vmul.f32 100.0, %v236_v1  ;;  %vm301_vm7 = vcmp.ge.s32.totalorder %v8278_v15, 1 }
 0x16a   : > { %3692 = vmatpush1.bf16.msra.mxu0 %v7624_v34  ;;  %8161 = vmatprep.subr.bf16.mxu1 %v8447_v51  ;;  %v224_v51 = vmul.f32 0.01, %v216_v16  ;;  %v225_v10 = vmul.f32 0.01, %v217_v7 }
 0x16b   : > { %3693 = vmatprep.subr.bf16.mxu0 %v8446_v4  ;;  %v250_v8 = vsub.f32 %v214_v11, %v243_v59  ;;  %v204_v59 = vadd.s32 512, %v9869_v3 }
 0x16c   : > { %v8279_v34 = vtrunc.f32 %v224_v51  ;;  %v8281_v4 = vtrunc.f32 %v225_v10 }
 0x16d   : > { %8162 = vmatpush3.bf16.msra.mxu1 %v8448_v49  ;;  %v258_v14 = vmul.f32 0.1, %v250_v8 }
 0x16e   : > { %3694 = vmatpush1.bf16.msra.mxu0 %v8444_v21  ;;  %8163 = vmatprep.subr.bf16.mxu1 %v8449_v62 }
 0x16f   : > { %3695 = vmatprep.subr.bf16.mxu0 %v7639_v36  ;;  %v8289_v37 = vtrunc.f32 %v258_v14  ;;  %v205_v14 = vadd.s32 640, %v9869_v3 }
 0x171   : > { %8164 = vmatpush3.bf16.msra.mxu1 %v8450_v23  ;;  %v8290_v22 = vcvt.f32.s32 %v8289_v37 }
 0x172   : > { %3696 = vmatpush1.bf16.msra.mxu0 %v7638_v18  ;;  %8209 = vmatprep.subr.bf16.mxu1 %v9851_v48 }
 0x173   : > { %7652 = vmatprep.subr.msk.bf16.mxu0 %vm10995_vm14, %v7646_v63  ;;  %v272_v60 = vcvt.s32.f32 %v8290_v22  ;;  %vm335_vm12 = vcmp.le.s32.totalorder %v8290_v22, 8  ;;  %v9881_v63 = vcvt.f32.s32 %v8279_v34 }
 0x174   : > { %3763 = vmatmul.mubr.bf16.vlgmr.msra.gmra.mrb[4].mxu1 %v9011_v31  ;;  %v8457_v31 = vld [vmem:[#allocation3 + $0x478] ss:$0 sps:$4 sm:$0x33]  }
 0x175   : > { %8210 = vmatpush3.bf16.msra.mxu1 %v8453_v24  ;;  %8219 = vmatprep.mubr.msk.bf16.mxu1 %vm10992_vm11, %v9851_v48  ;;  %v3482_v39 = vsel %vm10995_vm14, %v8457_v31, 0  ;;  %v279_v0 = vmul.f32 10.0, %v272_v60  ;;  %vm308_vm11 = vcmp.le.s32.totalorder %v8278_v15, 8  ;;  %vm321_vm14 = vcmp.ge.s32.totalorder %v8290_v22, 1  ;;  %v4418_v22 = vld [vmem:[#allocation2] sm:$0xf] }
 0x176   : > { %3698 = vmatpush1.bf16.msra.mxu0 %v3476_v45  ;;  %8211 = vmatprep.subr.bf16.mxu1 %v9851_v48  ;;  %vm315_vm15 = vmand %vm301_vm7, %vm308_vm11  ;;  %v9884_v24 = vcvt.f32.s32 %v8281_v4  ;;  %v206_v4 = vadd.s32 768, %v9869_v3 }
 0x177   : > { %v286_v28 = vsub.f32 %v250_v8, %v279_v0 }
 0x179   : > { %7653 = vmatmul.mubr.msk.bf16.vlgmr.msra.gmra.mrb[4].mxu0 %vm10994_vm1, %v9528_v41  ;;  %8212 = vmatpush3.bf16.msra.mxu1 %v8454_v54  ;;  %v8303_v61 = vtrunc.f32 %v286_v28  ;;  %v238_v54 = vcvt.s32.f32 %v9881_v63 }
 0x17a   : > { %8213 = vmatprep.subr.bf16.mxu1 %v9851_v48 }
 0x17b   : > { %v8304_v6 = vcvt.f32.s32 %v8303_v61  ;;  %v245_v31 = vmul.f32 100.0, %v238_v54 }
 0x17d   : > { %8214 = vmatpush3.bf16.msra.mxu1 %v8455_v57  ;;  %vm349_vm4 = vcmp.ge.s32.totalorder %v8304_v6, 1  ;;  %v239_v57 = vcvt.s32.f32 %v9884_v24  ;;  %v252_v52 = vsub.f32 %v216_v16, %v245_v31 }
 0x17e   : > { %8215 = vmatprep.subr.bf16.mxu1 %v9851_v48 }
 0x17f   : > { %v246_v53 = vmul.f32 100.0, %v239_v57  ;;  %v260_v1 = vmul.f32 0.1, %v252_v52 }
 0x181   : > { %8216 = vmatpush3.bf16.msra.mxu1 %v8456_v5  ;;  %v3898_v5 = vld [vmem:[#allocation2] sm:$0xf]  ;;  %v253_v15 = vsub.f32 %v217_v7, %v246_v53 }
 0x182   : > { %8217 = vmatprep.subr.bf16.mxu1 %v9851_v48 }
 0x185   : > { %8218 = vmatpush3.bf16.msra.mxu1 %v3482_v39  ;;  %v4028_v39 = vld [vmem:[#allocation2] sm:$0xf] }
 0x188   : > { %8220 = vmatmul.mubr.msk.bf16.vlgmr.msra.gmra.mrb[8].mxu1 %vm10994_vm1, %v9528_v41  ;;  %v244_v41 = vmul.f32 100.0, %v237_v46  ;;  %vm314_vm1 = vmand %vm300_vm3, %vm307_vm9  ;;  %vm363_vm9 = vcmp.le.s32.totalorder %v8304_v6, 8 }
 0x189   : > { %vm328_vm13 = vmand %vm314_vm1, %vm321_vm14 }
 0x18a   : > { %v251_v19 = vsub.f32 %v215_v17, %v244_v41  ;;  %vm342_vm6 = vmand %vm328_vm13, %vm335_vm12  ;;  %v4288_v41 = vld [vmem:[#allocation2] sm:$0xf] }
 0x18b   : > { %vm356_vm3 = vmand %vm342_vm6, %vm349_vm4  ;;  %vm303_vm4 = vcmp.ge.s32.totalorder %v9884_v24, 1 }
 0x18c   : > { %v259_v38 = vmul.f32 0.1, %v251_v19  ;;  %vm370_vm1 = vmand %vm356_vm3, %vm363_vm9 }
 0x18d   : > { %v9876_v20 = vsel %vm370_vm1, 1.0, %v9851_v48 }
 0x18e   : > { %v8291_v32 = vtrunc.f32 %v259_v38  ;;  %v8293_v38 = vtrunc.f32 %v260_v1 }
 0x190   : > { %v8292_v12 = vcvt.f32.s32 %v8291_v32  ;;  %v211_v32 = vcvt.s32.f32 %v204_v59  ;;  %v8294_v0 = vcvt.f32.s32 %v8293_v38 }
 0x192   : > { %v273_v35 = vcvt.s32.f32 %v8292_v12  ;;  %vm322_vm5 = vcmp.ge.s32.totalorder %v8292_v12, 1  ;;  %vm336_vm8 = vcmp.le.s32.totalorder %v8292_v12, 8  ;;  %v218_v28 = vadd.f32 111.5, %v211_v32 }
 0x193   : > { %vm329_vm10 = vmand %vm315_vm15, %vm322_vm5  ;;  %vm310_vm5 = vcmp.le.s32.totalorder %v9884_v24, 8  ;;  %vm337_vm15 = vcmp.le.s32.totalorder %v8294_v0, 8 }
 0x194   : > { %v280_v29 = vmul.f32 10.0, %v273_v35  ;;  %vm343_vm2 = vmand %vm329_vm10, %vm336_vm8  ;;  %v212_v35 = vcvt.s32.f32 %v205_v14  ;;  %v226_v6 = vmul.f32 0.01, %v218_v28  ;;  %vm323_vm8 = vcmp.ge.s32.totalorder %v8294_v0, 1 }
 0x195   : > { %vm317_vm10 = vmand %vm303_vm4, %vm310_vm5 }
 0x196   : > { %v287_v56 = vsub.f32 %v251_v19, %v280_v29  ;;  %v261_v19 = vmul.f32 0.1, %v253_v15  ;;  %v219_v55 = vadd.f32 111.5, %v212_v35  ;;  %v8283_v34 = vtrunc.f32 %v226_v6 }
 0x198   : > { %v8305_v58 = vtrunc.f32 %v287_v56  ;;  %v8295_v60 = vtrunc.f32 %v261_v19  ;;  %v4548_v56 = vld [vmem:[#allocation2] sm:$0xf]  ;;  %v227_v7 = vmul.f32 0.01, %v219_v55 }
 0x19a   : > { %v8306_v9 = vcvt.f32.s32 %v8305_v58  ;;  %v8296_v61 = vcvt.f32.s32 %v8295_v60  ;;  %v274_v58 = vcvt.s32.f32 %v8294_v0 }
 0x19c   : > { %vm350_vm0 = vcmp.ge.s32.totalorder %v8306_v9, 1  ;;  %vm364_vm11 = vcmp.le.s32.totalorder %v8306_v9, 8  ;;  %v275_v16 = vcvt.s32.f32 %v8296_v61  ;;  %v281_v51 = vmul.f32 10.0, %v274_v58 }
 0x19d   : > { %vm357_vm7 = vmand %vm343_vm2, %vm350_vm0  ;;  %vm302_vm0 = vcmp.ge.s32.totalorder %v9881_v63, 1  ;;  %vm309_vm2 = vcmp.le.s32.totalorder %v9881_v63, 8  ;;  %vm324_vm12 = vcmp.ge.s32.totalorder %v8296_v61, 1  ;;  %vm338_vm9 = vcmp.le.s32.totalorder %v8296_v61, 8 }
 0x19e   : > { %vm371_vm14 = vmand %vm357_vm7, %vm364_vm11 }
 0x19f   : > { %v9879_v21 = vsel %vm371_vm14, 1.0, %v9851_v48  ;;  %vm316_vm6 = vmand %vm302_vm0, %vm309_vm2 }
 0x1a0   : > { %vm330_vm13 = vmand %vm316_vm6, %vm323_vm8 }
 0x1a1   : > { %vm331_vm3 = vmand %vm317_vm10, %vm324_vm12 }
 0x1a2   : > { %vm344_vm7 = vmand %vm330_vm13, %vm337_vm15 }
 0x1a3   : > { %vm345_vm1 = vmand %vm331_vm3, %vm338_vm9 }
 0x1ea   : > { %v3559_v62 = vpop.f32.mrb[0].mxu0 }
 0x1eb   : > { %v3810_v49 = vmax.f32 %v3559_v62, 0.0  ;;  %v3561_v26 = vpop.f32.mrb[1].mxu0  ;;  %v282_v62 = vmul.f32 10.0, %v275_v16 }
 0x1ec   : > { %v3811_v36 = vmax.f32 %v3561_v26, 0.0  ;;  %v3563_v23 = vpop.f32.mrb[2].mxu0  ;;  %v288_v26 = vsub.f32 %v252_v52, %v281_v51 }
 0x1ed   : > { %v3817_v40 = vmul.f32 %v9876_v20, %v3810_v49  ;;  %v3564_v18 = vpop.f32.mrb[3].mxu0  ;;  %v8285_v49 = vtrunc.f32 %v227_v7  ;;  %v213_v23 = vcvt.s32.f32 %v206_v4 }
 0x1ee   : > { %v3818_v45 = vmul.f32 %v9879_v21, %v3811_v36  ;;  %v9899_v36 = vcvt.f32.s32 %v8283_v34 }
 0x1ef   : > { %3824 = vst [vmem:[#allocation2 + $0x8] sm:$0xf] %v3817_v40  ;;  %v289_v40 = vsub.f32 %v253_v15, %v282_v62  ;;  %v9901_v18 = vcvt.f32.s32 %v8285_v49  ;;  %v220_v54 = vadd.f32 111.5, %v213_v23 }
 0x1f0   : > { %3825 = vst [vmem:[#allocation2 + $0x10] sm:$0xf] %v3818_v45  ;;  %v8307_v45 = vtrunc.f32 %v288_v26  ;;  %v240_v3 = vcvt.s32.f32 %v9899_v36  ;;  %vm304_vm10 = vcmp.ge.s32.totalorder %v9899_v36, 1  ;;  %vm311_vm12 = vcmp.le.s32.totalorder %v9899_v36, 8 }
 0x1f1   : > { %v8309_v57 = vtrunc.f32 %v289_v40  ;;  %v228_v53 = vmul.f32 0.01, %v220_v54  ;;  %vm305_vm13 = vcmp.ge.s32.totalorder %v9901_v18, 1  ;;  %vm312_vm15 = vcmp.le.s32.totalorder %v9901_v18, 8  ;;  %vm9945_vm3 = vmand %vm304_vm10, %vm311_vm12 }
 0x1f2   : > { %v8308_v31 = vcvt.f32.s32 %v8307_v45 }
 0x1f3   : > { %v8310_v63 = vcvt.f32.s32 %v8309_v57 }
 0x1f4   : > { %vm351_vm11 = vcmp.ge.s32.totalorder %v8308_v31, 1  ;;  %vm365_vm2 = vcmp.le.s32.totalorder %v8308_v31, 8 }
 0x1f5   : > { %vm352_vm14 = vcmp.ge.s32.totalorder %v8310_v63, 1  ;;  %vm358_vm0 = vmand %vm344_vm7, %vm351_vm11  ;;  %vm366_vm5 = vcmp.le.s32.totalorder %v8310_v63, 8  ;;  %v3831_v63 = vld [vmem:[#allocation2] sm:$0xf] }
 0x1f6   : > { %v4678_v50 = vld [vmem:[#allocation2 + $0x8] sm:$0xf]  ;;  %vm359_vm4 = vmand %vm345_vm1, %vm352_vm14 }
 0x1f7   : > { %v3899_v47 = vld [vmem:[#allocation2 + $0x8] sm:$0xf]  ;;  %v4679_v17 = vld [vmem:[#allocation2 + $0x10] sm:$0xf]  ;;  %vm372_vm6 = vmand %vm358_vm0, %vm365_vm2 }
 0x1f8   : > { %v4029_v33 = vld [vmem:[#allocation2 + $0x8] sm:$0xf]  ;;  %v8045_v11 = vpack.c.bf16 %v3899_v47, %v3898_v5  ;;  %v8093_v42 = vpack.c.bf16 %v4679_v17, %v4678_v50  ;;  %v4786_v9 = vld [vmem:[#allocation2 + $0x10] sm:$0xf]  ;;  %v241_v5 = vcvt.s32.f32 %v9901_v18  ;;  %v8287_v47 = vtrunc.f32 %v228_v53  ;;  %vm373_vm8 = vmand %vm359_vm4, %vm366_vm5 }
 0x1f9   : > { %v8053_v27 = vpack.c.bf16 %v4029_v33, %v4028_v39  ;;  %v4159_v44 = vld [vmem:[#allocation2 + $0x8] sm:$0xf]  ;;  %v247_v39 = vmul.f32 100.0, %v240_v3  ;;  %v9922_v1 = vsel %vm373_vm8, 1.0, %v9851_v48  ;;  %v3900_v0 = vld [vmem:[#allocation2 + $0x10] sm:$0xf]  ;;  %vm9952_vm7 = vmand %vm305_vm13, %vm312_vm15 }
 0x1fa   : > { %3934 = vrot.lane.b32.xlu0 %v8045_v11, %s8691_s23  ;;  %4714 = vst [vmem:[#allocation3 + $0x230] sm:$0x33] %v8093_v42  ;;  %v8061_v46 = vpack.c.bf16 %v4159_v44, %v4158_v43  ;;  %v4289_v8 = vld [vmem:[#allocation2 + $0x8] sm:$0xf]  ;;  %v248_v50 = vmul.f32 100.0, %v241_v5  ;;  %v9914_v17 = vcvt.f32.s32 %v8287_v47  ;;  %v9919_v43 = vsel %vm372_vm6, 1.0, %v9851_v48 }
 0x1fb   : > { %v8069_v37 = vpack.c.bf16 %v4289_v8, %v4288_v41  ;;  %v4419_v12 = vld [vmem:[#allocation2 + $0x8] sm:$0xf]  ;;  %v9909_v24 = vsub.f32 %v218_v28, %v247_v39  ;;  %v5046_v51 = vld [vmem:[#allocation2 + $0x10] sm:$0xf] }
 0x1fc   : > { %v8077_v29 = vpack.c.bf16 %v4419_v12, %v4418_v22  ;;  %v4549_v2 = vld [vmem:[#allocation2 + $0x8] sm:$0xf]  ;;  %v9911_v33 = vsub.f32 %v219_v55, %v248_v50  ;;  %v4160_v3 = vld [vmem:[#allocation2 + $0x10] sm:$0xf] }
 0x1fd   : > { %v8085_v13 = vpack.c.bf16 %v4549_v2, %v4548_v56  ;;  %v4785_v25 = vld [vmem:[#allocation2 + $0x8] sm:$0xf]  ;;  %v262_v11 = vmul.f32 0.1, %v9909_v24 }
 0x1fe   : > { %4064 = vrot.lane.b32.xlu0 %v8053_v27, %s8692_s24  ;;  %v8101_v10 = vpack.c.bf16 %v4786_v9, %v4785_v25  ;;  %v263_v42 = vmul.f32 0.1, %v9911_v33  ;;  %v242_v27 = vcvt.s32.f32 %v9914_v17  ;;  %v5045_v7 = vld [vmem:[#allocation2 + $0x8] sm:$0xf] }
 0x1ff   : > { %v8297_v52 = vtrunc.f32 %v262_v11  ;;  %v8117_v26 = vpack.c.bf16 %v5046_v51, %v5045_v7  ;;  %v5305_v18 = vld [vmem:[#allocation2 + $0x8] sm:$0xf] }
 0x200   : > { %v8299_v59 = vtrunc.f32 %v263_v42  ;;  %v3832_v47 = vld [vmem:[#allocation2 + $0x8] sm:$0xf] }
 0x201   : > { %v9925_v38 = vcvt.f32.s32 %v8297_v52 }
 0x202   : > { %4194 = vrot.lane.b32.xlu0 %v8061_v46, %s8694_s26  ;;  %v9928_v22 = vcvt.f32.s32 %v8299_v59  ;;  %v3961_v59 = vld [vmem:[#allocation2] sm:$0xf] }
 0x203   : > { %v276_v12 = vcvt.s32.f32 %v9925_v38  ;;  %vm325_vm9 = vcmp.ge.s32.totalorder %v9925_v38, 1  ;;  %vm339_vm14 = vcmp.le.s32.totalorder %v9925_v38, 8 }
 0x204   : > { %v277_v35 = vcvt.s32.f32 %v9928_v22  ;;  %vm326_vm11 = vcmp.ge.s32.totalorder %v9928_v22, 1  ;;  %vm332_vm1 = vmand %vm9945_vm3, %vm325_vm9  ;;  %vm340_vm2 = vcmp.le.s32.totalorder %v9928_v22, 8 }
 0x205   : > { %vm333_vm0 = vmand %vm9952_vm7, %vm326_vm11  ;;  %vm306_vm7 = vcmp.ge.s32.totalorder %v9914_v17, 1  ;;  %vm313_vm11 = vcmp.le.s32.totalorder %v9914_v17, 8 }
 0x206   : > { %4324 = vrot.lane.b32.xlu0 %v8069_v37, %s8696_s28  ;;  %v249_v37 = vmul.f32 100.0, %v242_v27  ;;  %v284_v6 = vmul.f32 10.0, %v277_v35  ;;  %vm9970_vm4 = vmand %vm332_vm1, %vm339_vm14 }
 0x207   : > { %vm9978_vm6 = vmand %vm333_vm0, %vm340_vm2 }
 0x208   : > { %v9931_v60 = vsub.f32 %v220_v54, %v249_v37  ;;  %v291_v62 = vsub.f32 %v9911_v33, %v284_v6  ;;  %v4290_v33 = vld [vmem:[#allocation2 + $0x10] sm:$0xf]  ;;  %vm10025_vm1 = vmand %vm306_vm7, %vm313_vm11  ;;  %vm11105_vm7 = vcmask 809984  }
 0x209   : > { %v4613_v37 = vld [vmem:[#allocation2 + $0x10] sm:$0xf] }
 0x20a   : > { %4454 = vrot.lane.b32.xlu0 %v8077_v29, %s8698_s30  ;;  %v283_v29 = vmul.f32 10.0, %v276_v12  ;;  %v264_v28 = vmul.f32 0.1, %v9931_v60  ;;  %v8313_v31 = vtrunc.f32 %v291_v62 }
 0x20c   : > { %v290_v34 = vsub.f32 %v9909_v24, %v283_v29  ;;  %v8301_v49 = vtrunc.f32 %v264_v28  ;;  %v5306_v24 = vld [vmem:[#allocation2 + $0x10] sm:$0xf]  ;;  %v8314_v52 = vcvt.f32.s32 %v8313_v31  ;;  %v4091_v29 = vld [vmem:[#allocation2] sm:$0xf]  ;;  %v4092_v28 = vld [vmem:[#allocation2 + $0x8] sm:$0xf] }
 0x20e   : > { %4584 = vrot.lane.b32.xlu0 %v8085_v13, %s8700_s6  ;;  %v8311_v54 = vtrunc.f32 %v290_v34  ;;  %v9949_v39 = vcvt.f32.s32 %v8301_v49  ;;  %vm9982_vm8 = vcmp.ge.s32.totalorder %v8314_v52, 1  ;;  %vm9996_vm15 = vcmp.le.s32.totalorder %v8314_v52, 8  ;;  %v4222_v34 = vld [vmem:[#allocation2 + $0x8] sm:$0xf] }
 0x20f   : > { %vm361_vm13 = vmand %vm9978_vm6, %vm9982_vm8 }
 0x210   : > { %v8312_v11 = vcvt.f32.s32 %v8311_v54  ;;  %v278_v27 = vcvt.s32.f32 %v9949_v39  ;;  %vm375_vm9 = vmand %vm361_vm13, %vm9996_vm15  ;;  %v4916_v54 = vld [vmem:[#allocation2 + $0x10] sm:$0xf]  ;;  %vm327_vm14 = vcmp.ge.s32.totalorder %v9949_v39, 1  ;;  %vm341_vm2 = vcmp.le.s32.totalorder %v9949_v39, 8 }
 0x211   : > { %v10018_v5 = vsel %vm375_vm9, 1.0, %v9851_v48  ;;  %vm334_vm0 = vmand %vm10025_vm1, %vm327_vm14  ;;  %vm11101_vm13 = vcmask 900096   ;;  %vm11107_vm1 = vcmask 736256  }
 0x212   : > { %4821 = vrot.lane.b32.xlu0 %v8101_v10, %s8703_s9  ;;  %v4030_v10 = vld [vmem:[#allocation2 + $0x10] sm:$0xf]  ;;  %vm9974_vm5 = vcmp.ge.s32.totalorder %v8312_v11, 1  ;;  %v285_v22 = vmul.f32 10.0, %v278_v27  ;;  %vm367_vm12 = vcmp.le.s32.totalorder %v8312_v11, 8 }
 0x213   : > { %vm360_vm10 = vmand %vm9970_vm4, %vm9974_vm5  ;;  %v4482_v11 = vld [vmem:[#allocation2 + $0x8] sm:$0xf] }
 0x214   : > { %vm374_vm3 = vmand %vm360_vm10, %vm367_vm12  ;;  %vm11100_vm12 = vcmask 1043456  }
 0x215   : > { %vm10040_vm4 = vmand %vm334_vm0, %vm341_vm2  ;;  %vm11109_vm0 = vcmask 89088  }
 0x216   : > { %vm11102_vm15 = vmmov %vm11100_vm12 }
 0x217   : > { %vm11104_vm9 = vmmov %vm11100_vm12 }
 0x218   : > { %vm11106_vm11 = vmmov %vm11104_vm9 }
 0x219   : > { %vm11108_vm14 = vmmov %vm11104_vm9 }
 0x21a   : > { %vm11110_vm2 = vmmov %vm11104_vm9 }
 0x227   : > { %v3641_v44 = vpop.f32.mrb[0].mxu1 }
 0x228   : > { %v3812_v15 = vmax.f32 %v3641_v44, 0.0  ;;  %v3643_v46 = vpop.f32.mrb[1].mxu1  ;;  %v8133_v44 = vpack.c.bf16 %v5306_v24, %v5305_v18 }
 0x229   : > { %v3813_v41 = vmax.f32 %v3643_v46, 0.0  ;;  %v3645_v8 = vpop.f32.mrb[2].mxu1  ;;  %v8041_v46 = vpack.c.bf16 %v3832_v47, %v3831_v63  ;;  %v3963_v63 = vld [vmem:[#allocation2 + $0x10] sm:$0xf] }
 0x22a   : > { %v3819_v19 = vmul.f32 %v9919_v43, %v3812_v15  ;;  %v3646_v14 = vpop.f32.mrb[3].mxu1  ;;  %v4420_v8 = vld [vmem:[#allocation2 + $0x10] sm:$0xf] }
 0x22b   : > { %v3820_v32 = vmul.f32 %v9922_v1, %v3813_v41  ;;  %v3962_v41 = vld [vmem:[#allocation2 + $0x8] sm:$0xf]  ;;  %v3867_v12 = vrot.slane %v8041_v46, 6 }
 0x22c   : > { %3826 = vst [vmem:[#allocation2 + $0x18] sm:$0xf] %v3819_v19  ;;  %v5175_v14 = vld [vmem:[#allocation2 + $0x8] sm:$0xf] }
 0x22d   : > { %3827 = vst [vmem:[#allocation2 + $0x20] sm:$0xf] %v3820_v32  ;;  %v4611_v32 = vld [vmem:[#allocation2] sm:$0xf] }
 0x233   : > { %v4680_v56 = vld [vmem:[#allocation2 + $0x18] sm:$0xf] }
 0x234   : > { %v3901_v2 = vld [vmem:[#allocation2 + $0x18] sm:$0xf]  ;;  %v4681_v55 = vld [vmem:[#allocation2 + $0x20] sm:$0xf] }
 0x235   : > { %v4917_v61 = vld [vmem:[#allocation2 + $0x18] sm:$0xf]  ;;  %v8046_v58 = vpack.c.bf16 %v3901_v2, %v3900_v0  ;;  %v4918_v13 = vld [vmem:[#allocation2 + $0x20] sm:$0xf]  ;;  %v8094_v25 = vpack.c.bf16 %v4681_v55, %v4680_v56  ;;  %v8049_v0 = vpack.c.bf16 %v3962_v41, %v3961_v59  ;;  %v4550_v56 = vld [vmem:[#allocation2 + $0x10] sm:$0xf] }
 0x236   : > { %v8110_v9 = vpack.c.bf16 %v4918_v13, %v4917_v61  ;;  %v4031_v16 = vld [vmem:[#allocation2 + $0x18] sm:$0xf]  ;;  %v5178_v45 = vld [vmem:[#allocation2 + $0x20] sm:$0xf]  ;;  %v292_v13 = vsub.f32 %v9931_v60, %v285_v22  ;;  %v10015_v60 = vsel %vm374_vm3, 1.0, %v9851_v48  ;;  %vm11103_vm3 = vcmask 826368  }
 0x237   : > { %3936 = vrot.lane.b32.xlu1 %v8046_v58, %s8691_s23  ;;  %4715 = vst [vmem:[#allocation3 + $0x238] sm:$0x33] %v8094_v25  ;;  %v8054_v4 = vpack.c.bf16 %v4031_v16, %v4030_v10  ;;  %v4161_v23 = vld [vmem:[#allocation2 + $0x18] sm:$0xf]  ;;  %v3997_v6 = vrot.slane %v8049_v0, 6  ;;  %v8057_v16 = vpack.c.bf16 %v4092_v28, %v4091_v29 }
 0x238   : > { %4953 = vrot.lane.b32.xlu0 %v8110_v9, %s8705_s11  ;;  %v5177_v40 = vld [vmem:[#allocation2 + $0x18] sm:$0xf]  ;;  %v8062_v57 = vpack.c.bf16 %v4161_v23, %v4160_v3  ;;  %v4788_v9 = vld [vmem:[#allocation2 + $0x20] sm:$0xf]  ;;  %v4612_v0 = vld [vmem:[#allocation2 + $0x8] sm:$0xf] }
 0x239   : > { %v8126_v36 = vpack.c.bf16 %v5178_v45, %v5177_v40  ;;  %v4291_v53 = vld [vmem:[#allocation2 + $0x18] sm:$0xf]  ;;  %v4221_v10 = vld [vmem:[#allocation2] sm:$0xf]  ;;  %v8315_v40 = vtrunc.f32 %v292_v13  ;;  %v4127_v3 = vrot.slane %v8057_v16, 6 }
 0x23a   : > { %v8070_v42 = vpack.c.bf16 %v4291_v53, %v4290_v33  ;;  %v4421_v15 = vld [vmem:[#allocation2 + $0x18] sm:$0xf]  ;;  %v4351_v23 = vld [vmem:[#allocation2] sm:$0xf] }
 0x23b   : > { %4066 = vrot.lane.b32.xlu1 %v8054_v4, %s8692_s24  ;;  %v8078_v38 = vpack.c.bf16 %v4421_v15, %v4420_v8  ;;  %v4551_v35 = vld [vmem:[#allocation2 + $0x18] sm:$0xf]  ;;  %v4481_v33 = vld [vmem:[#allocation2] sm:$0xf]  ;;  %v8316_v52 = vcvt.f32.s32 %v8315_v40 }
 0x23c   : > { %5081 = vrot.lane.b32.xlu0 %v8117_v26, %s11006_s13  ;;  %v8086_v55 = vpack.c.bf16 %v4551_v35, %v4550_v56  ;;  %v4787_v25 = vld [vmem:[#allocation2 + $0x18] sm:$0xf]  ;;  %v4915_v26 = vld [vmem:[#allocation2 + $0x8] sm:$0xf]  ;;  %v8081_v59 = vpack.c.bf16 %v4482_v11, %v4481_v33  ;;  %v5308_v28 = vld [vmem:[#allocation2 + $0x20] sm:$0xf] }
 0x23d   : > { %v8102_v49 = vpack.c.bf16 %v4788_v9, %v4787_v25  ;;  %v8109_v47 = vpack.c.bf16 %v4916_v54, %v4915_v26  ;;  %v5047_v27 = vld [vmem:[#allocation2 + $0x18] sm:$0xf]  ;;  %vm10044_vm5 = vcmp.ge.s32.totalorder %v8316_v52, 1  ;;  %vm369_vm8 = vcmp.le.s32.totalorder %v8316_v52, 8  ;;  %v4093_v52 = vld [vmem:[#allocation2 + $0x10] sm:$0xf] }
 0x23e   : > { %v4614_v39 = vld [vmem:[#allocation2 + $0x18] sm:$0xf]  ;;  %vm362_vm6 = vmand %vm10040_vm4, %vm10044_vm5  ;;  %v4517_v35 = vrot.slane %v8081_v59, 6  ;;  %v8089_v25 = vpack.c.bf16 %v4612_v0, %v4611_v32  ;;  %v4353_v0 = vld [vmem:[#allocation2 + $0x10] sm:$0xf]  ;;  %vm11111_vm4 = vcmask 72704  }
 0x23f   : > { %4196 = vrot.lane.b32.xlu1 %v8062_v57, %s8694_s26  ;;  %v8065_v57 = vpack.c.bf16 %v4222_v34, %v4221_v10  ;;  %v5307_v29 = vld [vmem:[#allocation2 + $0x18] sm:$0xf]  ;;  %v8090_v56 = vpack.c.bf16 %v4614_v39, %v4613_v37  ;;  %vm376_vm10 = vmand %vm362_vm6, %vm369_vm8  ;;  %vm11114_vm6 = vcmask 973824  }
 0x240   : > { %5213 = vrot.lane.b32.xlu0 %v8126_v36, %s11028_s27  ;;  %v4352_v36 = vld [vmem:[#allocation2 + $0x8] sm:$0xf]  ;;  %v4720_v61 = vld [vmem:[#allocation2 + $0x18] sm:$0xf]  ;;  %v10058_v34 = vsel %vm376_vm10, 1.0, %v9851_v48  ;;  %vm11113_vm5 = vmmov %vm11110_vm2  ;;  %vm11117_vm10 = vcmask 957440  }
 0x241   : > { %v4257_v17 = vrot.slane %v8065_v57, 6  ;;  %v8073_v15 = vpack.c.bf16 %v4352_v36, %v4351_v23  ;;  %v4648_v16 = vrot.slane %v8090_v56, 6  ;;  %v3834_v10 = vld [vmem:[#allocation2 + $0x18] sm:$0xf]  ;;  %v3833_v23 = vld [vmem:[#allocation2 + $0x10] sm:$0xf]  ;;  %vm11116_vm8 = vmmov %vm11110_vm2 }
 0x242   : > { %v3964_v36 = vld [vmem:[#allocation2 + $0x18] sm:$0xf] }
 0x243   : > { %4326 = vrot.lane.b32.xlu1 %v8070_v42, %s8696_s28  ;;  %v4387_v19 = vrot.slane %v8073_v15, 6  ;;  %v4980_v48 = vld [vmem:[#allocation2 + $0x18] sm:$0xf] }
 0x244   : > { %5341 = vrot.lane.b32.xlu0 %v8133_v44, %s11008_s14  ;;  %v5048_v44 = vld [vmem:[#allocation2 + $0x20] sm:$0xf]  ;;  %v4094_v33 = vld [vmem:[#allocation2 + $0x18] sm:$0xf] }
 0x245   : > { %v8118_v46 = vpack.c.bf16 %v5048_v44, %v5047_v27  ;;  %v5110_v11 = vld [vmem:[#allocation2 + $0x18] sm:$0xf]  ;;  %v8058_v27 = vpack.c.bf16 %v4094_v33, %v4093_v52  ;;  %v5109_v52 = vld [vmem:[#allocation2 + $0x10] sm:$0xf] }
 0x246   : > { %v4224_v59 = vld [vmem:[#allocation2 + $0x18] sm:$0xf] }
 0x247   : > { %4456 = vrot.lane.b32.xlu1 %v8078_v38, %s8698_s30  ;;  %v8165_v2 = vpop.f32.mrb[4].mxu1  ;;  %v5176_v38 = vld [vmem:[#allocation2 + $0x10] sm:$0xf]  ;;  %v5240_v8 = vld [vmem:[#allocation2 + $0x18] sm:$0xf] }
 0x248   : > { %3871 = vrot.lane.b32.xlu0 %v3867_v12, %s8690_s22  ;;  %v8166_v58 = vpop.f32.mrb[5].mxu1  ;;  %v8125_v12 = vpack.c.bf16 %v5176_v38, %v5175_v14  ;;  %v4223_v14 = vld [vmem:[#allocation2 + $0x10] sm:$0xf]  ;;  %v4128_v38 = vrot.slane %v8058_v27, 6 }
 0x249   : > { %v10001_v7 = vadd.f32 %v8166_v58, %v8165_v2  ;;  %v8168_v51 = vpop.f32.mrb[6].mxu1  ;;  %v8066_v39 = vpack.c.bf16 %v4224_v59, %v4223_v14  ;;  %v5499_v14 = vld [vmem:[#allocation2 + $0x10] sm:$0xf] }
 0x24a   : > { %v8169_v4 = vpop.f32.mrb[7].mxu1 }
 0x24b   : > { %4586 = vrot.lane.b32.xlu1 %v8086_v55, %s8700_s6  ;;  %v4721_v55 = vld [vmem:[#allocation2 + $0x20] sm:$0xf] }
 0x24c   : > { %4001 = vrot.lane.b32.xlu0 %v3997_v6, %s8689_s21  ;;  %v3723_v62 = vpop.f32.mrb[4].mxu0  ;;  %v8134_v6 = vpack.c.bf16 %v5308_v28, %v5307_v29  ;;  %v8098_v51 = vpack.c.bf16 %v4721_v55, %v4720_v61  ;;  %v4258_v29 = vrot.slane %v8066_v39, 6  ;;  %v4484_v61 = vld [vmem:[#allocation2 + $0x18] sm:$0xf] }
 0x24d   : > { %v3814_v45 = vmax.f32 %v3723_v62, 0.0  ;;  %v3725_v31 = vpop.f32.mrb[5].mxu0  ;;  %v4850_v62 = vld [vmem:[#allocation2 + $0x18] sm:$0xf] }
 0x24e   : > { %v3815_v53 = vmax.f32 %v3725_v31, 0.0  ;;  %v3727_v50 = vpop.f32.mrb[6].mxu0  ;;  %v4755_v57 = vrot.slane %v8098_v51, 6  ;;  %v4718_v51 = vld [vmem:[#allocation2 + $0x8] sm:$0xf] }
 0x24f   : > { %4823 = vrot.lane.b32.xlu1 %v8102_v49, %s8703_s9  ;;  %v3821_v18 = vmul.f32 %v10015_v60, %v3814_v45  ;;  %v3728_v24 = vpop.f32.mrb[7].mxu0  ;;  %v4851_v49 = vld [vmem:[#allocation2 + $0x20] sm:$0xf]  ;;  %v4647_v45 = vrot.slane %v8089_v25, 6 }
 0x250   : > { %4131 = vrot.lane.b32.xlu0 %v4127_v3, %s8693_s25  ;;  %v3822_v42 = vmul.f32 %v10018_v5, %v3815_v53  ;;  %v8042_v3 = vpack.c.bf16 %v3834_v10, %v3833_v23  ;;  %v8106_v31 = vpack.c.bf16 %v4851_v49, %v4850_v62  ;;  %v4981_v53 = vld [vmem:[#allocation2 + $0x20] sm:$0xf]  ;;  %v4719_v10 = vld [vmem:[#allocation2 + $0x10] sm:$0xf] }
 0x251   : > { %3828 = vst [vmem:[#allocation2 + $0x28] sm:$0xf] %v3821_v18  ;;  %v8050_v18 = vpack.c.bf16 %v3964_v36, %v3963_v63  ;;  %v3835_v25 = vld [vmem:[#allocation2 + $0x20] sm:$0xf]  ;;  %v8097_v49 = vpack.c.bf16 %v4719_v10, %v4718_v51  ;;  %v4979_v36 = vld [vmem:[#allocation2 + $0x10] sm:$0xf] }
 0x252   : > { %3829 = vst [vmem:[#allocation2 + $0x30] sm:$0xf] %v3822_v42  ;;  %v3868_v50 = vrot.slane %v8042_v3, 6  ;;  %v4885_v24 = vrot.slane %v8106_v31, 6  ;;  %v5111_v42 = vld [vmem:[#allocation2 + $0x20] sm:$0xf] }
 0x253   : > { %4951 = vrot.lane.b32.xlu1 %v8109_v47, %s8705_s11  ;;  %v8114_v47 = vpack.c.bf16 %v4981_v53, %v4980_v48  ;;  %v4849_v3 = vld [vmem:[#allocation2 + $0x10] sm:$0xf]  ;;  %v4978_v31 = vld [vmem:[#allocation2 + $0x8] sm:$0xf]  ;;  %v3902_v10 = vld [vmem:[#allocation2 + $0x20] sm:$0xf] }
 0x254   : > { %4261 = vrot.lane.b32.xlu0 %v4257_v17, %s11091_s18  ;;  %v3998_v17 = vrot.slane %v8050_v18, 6  ;;  %v5435_v48 = vld [vmem:[#allocation2 + $0x8] sm:$0xf]  ;;  %v5436_v53 = vld [vmem:[#allocation2 + $0x10] sm:$0xf]  ;;  %v8113_v18 = vpack.c.bf16 %v4979_v36, %v4978_v31 }
 0x255   : > { %v5015_v44 = vrot.slane %v8114_v47, 6  ;;  %v8141_v33 = vpack.c.bf16 %v5436_v53, %v5435_v48  ;;  %v4162_v48 = vld [vmem:[#allocation2 + $0x20] sm:$0xf] }
 0x256   : > { %v5014_v27 = vrot.slane %v8113_v18, 6 }
 0x257   : > { %5083 = vrot.lane.b32.xlu1 %v8118_v46, %s11006_s13  ;;  %s11097_s13 = smov 1   ;;  %v8122_v46 = vpack.c.bf16 %v5111_v42, %v5110_v11  ;;  %v5108_v42 = vld [vmem:[#allocation2 + $0x8] sm:$0xf] }
 0x258   : > { %4391 = vrot.lane.b32.xlu0 %v4387_v19, %s11096_s19  ;;  %v4682_v22 = vld [vmem:[#allocation2 + $0x28] sm:$0xf]  ;;  %v5241_v19 = vld [vmem:[#allocation2 + $0x20] sm:$0xf] }
 0x259   : > { %v4683_v2 = vld [vmem:[#allocation2 + $0x30] sm:$0xf]  ;;  %v5145_v37 = vrot.slane %v8122_v46, 6  ;;  %v8130_v32 = vpack.c.bf16 %v5241_v19, %v5240_v8  ;;  %v3836_v55 = vld [vmem:[#allocation2 + $0x28] sm:$0xf] }
 0x25a   : > { %v8095_v58 = vpack.c.bf16 %v4683_v2, %v4682_v22  ;;  %v4354_v22 = vld [vmem:[#allocation2 + $0x18] sm:$0xf]  ;;  %v4096_v63 = vld [vmem:[#allocation2 + $0x28] sm:$0xf]  ;;  %v5239_v8 = vld [vmem:[#allocation2 + $0x10] sm:$0xf] }
 0x25b   : > { %5211 = vrot.lane.b32.xlu1 %v8125_v12, %s11028_s27  ;;  %v3804_v13 = vpop.f32.mrb[8].mxu1  ;;  %v5370_v12 = vld [vmem:[#allocation2 + $0x18] sm:$0xf]  ;;  %v8074_v28 = vpack.c.bf16 %v4354_v22, %v4353_v0  ;;  %v5275_v56 = vrot.slane %v8130_v32, 6  ;;  %v5498_v19 = vld [vmem:[#allocation2 + $0x8] sm:$0xf] }
 0x25c   : > { %4521 = vrot.lane.b32.xlu0 %v4517_v35, %s8699_s5  ;;  %4716 = vst [vmem:[#allocation3 + $0x240] sm:$0x33] %v8095_v58  ;;  %v3805_v9 = vadd.f32 %v10001_v7, %v3804_v13  ;;  %v8221_v4 = vpop.f32.mrb[9].mxu1  ;;  %v5371_v35 = vld [vmem:[#allocation2 + $0x20] sm:$0xf]  ;;  %v8145_v22 = vpack.c.bf16 %v5499_v14, %v5498_v19 }
 0x25d   : > { %v3807_v40 = vpop.f32.mrb[10].mxu1  ;;  %v8138_v2 = vpack.c.bf16 %v5371_v35, %v5370_v12  ;;  %v4483_v58 = vld [vmem:[#allocation2 + $0x10] sm:$0xf]  ;;  %v4388_v13 = vrot.slane %v8074_v28, 6  ;;  %v3966_v4 = vld [vmem:[#allocation2 + $0x28] sm:$0xf] }
 0x25e   : > { %v3816_v26 = vmax.f32 %v3805_v9, 0.0  ;;  %v8222_v54 = vpop.f32.mrb[11].mxu1  ;;  %v5368_v12 = vld [vmem:[#allocation2 + $0x8] sm:$0xf]  ;;  %v5369_v35 = vld [vmem:[#allocation2 + $0x10] sm:$0xf] }
 0x25f   : > { %5343 = vrot.lane.b32.xlu1 %v8134_v6, %s11008_s14  ;;  %v8082_v6 = vpack.c.bf16 %v4484_v61, %v4483_v58  ;;  %v5405_v9 = vrot.slane %v8138_v2, 6  ;;  %s11098_s14 = smov 18   ;;  %v4356_v0 = vld [vmem:[#allocation2 + $0x28] sm:$0xf]  ;;  %v8137_v28 = vpack.c.bf16 %v5369_v35, %v5368_v12  ;;  %v5534_v61 = vrot.slane %v8145_v22, 6 }
 0x260   : > { %4653 = vrot.lane.b32.xlu0 %v4648_v16, %s11097_s13  ;;  %v3823_v7 = vmul.f32 %v10058_v34, %v3816_v26  ;;  %v8043_v16 = vpack.c.bf16 %v3836_v55, %v3835_v25  ;;  %v3965_v26 = vld [vmem:[#allocation2 + $0x20] sm:$0xf]  ;;  %v4486_v58 = vld [vmem:[#allocation2 + $0x28] sm:$0xf]  ;;  %v4034_v18 = vld [vmem:[#allocation2 + $0x30] sm:$0xf] }
 0x261   : > { %v4518_v62 = vrot.slane %v8082_v6, 6  ;;  %v8051_v40 = vpack.c.bf16 %v3966_v4, %v3965_v26  ;;  %v4485_v6 = vld [vmem:[#allocation2 + $0x20] sm:$0xf]  ;;  %v4789_v26 = vld [vmem:[#allocation2 + $0x28] sm:$0xf] }
 0x262   : > { %3830 = vst [vmem:[#allocation2 + $0x38] sm:$0xf] %v3823_v7  ;;  %v3869_v23 = vrot.slane %v8043_v16, 6  ;;  %v4754_v7 = vrot.slane %v8097_v49, 6  ;;  %v8083_v16 = vpack.c.bf16 %v4486_v58, %v4485_v6  ;;  %v4033_v49 = vld [vmem:[#allocation2 + $0x28] sm:$0xf] }
 0x263   : > { %4651 = vrot.lane.b32.xlu1 %v4647_v45, %s11097_s13  ;;  %v4848_v45 = vld [vmem:[#allocation2 + $0x8] sm:$0xf]  ;;  %v4552_v12 = vld [vmem:[#allocation2 + $0x20] sm:$0xf] }
 0x264   : > { %4760 = vrot.lane.b32.xlu0 %v4755_v57, %s8702_s8  ;;  %v8105_v54 = vpack.c.bf16 %v4849_v3, %v4848_v45  ;;  %v3999_v57 = vrot.slane %v8051_v40, 6  ;;  %v4616_v40 = vld [vmem:[#allocation2 + $0x28] sm:$0xf]  ;;  %v4032_v45 = vld [vmem:[#allocation2 + $0x20] sm:$0xf] }
 0x265   : > { %v8055_v3 = vpack.c.bf16 %v4033_v49, %v4032_v45  ;;  %v4163_v31 = vld [vmem:[#allocation2 + $0x28] sm:$0xf] }
 0x266   : > { %v8063_v53 = vpack.c.bf16 %v4163_v31, %v4162_v48 }
 0x267   : > { %3873 = vrot.lane.b32.xlu1 %v3868_v50, %s8690_s22  ;;  %v4884_v50 = vrot.slane %v8105_v54, 6 }
 0x268   : > { %4890 = vrot.lane.b32.xlu0 %v4885_v24, %s11010_s10  ;;  %v4095_v24 = vld [vmem:[#allocation2 + $0x20] sm:$0xf] }
 0x269   : > { %v4684_v15 = vld [vmem:[#allocation2 + $0x38] sm:$0xf]  ;;  %v8059_v11 = vpack.c.bf16 %v4096_v63, %v4095_v24 }
 0x26a   : > { %v8096_v41 = vpack.c.bf16 %v4684_v15, %v4684_v15  ;;  %v4225_v15 = vld [vmem:[#allocation2 + $0x20] sm:$0xf]  ;;  %v4035_v24 = vld [vmem:[#allocation2 + $0x38] sm:$0xf] }
 0x26b   : > { %4003 = vrot.lane.b32.xlu1 %v3998_v17, %s8689_s21  ;;  %v4226_v17 = vld [vmem:[#allocation2 + $0x28] sm:$0xf]  ;;  %v4129_v46 = vrot.slane %v8059_v11, 6  ;;  %v3838_v11 = vld [vmem:[#allocation2 + $0x38] sm:$0xf] }
 0x26c   : > { %5020 = vrot.lane.b32.xlu0 %v5015_v44, %s8706_s12  ;;  %4717 = vst [vmem:[#allocation3 + $0x248] sm:$0x3] %v8096_v41  ;;  %v10079_v47 = vpop.permute.xlu0 %3934  ;;  %v8121_v44 = vpack.c.bf16 %v5109_v52, %v5108_v42  ;;  %v8067_v59 = vpack.c.bf16 %v4226_v17, %v4225_v15  ;;  %v5238_v41 = vld [vmem:[#allocation2 + $0x8] sm:$0xf]  ;;  %v4292_v52 = vld [vmem:[#allocation2 + $0x20] sm:$0xf] }
 0x26d   : > { %v3968_v22 = vld [vmem:[#allocation2 + $0x38] sm:$0xf] }
 0x26e   : > { %v5144_v39 = vrot.slane %v8121_v44, 6  ;;  %v4259_v32 = vrot.slane %v8067_v59, 6  ;;  %v4423_v44 = vld [vmem:[#allocation2 + $0x28] sm:$0xf]  ;;  %v4983_v59 = vld [vmem:[#allocation2 + $0x30] sm:$0xf] }
 0x26f   : > { %4133 = vrot.lane.b32.xlu1 %v4128_v38, %s8693_s25  ;;  %v4098_v31 = vld [vmem:[#allocation2 + $0x38] sm:$0xf] }
 0x270   : > { %5150 = vrot.lane.b32.xlu0 %v5145_v37, %s11027_s29  ;;  %v10084_v38 = vpop.permute.xlu0 %4064  ;;  %v8129_v37 = vpack.c.bf16 %v5239_v8, %v5238_v41  ;;  %v4422_v41 = vld [vmem:[#allocation2 + $0x20] sm:$0xf] }
 0x271   : > { %v8079_v8 = vpack.c.bf16 %v4423_v44, %v4422_v41  ;;  %v4723_v44 = vld [vmem:[#allocation2 + $0x30] sm:$0xf] }
 0x273   : > { %4263 = vrot.lane.b32.xlu1 %v4258_v29, %s11091_s18  ;;  %v5274_v29 = vrot.slane %v8129_v37, 6 }
 0x274   : > { %5280 = vrot.lane.b32.xlu0 %v5275_v56, %s8711_s17  ;;  %v4355_v56 = vld [vmem:[#allocation2 + $0x20] sm:$0xf]  ;;  %v10089_v2 = vpop.permute.xlu0 %4194 }
 0x275   : > { %v8075_v55 = vpack.c.bf16 %v4356_v0, %v4355_v56  ;;  %v5500_v56 = vld [vmem:[#allocation2 + $0x18] sm:$0xf] }
 0x277   : > { %4393 = vrot.lane.b32.xlu1 %v4388_v13, %s11096_s19  ;;  %v5404_v13 = vrot.slane %v8137_v28, 6  ;;  %v4389_v25 = vrot.slane %v8075_v55, 6  ;;  %v5438_v28 = vld [vmem:[#allocation2 + $0x20] sm:$0xf] }
 0x278   : > { %5410 = vrot.lane.b32.xlu0 %v5405_v9, %s11029_s7  ;;  %v3903_v9 = vld [vmem:[#allocation2 + $0x28] sm:$0xf]  ;;  %v10094_v51 = vpop.permute.xlu0 %4324 }
 0x279   : > { %v8047_v4 = vpack.c.bf16 %v3903_v9, %v3902_v10  ;;  %v10123_v9 = vld.sshfl [vmem:[%s10947_s2] sm:$0x3f pattern:$0x76325410] }
 0x27b   : > { %4523 = vrot.lane.b32.xlu1 %v4518_v62, %s8699_s5  ;;  %v4519_v62 = vrot.slane %v8083_v16, 6 }
 0x27c   : > { %3875 = vrot.lane.b32.xlu0 %v3869_v23, %s8690_s22  ;;  %v4790_v23 = vld [vmem:[#allocation2 + $0x30] sm:$0xf]  ;;  %v10099_v54 = vpop.permute.xlu0 %4454 }
 0x27f   : > { %4758 = vrot.lane.b32.xlu1 %v4754_v7, %s8702_s8  ;;  %v4615_v7 = vld [vmem:[#allocation2 + $0x20] sm:$0xf] }
 0x280   : > { %4005 = vrot.lane.b32.xlu0 %v3999_v57, %s8689_s21  ;;  %v8103_v57 = vpack.c.bf16 %v4790_v23, %v4789_v26  ;;  %v8091_v36 = vpack.c.bf16 %v4616_v40, %v4615_v7  ;;  %v10104_v42 = vpop.permute.xlu0 %4584  ;;  %v4072_v26 = vrot.slane %v10084_v38, 4  ;;  %v10139_v7 = vcombine.high %v10123_v9, %v10123_v9 }
 0x282   : > { %v4649_v63 = vrot.slane %v8091_v36, 6  ;;  %6543 = vmatprep.mubr.bf16.mxu1 %v10139_v7  ;;  %6625 = vmatprep.mubr.bf16.mxu0 %v10139_v7 }
 0x283   : > { %4888 = vrot.lane.b32.xlu1 %v4884_v50, %s11010_s10  ;;  %s11099_s10 = smov 17   ;;  %v4293_v50 = vld [vmem:[#allocation2 + $0x28] sm:$0xf] }
 0x284   : > { %5471 = vrot.lane.b32.xlu0 %v8141_v33, %s11098_s14  ;;  %v3837_v33 = vld [vmem:[#allocation2 + $0x30] sm:$0xf]  ;;  %v8071_v17 = vpack.c.bf16 %v4293_v50, %v4292_v52  ;;  %v10109_v19 = vpop.permute.xlu0 %4821  ;;  %v4919_v50 = vld [vmem:[#allocation2 + $0x28] sm:$0xf] }
 0x285   : > { %v8044_v15 = vpack.c.bf16 %v3838_v11, %v3837_v33 }
 0x287   : > { %5018 = vrot.lane.b32.xlu1 %v5014_v27, %s8706_s12  ;;  %v8056_v27 = vpack.c.bf16 %v4035_v24, %v4034_v18  ;;  %v3870_v14 = vrot.slane %v8044_v15, 6  ;;  %v4920_v18 = vld [vmem:[#allocation2 + $0x30] sm:$0xf]  ;;  %v4202_v24 = vrot.slane %v10089_v2, 4 }
 0x288   : > { %4135 = vrot.lane.b32.xlu0 %v4129_v46, %s8693_s25  ;;  %v4982_v46 = vld [vmem:[#allocation2 + $0x28] sm:$0xf]  ;;  %v5243_v15 = vld [vmem:[#allocation2 + $0x30] sm:$0xf] }
 0x289   : > { %v8115_v37 = vpack.c.bf16 %v4983_v59, %v4982_v46 }
 0x28b   : > { %5148 = vrot.lane.b32.xlu1 %v5144_v39, %s11027_s29  ;;  %v4553_v39 = vld [vmem:[#allocation2 + $0x28] sm:$0xf] }
 0x28c   : > { %4265 = vrot.lane.b32.xlu0 %v4259_v32, %s11091_s18  ;;  %v3967_v32 = vld [vmem:[#allocation2 + $0x30] sm:$0xf]  ;;  %v8087_v0 = vpack.c.bf16 %v4553_v39, %v4552_v12  ;;  %v4332_v39 = vrot.slane %v10094_v51, 4 }
 0x28d   : > { %v8052_v6 = vpack.c.bf16 %v3968_v22, %v3967_v32 }
 0x28f   : > { %5278 = vrot.lane.b32.xlu1 %v5274_v29, %s8711_s17  ;;  %v5437_v29 = vld [vmem:[#allocation2 + $0x18] sm:$0xf]  ;;  %v4000_v45 = vrot.slane %v8052_v6, 6  ;;  %v4852_v6 = vld [vmem:[#allocation2 + $0x28] sm:$0xf] }
 0x290   : > { %5538 = vrot.lane.b32.xlu0 %v5534_v61, %s11099_s10  ;;  %v3942_v61 = vrot.slane %v10079_v47, 4 }
 0x293   : > { %5408 = vrot.lane.b32.xlu1 %v5404_v13, %s11029_s7  ;;  %v5016_v13 = vrot.slane %v8115_v37, 6 }
 0x294   : > { %4395 = vrot.lane.b32.xlu0 %v4389_v25, %s11096_s19  ;;  %v5501_v25 = vld [vmem:[#allocation2 + $0x20] sm:$0xf] }
 0x295   : > { %v8146_v49 = vpack.c.bf16 %v5501_v25, %v5500_v56  ;;  %v4853_v25 = vld [vmem:[#allocation2 + $0x30] sm:$0xf] }
 0x297   : > { %3938 = vrot.lane.b32.xlu1 %v8047_v4, %s8691_s23 }
 0x298   : > { %4525 = vrot.lane.b32.xlu0 %v4519_v62, %s8699_s5  ;;  %v8142_v62 = vpack.c.bf16 %v5438_v28, %v5437_v29  ;;  %v4228_v29 = vld [vmem:[#allocation2 + $0x38] sm:$0xf]  ;;  %v3904_v28 = vld [vmem:[#allocation2 + $0x30] sm:$0xf] }
 0x29b   : > { %4068 = vrot.lane.b32.xlu1 %v8055_v3, %s8692_s24  ;;  %v4294_v3 = vld [vmem:[#allocation2 + $0x30] sm:$0xf] }
 0x29c   : > { %4825 = vrot.lane.b32.xlu0 %v8103_v57, %s8703_s9  ;;  %v4097_v57 = vld [vmem:[#allocation2 + $0x30] sm:$0xf] }
 0x29f   : > { %4198 = vrot.lane.b32.xlu1 %v8063_v53, %s8694_s26 }
 0x2a0   : > { %4655 = vrot.lane.b32.xlu0 %v4649_v63, %s11097_s13  ;;  %v5535_v63 = vrot.slane %v8146_v49, 6 }
 0x2a3   : > { %4328 = vrot.lane.b32.xlu1 %v8071_v17, %s8696_s28  ;;  %v8060_v17 = vpack.c.bf16 %v4098_v31, %v4097_v57 }
 0x2a4   : > { %4070 = vrot.lane.b32.xlu0 %v8056_v27, %s8692_s24  ;;  %v4722_v27 = vld [vmem:[#allocation2 + $0x28] sm:$0xf] }
 0x2a5   : > { %v4130_v22 = vrot.slane %v8060_v17, 6 }
 0x2a7   : > { %4458 = vrot.lane.b32.xlu1 %v8079_v8, %s8698_s30  ;;  %v8111_v8 = vpack.c.bf16 %v4920_v18, %v4919_v50  ;;  %v4592_v50 = vrot.slane %v10104_v42, 4 }
 0x2a8   : > { %3877 = vrot.lane.b32.xlu0 %v3870_v14, %s8690_s22  ;;  %v8099_v14 = vpack.c.bf16 %v4723_v44, %v4722_v27  ;;  %v5503_v27 = vld [vmem:[#allocation2 + $0x30] sm:$0xf] }
 0x2a9   : > { %v10113_v35 = vpop.permute.xlu1 %3936 }
 0x2aa   : > { %v3943_v55 = vrot.slane %v10113_v35, 4  ;;  %v10117_v58 = vpop.permute.xlu0 %4953 }
 0x2ab   : > { %4588 = vrot.lane.b32.xlu1 %v8087_v0, %s8700_s6  ;;  %v4227_v0 = vld [vmem:[#allocation2 + $0x30] sm:$0xf] }
 0x2ac   : > { %v3946_v16 = vsel %vm11100_vm12, %v3942_v61, %v3943_v55  ;;  %5022 = vrot.lane.b32.xlu0 %v5016_v13, %s8706_s12  ;;  %v4756_v13 = vrot.slane %v8099_v14, 6  ;;  %vm11118_vm12 = vmmov %vm11110_vm2 }
 0x2ad   : > { %v3947_v10 = vsel %vm11101_vm13, %v10079_v47, %v3946_v16  ;;  %v10131_v4 = vpop.permute.xlu1 %4066  ;;  %v4295_v47 = vld [vmem:[#allocation2 + $0x38] sm:$0xf]  ;;  %v4462_v16 = vrot.slane %v10099_v54, 4  ;;  %vm11119_vm13 = vcmask 310272  }
 0x2ae   : > { %3957 = vst [vmem:[#allocation3 + $0x38] sm:$0x33] %v3947_v10  ;;  %v4073_v23 = vrot.slane %v10131_v4, 4  ;;  %v10135_v40 = vpop.permute.xlu0 %5081  ;;  %v8072_v52 = vpack.c.bf16 %v4295_v47, %v4294_v3  ;;  %v4357_v3 = vld [vmem:[#allocation2 + $0x30] sm:$0xf] }
 0x2af   : > { %5473 = vrot.lane.b32.xlu1 %v8142_v62, %s11098_s14  ;;  %v4358_v47 = vld [vmem:[#allocation2 + $0x38] sm:$0xf] }
 0x2b0   : > { %v4076_v36 = vsel %vm11102_vm15, %v4072_v26, %v4073_v23  ;;  %4007 = vrot.lane.b32.xlu0 %v4000_v45, %s8689_s21  ;;  %v3905_v26 = vld [vmem:[#allocation2 + $0x38] sm:$0xf]  ;;  %v8068_v45 = vpack.c.bf16 %v4228_v29, %v4227_v0  ;;  %v8076_v17 = vpack.c.bf16 %v4358_v47, %v4357_v3  ;;  %s11112_s21 = smov 118   ;;  %v4487_v0 = vld [vmem:[#allocation2 + $0x30] sm:$0xf]  ;;  %vm11120_vm15 = vmmov %vm11110_vm2 }
 0x2b1   : > { %v4077_v48 = vsel %vm11103_vm3, %v10084_v38, %v4076_v36  ;;  %v10149_v53 = vpop.permute.xlu1 %4196  ;;  %v5242_v38 = vld [vmem:[#allocation2 + $0x28] sm:$0xf]  ;;  %v8048_v36 = vpack.c.bf16 %v3905_v26, %v3904_v28  ;;  %v4488_v29 = vld [vmem:[#allocation2 + $0x38] sm:$0xf]  ;;  %v5113_v47 = vld [vmem:[#allocation2 + $0x30] sm:$0xf] }
 0x2b2   : > { %4087 = vst [vmem:[#allocation3 + $0x8c] sm:$0x33] %v4077_v48  ;;  %v4203_v33 = vrot.slane %v10149_v53, 4  ;;  %v10154_v11 = vpop.permute.xlu0 %5213  ;;  %v8131_v12 = vpack.c.bf16 %v5243_v15, %v5242_v38  ;;  %v8107_v48 = vpack.c.bf16 %v4853_v25, %v4852_v6  ;;  %v5179_v6 = vld [vmem:[#allocation2 + $0x28] sm:$0xf]  ;;  %vm11121_vm3 = vcmask 236544  }
 0x2b3   : > { %5540 = vrot.lane.b32.xlu1 %v5535_v63, %s11099_s10  ;;  %v5502_v63 = vld [vmem:[#allocation2 + $0x28] sm:$0xf]  ;;  %v5180_v25 = vld [vmem:[#allocation2 + $0x30] sm:$0xf] }
 0x2b4   : > { %v4206_v46 = vsel %vm11104_vm9, %v4202_v24, %v4203_v33  ;;  %4330 = vrot.lane.b32.xlu0 %v8072_v52, %s8696_s28  ;;  %v5276_v49 = vrot.slane %v8131_v12, 6  ;;  %v4260_v52 = vrot.slane %v8068_v45, 6  ;;  %v4886_v15 = vrot.slane %v8107_v48, 6  ;;  %v5050_v12 = vld [vmem:[#allocation2 + $0x30] sm:$0xf]  ;;  %vm11122_vm9 = vmmov %vm11110_vm2  ;;  %s8718_s28 = smov 124  }
 0x2b5   : > { %v4207_v59 = vsel %vm11105_vm7, %v10089_v2, %v4206_v46  ;;  %v10163_v41 = vpop.permute.xlu1 %4326  ;;  %v5049_v46 = vld [vmem:[#allocation2 + $0x28] sm:$0xf]  ;;  %v8084_v45 = vpack.c.bf16 %v4488_v29, %v4487_v0  ;;  %vm11123_vm7 = vcmask 220160  }
 0x2b6   : > { %4217 = vst [vmem:[#allocation3 + $0xe0] sm:$0x33] %v4207_v59  ;;  %v11018_v37 = vrot.slane %v10163_v41, 4  ;;  %v10167_v32 = vpop.permute.xlu0 %5341  ;;  %v8147_v59 = vpack.c.bf16 %v5503_v27, %v5502_v63  ;;  %v5112_v3 = vld [vmem:[#allocation2 + $0x28] sm:$0xf]  ;;  %v8127_v63 = vpack.c.bf16 %v5180_v25, %v5179_v6 }
 0x2b7   : > { %4955 = vrot.lane.b32.xlu1 %v8111_v8, %s8705_s11  ;;  %v4829_v8 = vrot.slane %v10109_v19, 4 }
 0x2b8   : > { %v4336_v2 = vsel %vm11106_vm11, %v4332_v39, %v11018_v37  ;;  %4137 = vrot.lane.b32.xlu0 %v4130_v22, %s8693_s25  ;;  %v4390_v22 = vrot.slane %v8076_v17, 6  ;;  %s11124_s25 = smov 27   ;;  %vm11125_vm11 = vmmov %vm11110_vm2 }
 0x2b9   : > { %v4337_v56 = vsel %vm11107_vm1, %v10094_v51, %v4336_v2  ;;  %v10176_v61 = vpop.permute.xlu1 %4456  ;;  %vm11126_vm1 = vcmask 7168  }
 0x2ba   : > { %4347 = vst [vmem:[#allocation3 + $0x134] sm:$0x33] %v4337_v56  ;;  %v11017_v10 = vrot.slane %v10176_v61, 4  ;;  %v10180_v62 = vpop.permute.xlu0 %3871  ;;  %v8119_v56 = vpack.c.bf16 %v5050_v12, %v5049_v46  ;;  %v11013_v12 = vrot.slane %v10154_v11, 4 }
 0x2bb   : > { %4762 = vrot.lane.b32.xlu1 %v4756_v13, %s8702_s8  ;;  %v5536_v13 = vrot.slane %v8147_v59, 6 }
 0x2bc   : > { %v4466_v51 = vsel %vm11108_vm14, %v4462_v16, %v11017_v10  ;;  %5282 = vrot.lane.b32.xlu0 %v5276_v49, %s8711_s17  ;;  %v11015_v16 = vrot.slane %v10117_v58, 4  ;;  %vm11127_vm14 = vmmov %vm11110_vm2 }
 0x2bd   : > { %v4467_v57 = vsel %vm11109_vm0, %v10099_v54, %v4466_v51  ;;  %v10189_v31 = vpop.permute.xlu1 %4586  ;;  %v4617_v51 = vld [vmem:[#allocation2 + $0x30] sm:$0xf]  ;;  %vm11128_vm0 = vcmask 908288  }
 0x2be   : > { %4477 = vst [vmem:[#allocation3 + $0x188] sm:$0x33] %v4467_v57  ;;  %v11016_v18 = vrot.slane %v10189_v31, 4  ;;  %v10193_v24 = vpop.permute.xlu0 %4001  ;;  %v4618_v57 = vld [vmem:[#allocation2 + $0x38] sm:$0xf] }
 0x2bf   : > { %3940 = vrot.lane.b32.xlu1 %v8048_v36, %s8691_s23  ;;  %s11115_s23 = smov 38  }
 0x2c0   : > { %v4596_v54 = vsel %vm11110_vm2, %v4592_v50, %v11016_v18  ;;  %4267 = vrot.lane.b32.xlu0 %v4260_v52, %s11091_s18  ;;  %v8123_v50 = vpack.c.bf16 %v5113_v47, %v5112_v3  ;;  %v5089_v52 = vrot.slane %v10135_v40, 4  ;;  %v5349_v3 = vrot.slane %v10167_v32, 4  ;;  %v5114_v18 = vld [vmem:[#allocation2 + $0x38] sm:$0xf] }
 0x2c1   : > { %v4597_v44 = vsel %vm11111_vm4, %v10104_v42, %v4596_v54  ;;  %v10202_v38 = vpop.permute.xlu1 %4823  ;;  %v4520_v54 = vrot.slane %v8084_v45, 6  ;;  %v5310_v45 = vld [vmem:[#allocation2 + $0x30] sm:$0xf]  ;;  %vm11129_vm4 = vcmask 891904  }
 0x2c2   : > { %4607 = vst [vmem:[#allocation3 + $0x1dc] sm:$0x33] %v4597_v44  ;;  %v4830_v14 = vrot.slane %v10202_v38, 4  ;;  %v10206_v39 = vpop.permute.xlu0 %4131  ;;  %v8092_v44 = vpack.c.bf16 %v4618_v57, %v4617_v51 }
 0x2c3   : > { %4892 = vrot.lane.b32.xlu1 %v4886_v15, %s11112_s21 }
 0x2c4   : > { %v4833_v42 = vsel %vm11113_vm5, %v4829_v8, %v4830_v14  ;;  %4397 = vrot.lane.b32.xlu0 %v4390_v22, %s11096_s19  ;;  %v5146_v8 = vrot.slane %v8123_v50, 6  ;;  %v4164_v22 = vld [vmem:[#allocation2 + $0x30] sm:$0xf]  ;;  %v4922_v50 = vld [vmem:[#allocation2 + $0x40] sm:$0xf]  ;;  %vm11130_vm5 = vmmov %vm11110_vm2 }
 0x2c5   : > { %v4834_v2 = vsel %vm11114_vm6, %v10109_v19, %v4833_v42  ;;  %v4952_v28 = vpop.permute.xlu1 %4951  ;;  %v4650_v42 = vrot.slane %v8092_v44, 6  ;;  %vm11131_vm6 = vcmask 818176  }
 0x2c6   : > { %4844 = vst [vmem:[#allocation3 + $0x284] sm:$0x33] %v4834_v2  ;;  %v4959_v49 = vrot.slane %v4952_v28, 4  ;;  %v10216_v26 = vpop.permute.xlu0 %4261  ;;  %v4165_v2 = vld [vmem:[#allocation2 + $0x38] sm:$0xf] }
 0x2c7   : > { %5085 = vrot.lane.b32.xlu1 %v8119_v56, %s11115_s23  ;;  %v4792_v56 = vld [vmem:[#allocation2 + $0x40] sm:$0xf]  ;;  %v8064_v25 = vpack.c.bf16 %v4165_v2, %v4164_v22 }
 0x2c8   : > { %v4963_v19 = vsel %vm11116_vm8, %v4959_v49, %v11015_v16  ;;  %5542 = vrot.lane.b32.xlu0 %v5536_v13, %s11099_s10  ;;  %v5309_v49 = vld [vmem:[#allocation2 + $0x28] sm:$0xf]  ;;  %v5052_v2 = vld [vmem:[#allocation2 + $0x40] sm:$0xf]  ;;  %vm11132_vm8 = vmmov %vm11110_vm2 }
 0x2c9   : > { %v4964_v36 = vsel %vm11117_vm10, %v4952_v28, %v4963_v19  ;;  %v10224_v48 = vpop.permute.xlu1 %5083  ;;  %v4791_v28 = vld [vmem:[#allocation2 + $0x38] sm:$0xf]  ;;  %v5372_v19 = vld [vmem:[#allocation2 + $0x28] sm:$0xf]  ;;  %v4855_v16 = vld [vmem:[#allocation2 + $0x40] sm:$0xf] }
 0x2ca   : > { %4974 = vst [vmem:[#allocation3 + $0x2d8] sm:$0x33] %v4964_v36  ;;  %v11014_v17 = vrot.slane %v10224_v48, 4  ;;  %v10228_v27 = vpop.permute.xlu0 %4391  ;;  %v8104_v57 = vpack.c.bf16 %v4792_v56, %v4791_v28  ;;  %v5373_v36 = vld [vmem:[#allocation2 + $0x30] sm:$0xf]  ;;  %vm11133_vm10 = vcmask 744448  }
 0x2cb   : > { %5215 = vrot.lane.b32.xlu1 %v8127_v63, %s11028_s27  ;;  %v4921_v63 = vld [vmem:[#allocation2 + $0x38] sm:$0xf] }
 0x2cc   : > { %v5093_v15 = vsel %vm11118_vm12, %v5089_v52, %v11014_v17  ;;  %4527 = vrot.lane.b32.xlu0 %v4520_v54, %s8699_s5  ;;  %vm11134_vm12 = vmmov %vm11110_vm2 }
 0x2cd   : > { %v5094_v46 = vsel %vm11119_vm13, %v10135_v40, %v5093_v15  ;;  %v5212_v59 = vpop.permute.xlu1 %5211  ;;  %v8135_v15 = vpack.c.bf16 %v5310_v45, %v5309_v49  ;;  %vm11135_vm13 = vcmask 728064  }
 0x2ce   : > { %5104 = vst [vmem:[#allocation3 + $0x32c] sm:$0x33] %v5094_v46  ;;  %v5219_v0 = vrot.slane %v5212_v59, 4  ;;  %v10238_v29 = vpop.permute.xlu0 %4521  ;;  %v8139_v46 = vpack.c.bf16 %v5373_v36, %v5372_v19  ;;  %v5181_v19 = vld [vmem:[#allocation2 + $0x38] sm:$0xf] }
 0x2cf   : > { %5152 = vrot.lane.b32.xlu1 %v5146_v8, %s11027_s29  ;;  %v5182_v36 = vld [vmem:[#allocation2 + $0x40] sm:$0xf] }
 0x2d0   : > { %v5223_v13 = vsel %vm11120_vm15, %v5219_v0, %v11013_v12  ;;  %4657 = vrot.lane.b32.xlu0 %v4650_v42, %s11097_s13  ;;  %v8112_v0 = vpack.c.bf16 %v4922_v50, %v4921_v63  ;;  %v5051_v42 = vld [vmem:[#allocation2 + $0x38] sm:$0xf]  ;;  %vm11136_vm15 = vmmov %vm11110_vm2 }
 0x2d1   : > { %v5224_v40 = vsel %vm11121_vm3, %v5212_v59, %v5223_v13  ;;  %v10246_v6 = vpop.permute.xlu1 %5343  ;;  %v5406_v13 = vrot.slane %v8139_v46, 6  ;;  %v8120_v45 = vpack.c.bf16 %v5052_v2, %v5051_v42  ;;  %v4425_v42 = vld [vmem:[#allocation2 + $0x38] sm:$0xf]  ;;  %vm11137_vm3 = vcmask 80896  }
 0x2d2   : > { %5234 = vst [vmem:[#allocation3 + $0x380] sm:$0x33] %v5224_v40  ;;  %v11012_v47 = vrot.slane %v10246_v6, 4  ;;  %v10250_v51 = vpop.permute.xlu0 %4653  ;;  %v3879_v40 = vrot.slane %v10180_v62, 4  ;;  %v5311_v2 = vld [vmem:[#allocation2 + $0x38] sm:$0xf] }
 0x2d3   : > { %4200 = vrot.lane.b32.xlu1 %v8064_v25, %s8694_s26  ;;  %v11022_v59 = vrot.slane %v10250_v51, 4 }
 0x2d4   : > { %v5353_v52 = vsel %vm11122_vm9, %v5349_v3, %v11012_v47  ;;  %4827 = vrot.lane.b32.xlu0 %v8104_v57, %s8703_s9  ;;  %v5439_v3 = vld [vmem:[#allocation2 + $0x28] sm:$0xf]  ;;  %v5440_v57 = vld [vmem:[#allocation2 + $0x30] sm:$0xf]  ;;  %v4269_v47 = vrot.slane %v10216_v26, 4  ;;  %vm11138_vm9 = vmmov %vm11110_vm2 }
 0x2d5   : > { %v5354_v54 = vsel %vm11123_vm7, %v10167_v32, %v5353_v52  ;;  %v4652_v44 = vpop.permute.xlu1 %4651  ;;  %vm11139_vm7 = vmmov %vm11128_vm0 }
 0x2d6   : > { %5364 = vst [vmem:[#allocation3 + $0x3d4] sm:$0x33] %v5354_v54  ;;  %v4659_v8 = vrot.slane %v4652_v44, 4  ;;  %v10260_v22 = vpop.permute.xlu0 %4760  ;;  %v8143_v54 = vpack.c.bf16 %v5440_v57, %v5439_v3  ;;  %v4725_v3 = vld [vmem:[#allocation2 + $0x40] sm:$0xf]  ;;  %v4139_v57 = vrot.slane %v10206_v39, 4 }
 0x2d7   : > { %5345 = vrot.lane.b32.xlu1 %v8135_v15, %s11124_s25 }
 0x2d8   : > { %v4663_v28 = vsel %vm11125_vm11, %v4659_v8, %v11022_v59  ;;  %4957 = vrot.lane.b32.xlu0 %v8112_v0, %s8705_s11  ;;  %v8128_v8 = vpack.c.bf16 %v5182_v36, %v5181_v19  ;;  %v4424_v0 = vld [vmem:[#allocation2 + $0x30] sm:$0xf]  ;;  %vm11140_vm11 = vmmov %vm11110_vm2 }
 0x2d9   : > { %v4664_v32 = vsel %vm11126_vm1, %v4652_v44, %v4663_v28  ;;  %v10268_v56 = vpop.permute.xlu1 %3873  ;;  %v4009_v44 = vrot.slane %v10193_v24, 4  ;;  %v5312_v28 = vld [vmem:[#allocation2 + $0x40] sm:$0xf]  ;;  %vm11141_vm1 = vcmask 1039360  }
 0x2da   : > { %4674 = vst [vmem:[#allocation3 + $0x1f8] sm:$0xcc] %v4664_v32  ;;  %v3880_v25 = vrot.slane %v10268_v56, 4  ;;  %v10272_v49 = vpop.permute.xlu0 %4890 }
 0x2db   : > { %5412 = vrot.lane.b32.xlu1 %v5406_v13, %s11029_s7 }
 0x2dc   : > { %v3883_v63 = vsel %vm11127_vm14, %v3879_v40, %v3880_v25  ;;  %5087 = vrot.lane.b32.xlu0 %v8120_v45, %s11115_s23  ;;  %v8080_v40 = vpack.c.bf16 %v4425_v42, %v4424_v0  ;;  %v4554_v45 = vld [vmem:[#allocation2 + $0x30] sm:$0xf]  ;;  %vm11142_vm14 = vmmov %vm11110_vm2 }
 0x2dd   : > { %v3884_v50 = vsel %vm11128_vm0, %v10180_v62, %v3883_v63  ;;  %v10281_v52 = vpop.permute.xlu1 %4003  ;;  %v8136_v63 = vpack.c.bf16 %v5312_v28, %v5311_v2  ;;  %vm11143_vm0 = vmmov %vm11129_vm4 }
 0x2de   : > { %3894 = vst [vmem:[#allocation3] sm:$0xcc] %v3884_v50  ;;  %v4010_v15 = vrot.slane %v10281_v52, 4  ;;  %v10285_v46 = vpop.permute.xlu0 %5020  ;;  %v4555_v50 = vld [vmem:[#allocation2 + $0x38] sm:$0xf] }
 0x2df   : > { %5475 = vrot.lane.b32.xlu1 %v8143_v54, %s11098_s14  ;;  %v4724_v54 = vld [vmem:[#allocation2 + $0x38] sm:$0xf] }
 0x2e0   : > { %v4013_v62 = vsel %vm11110_vm2, %v4009_v44, %v4010_v15  ;;  %5217 = vrot.lane.b32.xlu0 %v8128_v8, %s11028_s27  ;;  %v5441_v44 = vld [vmem:[#allocation2 + $0x38] sm:$0xf]  ;;  %v5442_v8 = vld [vmem:[#allocation2 + $0x40] sm:$0xf]  ;;  %v8100_v28 = vpack.c.bf16 %v4725_v3, %v4724_v54 }
 0x2e1   : > { %v4014_v32 = vsel %vm11129_vm4, %v10193_v24, %v4013_v62  ;;  %v10294_v13 = vpop.permute.xlu1 %4133  ;;  %v8088_v62 = vpack.c.bf16 %v4555_v50, %v4554_v45  ;;  %v8144_v17 = vpack.c.bf16 %v5442_v8, %v5441_v44  ;;  %v4399_v8 = vrot.slane %v10228_v27, 4 }
 0x2e2   : > { %4024 = vst [vmem:[#allocation3 + $0x54] sm:$0xcc] %v4014_v32  ;;  %v4140_v19 = vrot.slane %v10294_v13, 4  ;;  %v10298_v36 = vpop.permute.xlu0 %5150  ;;  %vm11144_vm4 = vcmask 965632  }
 0x2e3   : > { %4460 = vrot.lane.b32.xlu1 %v8080_v40, %s8698_s30 }
 0x2e4   : > { %v4143_v24 = vsel %vm11130_vm5, %v4139_v57, %v4140_v19  ;;  %5347 = vrot.lane.b32.xlu0 %v8136_v63, %s11124_s25  ;;  %v4854_v57 = vld [vmem:[#allocation2 + $0x38] sm:$0xf]  ;;  %v4757_v63 = vrot.slane %v8100_v28, 6  ;;  %vm11145_vm5 = vmmov %vm11110_vm2 }
 0x2e5   : > { %v4144_v0 = vsel %vm11131_vm6, %v10206_v39, %v4143_v24  ;;  %v10307_v42 = vpop.permute.xlu1 %4263  ;;  %v8458_v32 = vld [vmem:[#allocation3] ss:$28 sps:$4 sm:$0xff]   ;;  %v8108_v44 = vpack.c.bf16 %v4855_v16, %v4854_v57  ;;  %v5115_v57 = vld [vmem:[#allocation2 + $0x40] sm:$0xf]  ;;  %vm11146_vm6 = vcmask 318464  }
 0x2e6   : > { %v8460_v2 = vld [vmem:[#allocation3 + $0x4] ss:$28 sps:$4 sm:$0xff]   ;;  %4154 = vst [vmem:[#allocation3 + $0xa8] sm:$0xcc] %v4144_v0  ;;  %v4270_v40 = vrot.slane %v10307_v42, 4  ;;  %v10311_v12 = vpop.permute.xlu0 %5280 }
 0x2e7   : > { %4590 = vrot.lane.b32.xlu1 %v8088_v62, %s8700_s6  ;;  %6511 = vmatprep.subr.bf16.mxu1 %v8460_v2  ;;  %v4985_v62 = vld [vmem:[#allocation2 + $0x40] sm:$0xf]  ;;  %v4887_v2 = vrot.slane %v8108_v44, 6  ;;  %s8274_s6 = smul.u32 28, %s11320_s16 }
 0x2e8   : > { %v4273_v39 = vsel %vm11132_vm8, %v4269_v47, %v4270_v40  ;;  %5477 = vrot.lane.b32.xlu0 %v8144_v17, %s11098_s14  ;;  %6512 = vmatpush1.bf16.msra.mxu1 %v8458_v32  ;;  %v4984_v47 = vld [vmem:[#allocation2 + $0x38] sm:$0xf]  ;;  %vm11147_vm8 = vmmov %vm11110_vm2 }
 0x2e9   : > { %v4274_v45 = vsel %vm11133_vm10, %v10216_v26, %v4273_v39  ;;  %v10320_v3 = vpop.permute.xlu1 %4393  ;;  %v8461_v50 = vld [vmem:[#allocation3 + $0x38] ss:$28 sps:$4 sm:$0xff]   ;;  %v8116_v28 = vpack.c.bf16 %v4985_v62, %v4984_v47  ;;  %v4529_v39 = vrot.slane %v10238_v29, 4  ;;  %vm11148_vm10 = vcmask 818176   ;;  %s197_s16 = scalar_lea.vmem %s10949_s4, %s8274_s6 }
 0x2ea   : > { %v8463_v54 = vld [vmem:[#allocation3 + $0x3c] ss:$28 sps:$4 sm:$0xff]   ;;  %4284 = vst [vmem:[#allocation3 + $0xfc] sm:$0xcc] %v4274_v45  ;;  %v4400_v24 = vrot.slane %v10320_v3, 4  ;;  %v10324_v0 = vpop.permute.xlu0 %5410 }
 0x2eb   : > { %4764 = vrot.lane.b32.xlu1 %v4757_v63, %s8702_s8  ;;  %6513 = vmatprep.subr.bf16.mxu1 %v8463_v54  ;;  %v8466_v17 = vld [vmem:[#allocation3 + $0x74] ss:$28 sps:$4 sm:$0xff]  }
 0x2ec   : > { %v4403_v26 = vsel %vm11134_vm12, %v4399_v8, %v4400_v24  ;;  %6514 = vmatpush1.bf16.msra.mxu1 %v8461_v50  ;;  %v8464_v63 = vld [vmem:[#allocation3 + $0x70] ss:$28 sps:$4 sm:$0xff]   ;;  %vm11149_vm12 = vmmov %vm11110_vm2 }
 0x2ed   : > { %v4404_v16 = vsel %vm11135_vm13, %v10228_v27, %v4403_v26  ;;  %v10332_v32 = vpop.permute.xlu1 %4523  ;;  %6515 = vmatprep.subr.bf16.mxu1 %v8466_v17  ;;  %v8469_v27 = vld [vmem:[#allocation3 + $0xac] ss:$28 sps:$4 sm:$0xff]   ;;  %v5017_v17 = vrot.slane %v8116_v28, 6  ;;  %v8124_v26 = vpack.c.bf16 %v5115_v57, %v5114_v18  ;;  %vm11150_vm13 = vcmask 302080  }
 0x2ee   : > { %4414 = vst [vmem:[#allocation3 + $0x150] sm:$0xcc] %v4404_v16  ;;  %v4530_v45 = vrot.slane %v10332_v32, 4  ;;  %v10336_v54 = vpop.permute.xlu0 %3875  ;;  %v5245_v16 = vld [vmem:[#allocation2 + $0x40] sm:$0xf] }
 0x2ef   : > { %v11021_v50 = vrot.slane %v10336_v54, 4  ;;  %4894 = vrot.lane.b32.xlu1 %v4887_v2, %s11112_s21  ;;  %v11019_v2 = vrot.slane %v10260_v22, 4  ;;  %v8467_v10 = vld [vmem:[#allocation3 + $0xa8] ss:$28 sps:$4 sm:$0xff]  }
 0x2f0   : > { %v4533_v44 = vsel %vm11136_vm15, %v4529_v39, %v4530_v45  ;;  %6516 = vmatpush1.bf16.msra.mxu1 %v8464_v63  ;;  %vm11151_vm15 = vmmov %vm11110_vm2 }
 0x2f1   : > { %v4534_v8 = vsel %vm11137_vm3, %v10238_v29, %v4533_v44  ;;  %v3885_v47 = vsel %vm11138_vm9, %v3880_v25, %v11021_v50  ;;  %v4759_v62 = vpop.permute.xlu1 %4758  ;;  %6517 = vmatprep.subr.bf16.mxu1 %v8469_v27  ;;  %v5244_v44 = vld [vmem:[#allocation2 + $0x38] sm:$0xf]  ;;  %v8472_v25 = vld [vmem:[#allocation3 + $0xe4] ss:$28 sps:$4 sm:$0xff]   ;;  %v5147_v27 = vrot.slane %v8124_v26, 6  ;;  %vm11152_vm3 = vcmask 744448   ;;  %vm11153_vm9 = vmmov %vm11110_vm2 }
 0x2f2   : > { %4544 = vst [vmem:[#allocation3 + $0x1a4] sm:$0xcc] %v4534_v8  ;;  %v3886_v39 = vsel %vm11139_vm7, %v10268_v56, %v3885_v47  ;;  %v4766_v63 = vrot.slane %v4759_v62, 4  ;;  %v10353_v29 = vpop.permute.xlu0 %4005  ;;  %v8132_v8 = vpack.c.bf16 %v5245_v16, %v5244_v44  ;;  %v5375_v47 = vld [vmem:[#allocation2 + $0x40] sm:$0xf]  ;;  %vm11154_vm7 = vcmask 228352  }
 0x2f3   : > { %3895 = vst [vmem:[#allocation3 + $0x8] sm:$0xcc] %v3886_v39  ;;  %v11020_v37 = vrot.slane %v10353_v29, 4  ;;  %5024 = vrot.lane.b32.xlu1 %v5017_v17, %s8706_s12  ;;  %v4897_v17 = vrot.slane %v10272_v49, 4  ;;  %v5504_v16 = vld [vmem:[#allocation2 + $0x38] sm:$0xf] }
 0x2f4   : > { %v4770_v18 = vsel %vm11140_vm11, %v4766_v63, %v11019_v2  ;;  %6518 = vmatpush1.bf16.msra.mxu1 %v8467_v10  ;;  %v8470_v63 = vld [vmem:[#allocation3 + $0xe0] ss:$28 sps:$4 sm:$0xff]   ;;  %v5505_v44 = vld [vmem:[#allocation2 + $0x40] sm:$0xf]  ;;  %v5277_v2 = vrot.slane %v8132_v8, 6  ;;  %vm11155_vm11 = vmmov %vm11110_vm2 }
 0x2f5   : > { %v4771_v28 = vsel %vm11141_vm1, %v4759_v62, %v4770_v18  ;;  %v4015_v56 = vsel %vm11142_vm14, %v4010_v15, %v11020_v37  ;;  %v4889_v57 = vpop.permute.xlu1 %4888  ;;  %6519 = vmatprep.subr.bf16.mxu1 %v8472_v25  ;;  %v5374_v18 = vld [vmem:[#allocation2 + $0x38] sm:$0xf]  ;;  %v8475_v15 = vld [vmem:[#allocation3 + $0x11c] ss:$28 sps:$4 sm:$0xff]   ;;  %v5027_v25 = vrot.slane %v10285_v46, 4  ;;  %vm11156_vm1 = vcmask 154624   ;;  %vm11157_vm14 = vmmov %vm11110_vm2 }
 0x2f6   : > { %4781 = vst [vmem:[#allocation3 + $0x24c] sm:$0xcc] %v4771_v28  ;;  %v4016_v39 = vsel %vm11143_vm0, %v10281_v52, %v4015_v56  ;;  %v4896_v10 = vrot.slane %v4889_v57, 4  ;;  %v10369_v62 = vpop.permute.xlu0 %5471  ;;  %v8473_v56 = vld [vmem:[#allocation3 + $0x118] ss:$28 sps:$4 sm:$0xff]   ;;  %v8140_v37 = vpack.c.bf16 %v5375_v47, %v5374_v18  ;;  %vm11158_vm0 = vcmask 728064  }
 0x2f7   : > { %4025 = vst [vmem:[#allocation3 + $0x5c] sm:$0xcc] %v4016_v39  ;;  %5154 = vrot.lane.b32.xlu1 %v5147_v27, %s11027_s29 }
 0x2f8   : > { %v4900_v26 = vsel %vm11110_vm2, %v4896_v10, %v4897_v17  ;;  %6520 = vmatpush1.bf16.msra.mxu1 %v8470_v63  ;;  %v8481_v63 = vld [vmem:[#allocation3 + $0x154] ss:$28 sps:$4 sm:$0xff]  }
 0x2f9   : > { %v4901_v52 = vsel %vm11144_vm4, %v4889_v57, %v4900_v26  ;;  %v5019_v28 = vpop.permute.xlu1 %5018  ;;  %6521 = vmatprep.subr.bf16.mxu1 %v8475_v15  ;;  %v5407_v15 = vrot.slane %v8140_v37, 6  ;;  %v5157_v26 = vrot.slane %v10298_v36, 4  ;;  %vm11159_vm4 = vcmask 900096  }
 0x2fa   : > { %4911 = vst [vmem:[#allocation3 + $0x2a0] sm:$0xcc] %v4901_v52  ;;  %v5026_v39 = vrot.slane %v5019_v28, 4  ;;  %v10377_v27 = vpop.permute.xlu0 %4135  ;;  %v8476_v50 = vld [vmem:[#allocation3 + $0x8] ss:$28 sps:$4 sm:$0xff]  }
 0x2fb   : > { %v8478_v59 = vld [vmem:[#allocation3 + $0xc] ss:$28 sps:$4 sm:$0xff]   ;;  %v4141_v10 = vrot.slane %v10377_v27, 4  ;;  %5284 = vrot.lane.b32.xlu1 %v5277_v2, %s8711_s17  ;;  %v8148_v2 = vpack.c.bf16 %v5505_v44, %v5504_v16 }
 0x2fc   : > { %v5030_v57 = vsel %vm11145_vm5, %v5026_v39, %v5027_v25  ;;  %6522 = vmatpush1.bf16.msra.mxu1 %v8473_v56  ;;  %6593 = vmatprep.subr.bf16.mxu0 %v8478_v59  ;;  %v8479_v56 = vld [vmem:[#allocation3 + $0x150] ss:$28 sps:$4 sm:$0xff]   ;;  %vm11160_vm5 = vmmov %vm11110_vm2 }
 0x2fd   : > { %v5031_v8 = vsel %vm11146_vm6, %v5019_v28, %v5030_v57  ;;  %v4145_v47 = vsel %vm11147_vm8, %v4140_v19, %v4141_v10  ;;  %v5149_v18 = vpop.permute.xlu1 %5148  ;;  %6523 = vmatprep.subr.bf16.mxu1 %v8481_v63  ;;  %6594 = vmatpush1.bf16.msra.mxu0 %v8476_v50  ;;  %v8484_v19 = vld [vmem:[#allocation3 + $0x18c] ss:$28 sps:$4 sm:$0xff]   ;;  %v5537_v44 = vrot.slane %v8148_v2, 6  ;;  %v5287_v63 = vrot.slane %v10311_v12, 4  ;;  %vm11162_vm8 = vmmov %vm11110_vm2 }
 0x2fe   : > { %5041 = vst [vmem:[#allocation3 + $0x2f4] sm:$0xcc] %v5031_v8  ;;  %v4146_v52 = vsel %vm11148_vm10, %v10294_v13, %v4145_v47  ;;  %v5156_v59 = vrot.slane %v5149_v18, 4  ;;  %v10393_v28 = vpop.permute.xlu0 %4265  ;;  %v8482_v47 = vld [vmem:[#allocation3 + $0x188] ss:$28 sps:$4 sm:$0xff]   ;;  %vm11161_vm6 = vcmask 80896  }
 0x2ff   : > { %4155 = vst [vmem:[#allocation3 + $0xb0] sm:$0xcc] %v4146_v52  ;;  %v4271_v39 = vrot.slane %v10393_v28, 4  ;;  %5414 = vrot.lane.b32.xlu1 %v5407_v15, %s11029_s7  ;;  %vm11163_vm10 = vcmask 826368  }
 0x300   : > { %v5160_v37 = vsel %vm11149_vm12, %v5156_v59, %v5157_v26  ;;  %6524 = vmatpush1.bf16.msra.mxu1 %v8479_v56  ;;  %v11023_v59 = vrot.slane %v10324_v0, 4  ;;  %v8485_v56 = vld [vmem:[#allocation3 + $0x1c0] ss:$28 sps:$4 sm:$0xff]   ;;  %vm11164_vm12 = vmmov %vm11110_vm2 }
 0x301   : > { %v5161_v50 = vsel %vm11150_vm13, %v5149_v18, %v5160_v37  ;;  %v4275_v13 = vsel %vm11151_vm15, %v4270_v40, %v4271_v39  ;;  %v5279_v16 = vpop.permute.xlu1 %5278  ;;  %6525 = vmatprep.subr.bf16.mxu1 %v8484_v19  ;;  %v8487_v18 = vld [vmem:[#allocation3 + $0x1c4] ss:$28 sps:$4 sm:$0xff]   ;;  %vm11165_vm13 = vcmask 973824   ;;  %vm11166_vm15 = vmmov %vm11110_vm2 }
 0x302   : > { %5171 = vst [vmem:[#allocation3 + $0x348] sm:$0xcc] %v5161_v50  ;;  %v4276_v57 = vsel %vm11152_vm3, %v10307_v42, %v4275_v13  ;;  %v5286_v8 = vrot.slane %v5279_v16, 4  ;;  %v10409_v15 = vpop.permute.xlu0 %5538  ;;  %v8490_v50 = vld [vmem:[#allocation3 + $0x1fc] ss:$28 sps:$4 sm:$0xff]   ;;  %vm11167_vm3 = vcmask 809984  }
 0x303   : > { %4285 = vst [vmem:[#allocation3 + $0x104] sm:$0xcc] %v4276_v57  ;;  %5544 = vrot.lane.b32.xlu1 %v5537_v44, %s11099_s10 }
 0x304   : > { %v5290_v40 = vsel %vm11153_vm9, %v5286_v8, %v5287_v63  ;;  %6526 = vmatpush1.bf16.msra.mxu1 %v8482_v47  ;;  %vm11169_vm9 = vmmov %vm11110_vm2 }
 0x305   : > { %v5291_v2 = vsel %vm11154_vm7, %v5279_v16, %v5290_v40  ;;  %v5409_v52 = vpop.permute.xlu1 %5408  ;;  %6527 = vmatprep.subr.bf16.mxu1 %v8487_v18  ;;  %v8488_v18 = vld [vmem:[#allocation3 + $0x1f8] ss:$28 sps:$4 sm:$0xff]   ;;  %vm11170_vm7 = vcmask 7168  }
 0x306   : > { %5301 = vst [vmem:[#allocation3 + $0x39c] sm:$0xcc] %v5291_v2  ;;  %v5416_v42 = vrot.slane %v5409_v52, 4  ;;  %v10417_v19 = vpop.permute.xlu0 %4395 }
 0x307   : > { %v4401_v37 = vrot.slane %v10417_v19, 4 }
 0x308   : > { %v5420_v13 = vsel %vm11155_vm11, %v5416_v42, %v11023_v59  ;;  %6528 = vmatpush1.bf16.msra.mxu1 %v8485_v56  ;;  %vm11172_vm11 = vmmov %vm11110_vm2 }
 0x309   : > { %v5421_v44 = vsel %vm11156_vm1, %v5409_v52, %v5420_v13  ;;  %v4405_v16 = vsel %vm11157_vm14, %v4400_v24, %v4401_v37  ;;  %v10429_v57 = vpop.permute.xlu1 %3938  ;;  %6529 = vmatprep.subr.bf16.mxu1 %v8490_v50  ;;  %v8493_v52 = vld [vmem:[#allocation3 + $0x234] ss:$28 sps:$4 sm:$0xff]   ;;  %vm11173_vm1 = vcmask 736256   ;;  %vm11174_vm14 = vmmov %vm11110_vm2 }
 0x30a   : > { %5431 = vst [vmem:[#allocation3 + $0x3f0] sm:$0xcc] %v5421_v44  ;;  %v4406_v8 = vsel %vm11158_vm0, %v10320_v3, %v4405_v16  ;;  %v3944_v47 = vrot.slane %v10429_v57, 4  ;;  %v10434_v40 = vpop.permute.xlu0 %4525  ;;  %v8491_v44 = vld [vmem:[#allocation3 + $0x230] ss:$28 sps:$4 sm:$0xff]   ;;  %vm11175_vm0 = vmmov %vm11163_vm10 }
 0x30b   : > { %4415 = vst [vmem:[#allocation3 + $0x158] sm:$0xcc] %v4406_v8  ;;  %v4531_v2 = vrot.slane %v10434_v40, 4 }
 0x30c   : > { %v3948_v24 = vsel %vm11110_vm2, %v3943_v55, %v3944_v47  ;;  %6530 = vmatpush1.bf16.msra.mxu1 %v8488_v18  ;;  %vm11176_vm2 = vmmov %vm11175_vm0 }
 0x30d   : > { %v3949_v42 = vsel %vm11159_vm4, %v10113_v35, %v3948_v24  ;;  %v4535_v3 = vsel %vm11160_vm5, %v4530_v45, %v4531_v2  ;;  %v4069_v56 = vpop.permute.xlu1 %4068  ;;  %6531 = vmatprep.subr.bf16.mxu1 %v8493_v52  ;;  %v8496_v35 = vld [vmem:[#allocation3 + $0x26c] ss:$28 sps:$4 sm:$0xff]   ;;  %vm11178_vm4 = vmmov %vm11160_vm5  ;;  %vm11179_vm5 = vcmask 89088  }
 0x30e   : > { %3958 = vst [vmem:[#allocation3 + $0x40] sm:$0x33] %v3949_v42  ;;  %v4536_v50 = vsel %vm11161_vm6, %v10332_v32, %v4535_v3  ;;  %v4074_v13 = vrot.slane %v4069_v56, 4  ;;  %v10451_v16 = vpop.permute.xlu0 %4825  ;;  %v8499_v3 = vld [vmem:[#allocation3 + $0x2a4] ss:$28 sps:$4 sm:$0xff]   ;;  %vm11181_vm6 = vmmov %vm11178_vm4 }
 0x30f   : > { %4545 = vst [vmem:[#allocation3 + $0x1ac] sm:$0xcc] %v4536_v50  ;;  %v11024_v55 = vrot.slane %v10451_v16, 4 }
 0x310   : > { %v4078_v8 = vsel %vm11162_vm8, %v4073_v23, %v4074_v13  ;;  %6532 = vmatpush1.bf16.msra.mxu1 %v8491_v44  ;;  %v8494_v23 = vld [vmem:[#allocation3 + $0x268] ss:$28 sps:$4 sm:$0xff]   ;;  %vm11182_vm8 = vcmask 908288  }
 0x311   : > { %v4079_v45 = vsel %vm11163_vm10, %v10131_v4, %v4078_v8  ;;  %v4835_v32 = vsel %vm11164_vm12, %v4830_v14, %v11024_v55  ;;  %v10464_v18 = vpop.permute.xlu1 %4198  ;;  %6533 = vmatprep.subr.bf16.mxu1 %v8496_v35  ;;  %vm11183_vm10 = vmmov %vm11182_vm8 }
 0x312   : > { %4088 = vst [vmem:[#allocation3 + $0x94] sm:$0x33] %v4079_v45  ;;  %v4836_v52 = vsel %vm11165_vm13, %v10202_v38, %v4835_v32  ;;  %v11025_v24 = vrot.slane %v10464_v18, 4  ;;  %v10469_v42 = vpop.permute.xlu0 %4655  ;;  %v11168_v38 = vrot.slane %v10250_v51, 4  ;;  %vm11185_vm12 = vmmov %vm11178_vm4  ;;  %vm11186_vm13 = vcmask 72704  }
 0x313   : > { %4845 = vst [vmem:[#allocation3 + $0x28c] sm:$0x33] %v4836_v52  ;;  %v4661_v4 = vrot.slane %v10469_v42, 4  ;;  %v8497_v52 = vld [vmem:[#allocation3 + $0x2a0] ss:$28 sps:$4 sm:$0xff]  }
 0x314   : > { %v4208_v14 = vsel %vm11166_vm15, %v4203_v33, %v11025_v24  ;;  %6534 = vmatpush1.bf16.msra.mxu1 %v8494_v23  ;;  %v8511_v24 = vld [vmem:[#allocation3 + $0x314] ss:$28 sps:$4 sm:$0xff]   ;;  %vm11187_vm15 = vmmov %vm11178_vm4 }
 0x315   : > { %v4209_v50 = vsel %vm11167_vm3, %v10149_v53, %v4208_v14  ;;  %v4665_v44 = vsel %vm11169_vm9, %v11168_v38, %v4661_v4  ;;  %v10484_v35 = vpop.permute.xlu1 %4328  ;;  %6535 = vmatprep.subr.bf16.mxu1 %v8499_v3  ;;  %v8500_v8 = vld [vmem:[#allocation3 + $0x40] ss:$28 sps:$4 sm:$0xff]   ;;  %v11171_v38 = vrot.slane %v10163_v41, 4  ;;  %vm11188_vm3 = vcmask 318464   ;;  %vm11189_vm9 = vmmov %vm11178_vm4 }
 0x316   : > { %v8502_v45 = vld [vmem:[#allocation3 + $0x44] ss:$28 sps:$4 sm:$0xff]   ;;  %4218 = vst [vmem:[#allocation3 + $0xe8] sm:$0x33] %v4209_v50  ;;  %v4666_v32 = vsel %vm11170_vm7, %v10250_v51, %v4665_v44  ;;  %v4334_v33 = vrot.slane %v10484_v35, 4  ;;  %v4071_v23 = vpop.permute.xlu0 %4070  ;;  %vm11190_vm7 = vcmask 146432  }
 0x317   : > { %4675 = vst [vmem:[#allocation3 + $0x200] sm:$0xcc] %v4666_v32  ;;  %v4075_v53 = vrot.slane %v4071_v23, 4  ;;  %6595 = vmatprep.subr.bf16.mxu0 %v8502_v45  ;;  %v8505_v14 = vld [vmem:[#allocation3 + $0x2dc] ss:$28 sps:$4 sm:$0xff]  }
 0x318   : > { %v4338_v3 = vsel %vm11172_vm11, %v11171_v38, %v4334_v33  ;;  %6536 = vmatpush1.bf16.msra.mxu1 %v8497_v52  ;;  %6596 = vmatpush1.bf16.msra.mxu0 %v8500_v8  ;;  %v8503_v52 = vld [vmem:[#allocation3 + $0x2d8] ss:$28 sps:$4 sm:$0xff]   ;;  %vm11192_vm11 = vmmov %vm11178_vm4 }
 0x319   : > { %v4339_v50 = vsel %vm11173_vm1, %v10163_v41, %v4338_v3  ;;  %v4080_v51 = vsel %vm11174_vm14, %v4074_v13, %v4075_v53  ;;  %v4082_v44 = vsel %vm11175_vm0, %v4071_v23, %v4075_v53  ;;  %v10498_v59 = vpop.permute.xlu1 %4458  ;;  %6537 = vmatprep.subr.bf16.mxu1 %v8505_v14  ;;  %v8506_v45 = vld [vmem:[#allocation3 + $0x78] ss:$28 sps:$4 sm:$0xff]   ;;  %v11177_v53 = vrot.slane %v10176_v61, 4  ;;  %vm11195_vm0 = vmmov %vm11178_vm4 }
 0x31a   : > { %v8508_v32 = vld [vmem:[#allocation3 + $0x7c] ss:$28 sps:$4 sm:$0xff]   ;;  %4348 = vst [vmem:[#allocation3 + $0x13c] sm:$0x33] %v4339_v50  ;;  %v4081_v55 = vsel %vm11176_vm2, %v4069_v56, %v4080_v51  ;;  %4090 = vst [vmem:[#allocation3 + $0xa4] sm:$0x3] %v4082_v44  ;;  %v3878_v8 = vpop.permute.xlu0 %3877 }
 0x31b   : > { %v4464_v38 = vrot.slane %v10498_v59, 4  ;;  %4089 = vst [vmem:[#allocation3 + $0x9c] sm:$0x33] %v4081_v55  ;;  %v3882_v41 = vrot.slane %v3878_v8, 4  ;;  %6597 = vmatprep.subr.bf16.mxu0 %v8508_v32  ;;  %v8514_v13 = vld [vmem:[#allocation3 + $0xb4] ss:$28 sps:$4 sm:$0xff]  }
 0x31c   : > { %v8679_v23 = vld.sshfl [vmem:[%s10948_s3] sm:$0x3 pattern:$0x76325410]  ;;  %6538 = vmatpush1.bf16.msra.mxu1 %v8503_v52  ;;  %6598 = vmatpush1.bf16.msra.mxu0 %v8506_v45  ;;  %v11180_v55 = vrot.slane %v10336_v54, 4  ;;  %vm11193_vm1 = vcmask 891904  }
 0x31d   : > { %v4468_v56 = vsel %vm11178_vm4, %v11177_v53, %v4464_v38  ;;  %v3889_v50 = vsel %vm11182_vm8, %v3878_v8, %v3882_v41  ;;  %v10516_v51 = vpop.permute.xlu1 %4588  ;;  %6539 = vmatprep.subr.bf16.mxu1 %v8511_v24  ;;  %6599 = vmatprep.subr.bf16.mxu0 %v8514_v13  ;;  %v8509_v32 = vld [vmem:[#allocation3 + $0x310] ss:$28 sps:$4 sm:$0xff]   ;;  %v11184_v24 = vrot.slane %v10189_v31, 4  ;;  %v5479_v13 = vrot.slane %v10369_v62, 4  ;;  %vm11194_vm14 = vmmov %vm11193_vm1 }
 0x31e   : > { %v4469_v14 = vsel %vm11179_vm5, %v10176_v61, %v4468_v56  ;;  %v3887_v3 = vsel %vm11181_vm6, %v11180_v55, %v3882_v41  ;;  %3897 = vst [vmem:[#allocation3 + $0x18] sm:$0xc] %v3889_v50  ;;  %v4594_v45 = vrot.slane %v10516_v51, 4  ;;  %v8512_v52 = vld [vmem:[#allocation3 + $0xb0] ss:$28 sps:$4 sm:$0xff]   ;;  %v10521_v61 = vpop.permute.xlu0 %5022  ;;  %6922 = vrot.lane.b32.xlu0 %v8679_v23, %s8718_s28  ;;  %vm11196_vm2 = vcmask 138240   ;;  %vm11197_vm4 = vmmov %vm11195_vm0 }
 0x31f   : > { %4478 = vst [vmem:[#allocation3 + $0x190] sm:$0x33] %v4469_v14  ;;  %v3888_v44 = vsel %vm11183_vm10, %v10336_v54, %v3887_v3  ;;  %v11026_v8 = vrot.slane %v10521_v61, 4  ;;  %v8517_v41 = vld [vmem:[#allocation3 + $0x34c] ss:$28 sps:$4 sm:$0xff]   ;;  %vm11198_vm5 = vcmask 736256   ;;  %vm11201_vm8 = vmmov %vm11195_vm0 }
 0x320   : > { %3896 = vst [vmem:[#allocation3 + $0x10] sm:$0xcc] %v3888_v44  ;;  %v8520_v53 = vld [vmem:[#allocation3 + $0xec] ss:$28 sps:$4 sm:$0xff]   ;;  %v4598_v54 = vsel %vm11185_vm12, %v11184_v24, %v4594_v45  ;;  %6540 = vmatpush1.bf16.msra.mxu1 %v8509_v32  ;;  %6600 = vmatpush1.bf16.msra.mxu0 %v8512_v52  ;;  %vm11199_vm6 = vmmov %vm11198_vm5  ;;  %vm11202_vm10 = vcmask 957440  }
 0x321   : > { %v4599_v56 = vsel %vm11186_vm13, %v10189_v31, %v4598_v54  ;;  %v5032_v23 = vsel %vm11187_vm15, %v5027_v25, %v11026_v8  ;;  %v10537_v14 = vpop.permute.xlu1 %5473  ;;  %v8515_v55 = vld [vmem:[#allocation3 + $0x348] ss:$28 sps:$4 sm:$0xff]   ;;  %6541 = vmatprep.subr.bf16.mxu1 %v8517_v41  ;;  %6601 = vmatprep.subr.bf16.mxu0 %v8520_v53  ;;  %v5546_v41 = vrot.slane %v10409_v15, 4  ;;  %vm11203_vm12 = vmmov %vm11195_vm0  ;;  %vm11204_vm13 = vcmask 818176  }
 0x322   : > { %4608 = vst [vmem:[#allocation3 + $0x1e4] sm:$0x33] %v4599_v56  ;;  %v5033_v3 = vsel %vm11188_vm3, %v10285_v46, %v5032_v23  ;;  %v5480_v50 = vrot.slane %v10537_v14, 4  ;;  %v8518_v44 = vld [vmem:[#allocation3 + $0xe8] ss:$28 sps:$4 sm:$0xff]   ;;  %v4008_v32 = vpop.permute.xlu0 %4007  ;;  %v11191_v46 = vrot.slane %v10353_v29, 4  ;;  %vm11205_vm15 = vmmov %vm11204_vm13 }
 0x323   : > { %v8523_v31 = vld [vmem:[#allocation3 + $0x384] ss:$28 sps:$4 sm:$0xff]   ;;  %5042 = vst [vmem:[#allocation3 + $0x2fc] sm:$0xcc] %v5033_v3  ;;  %v4012_v52 = vrot.slane %v4008_v32, 4  ;;  %vm11207_vm3 = vmmov %vm11195_vm0 }
 0x324   : > { %v8526_v24 = vld [vmem:[#allocation3 + $0x124] ss:$28 sps:$4 sm:$0xff]   ;;  %v5483_v25 = vsel %vm11189_vm9, %v5479_v13, %v5480_v50  ;;  %6542 = vmatpush1.bf16.msra.mxu1 %v8515_v55  ;;  %6602 = vmatpush1.bf16.msra.mxu0 %v8518_v44  ;;  %v8529_v3 = vld [vmem:[#allocation3 + $0x3bc] ss:$28 sps:$4 sm:$0xff]   ;;  %vm11208_vm9 = vcmask 1039360  }
 0x325   : > { %v5484_v53 = vsel %vm11190_vm7, %v10369_v62, %v5483_v25  ;;  %v4017_v54 = vsel %vm11192_vm11, %v11191_v46, %v4012_v52  ;;  %v4019_v56 = vsel %vm11193_vm1, %v4008_v32, %v4012_v52  ;;  %v10552_v23 = vpop.permute.xlu1 %5540  ;;  %6552 = vmatprep.subr.bf16.mxu1 %v8523_v31  ;;  %6603 = vmatprep.subr.bf16.mxu0 %v8526_v24  ;;  %v8521_v44 = vld [vmem:[#allocation3 + $0x380] ss:$28 sps:$4 sm:$0xff]   ;;  %vm11209_vm7 = vmmov %vm11195_vm0  ;;  %vm11210_vm11 = vcmask 228352  }
 0x326   : > { %5494 = vst [vmem:[#allocation3 + $0x428] sm:$0x33] %v5484_v53  ;;  %v4018_v13 = vsel %vm11194_vm14, %v10353_v29, %v4017_v54  ;;  %4027 = vst [vmem:[#allocation3 + $0x6c] sm:$0xc] %v4019_v56  ;;  %v5547_v55 = vrot.slane %v10552_v23, 4  ;;  %v4331_v25 = vpop.permute.xlu0 %4330  ;;  %vm11212_vm14 = vcmask 900096  }
 0x327   : > { %v8524_v62 = vld [vmem:[#allocation3 + $0x120] ss:$28 sps:$4 sm:$0xff]   ;;  %4026 = vst [vmem:[#allocation3 + $0x64] sm:$0xcc] %v4018_v13  ;;  %v4335_v8 = vrot.slane %v4331_v25, 4  ;;  %6544 = vmatmul.mubr.bf16.vlgmr.msra.gmra.mrb[12].mxu1 %v10123_v9  ;;  %v10572_v13 = vld [vmem:[#allocation3 + $0x48] sm:$0xff]  ;;  %vm11211_vm1 = vmmov %vm11195_vm0 }
 0x328   : > { %v8532_v32 = vld [vmem:[#allocation3 + $0x15c] ss:$28 sps:$4 sm:$0xff]   ;;  %v5550_v31 = vsel %vm11195_vm0, %v5546_v41, %v5547_v55  ;;  %6553 = vmatpush1.bf16.msra.mxu1 %v8521_v44  ;;  %6604 = vmatpush1.bf16.msra.mxu0 %v8524_v62  ;;  %v8538_v44 = vld [vmem:[#allocation3 + $0x194] ss:$28 sps:$4 sm:$0xff]   ;;  %vm11213_vm0 = vmmov %vm11212_vm14 }
 0x329   : > { %v5551_v29 = vsel %vm11196_vm2, %v10409_v15, %v5550_v31  ;;  %v4340_v52 = vsel %vm11197_vm4, %v4334_v33, %v4335_v8  ;;  %v4342_v24 = vsel %vm11198_vm5, %v4331_v25, %v4335_v8  ;;  %v10567_v53 = vpop.permute.xlu1 %4955  ;;  %6554 = vmatprep.subr.bf16.mxu1 %v8529_v3  ;;  %6605 = vmatprep.subr.bf16.mxu0 %v8532_v32  ;;  %v8527_v54 = vld [vmem:[#allocation3 + $0x3b8] ss:$28 sps:$4 sm:$0xff]   ;;  %v11200_v3 = vrot.slane %v10117_v58, 4  ;;  %vm11214_vm2 = vmmov %vm11211_vm1 }
 0x32a   : > { %5561 = vst [vmem:[#allocation3 + $0x444] sm:$0xcc] %v5551_v29  ;;  %v4341_v46 = vsel %vm11199_vm6, %v10484_v35, %v4340_v52  ;;  %4350 = vst [vmem:[#allocation3 + $0x14c] sm:$0x3] %v4342_v24  ;;  %v4961_v41 = vrot.slane %v10567_v53, 4  ;;  %v4138_v15 = vpop.permute.xlu0 %4137  ;;  %6584 = vmatprep.mubr.bf16.mxu1 %v10572_v13  ;;  %vm11215_vm4 = vcmask 744448  }
 0x32b   : > { %v8530_v56 = vld [vmem:[#allocation3 + $0x158] ss:$28 sps:$4 sm:$0xff]   ;;  %4349 = vst [vmem:[#allocation3 + $0x144] sm:$0x33] %v4341_v46  ;;  %v4142_v33 = vrot.slane %v4138_v15, 4  ;;  %vm11216_vm5 = vcmask 1041408  }
 0x32c   : > { %v8535_v8 = vld [vmem:[#allocation3 + $0x3f4] ss:$28 sps:$4 sm:$0xff]   ;;  %v4965_v35 = vsel %vm11201_vm8, %v11200_v3, %v4961_v41  ;;  %6555 = vmatpush1.bf16.msra.mxu1 %v8527_v54  ;;  %6606 = vmatpush1.bf16.msra.mxu0 %v8530_v56  ;;  %v5726_v29 = vld [vmem:[#allocation3 + $0x460] sm:$0x33]  ;;  %v8541_v56 = vld [vmem:[#allocation3 + $0x1cc] ss:$28 sps:$4 sm:$0xff]  }
 0x32d   : > { %v4966_v62 = vsel %vm11202_vm10, %v10117_v58, %v4965_v35  ;;  %v4147_v25 = vsel %vm11203_vm12, %v4141_v10, %v4142_v33  ;;  %v4149_v32 = vsel %vm11204_vm13, %v4138_v15, %v4142_v33  ;;  %v10586_v31 = vpop.permute.xlu1 %4762  ;;  %6556 = vmatprep.subr.bf16.mxu1 %v8535_v8  ;;  %6607 = vmatprep.subr.bf16.mxu0 %v8538_v44  ;;  %v8533_v46 = vld [vmem:[#allocation3 + $0x3f0] ss:$28 sps:$4 sm:$0xff]   ;;  %v11206_v15 = vrot.slane %v10260_v22, 4  ;;  %vm11217_vm6 = vmmov %vm11216_vm5 }
 0x32e   : > { %4975 = vst [vmem:[#allocation3 + $0x2e0] sm:$0x33] %v4966_v62  ;;  %v4148_v52 = vsel %vm11205_vm15, %v10377_v27, %v4147_v25  ;;  %4157 = vst [vmem:[#allocation3 + $0xc0] sm:$0xc] %v4149_v32  ;;  %v4768_v24 = vrot.slane %v10586_v31, 4  ;;  %v10591_v54 = vpop.permute.xlu0 %5282  ;;  %v7904_v62 = vcombine.high %v5726_v29, %v5726_v29  ;;  %v7903_v25 = vcombine.low %v5726_v29, %v5726_v29 }
 0x32f   : > { %v8536_v58 = vld [vmem:[#allocation3 + $0x190] ss:$28 sps:$4 sm:$0xff]   ;;  %4156 = vst [vmem:[#allocation3 + $0xb8] sm:$0xcc] %v4148_v52  ;;  %v5288_v10 = vrot.slane %v10591_v54, 4  ;;  %vm11218_vm8 = vmmov %vm11215_vm4  ;;  %vm11220_vm12 = vcmask 965632  }
 0x330   : > { %v4772_v33 = vsel %vm11207_vm3, %v11206_v15, %v4768_v24  ;;  %6557 = vmatpush1.bf16.msra.mxu1 %v8533_v46  ;;  %6608 = vmatpush1.bf16.msra.mxu0 %v8536_v58  ;;  %v8539_v46 = vld [vmem:[#allocation3 + $0x1c8] ss:$28 sps:$4 sm:$0xff]   ;;  %vm11219_vm10 = vmmov %vm11211_vm1  ;;  %vm11222_vm15 = vcmask 728064  }
 0x331   : > { %v4773_v27 = vsel %vm11208_vm9, %v10260_v22, %v4772_v33  ;;  %v5292_v8 = vsel %vm11209_vm7, %v5287_v63, %v5288_v10  ;;  %v3941_v44 = vpop.permute.xlu1 %3940  ;;  %6609 = vmatprep.subr.bf16.mxu0 %v8541_v56  ;;  %v8542_v3 = vld [vmem:[#allocation3 + $0x428] ss:$28 sps:$4 sm:$0xff]   ;;  %v8674_v63 = vld [vmem:[%s10947_s2] sm:$0x3f]  ;;  %vm11221_vm13 = vmmov %vm11211_vm1  ;;  %vm11224_vm9 = vcmask 556032  }
 0x332   : > { %v8544_v35 = vld [vmem:[#allocation3 + $0x42c] ss:$28 sps:$4 sm:$0xff]   ;;  %4782 = vst [vmem:[#allocation3 + $0x254] sm:$0xcc] %v4773_v27  ;;  %v5293_v32 = vsel %vm11210_vm11, %v10311_v12, %v5292_v8  ;;  %v3945_v52 = vrot.slane %v3941_v44, 4  ;;  %v4268_v58 = vpop.permute.xlu0 %4267  ;;  %v5731_v56 = vcombine.high %v8674_v63, %v8674_v63  ;;  %vm11223_vm3 = vmmov %vm11222_vm15  ;;  %vm11227_vm11 = vcmask 310272  }
 0x333   : > { %5302 = vst [vmem:[#allocation3 + $0x3a4] sm:$0xcc] %v5293_v32  ;;  %v4272_v22 = vrot.slane %v4268_v58, 4  ;;  %6558 = vmatprep.subr.bf16.mxu1 %v8544_v35  ;;  %v8547_v15 = vld [vmem:[#allocation3 + $0x204] ss:$28 sps:$4 sm:$0xff]   ;;  %vm11226_vm7 = vmmov %vm11211_vm1 }
 0x334   : > { %v3950_v29 = vsel %vm11211_vm1, %v3944_v47, %v3945_v52  ;;  %v3952_v33 = vsel %vm11212_vm14, %v3941_v44, %v3945_v52  ;;  %6559 = vmatpush1.bf16.msra.mxu1 %v8542_v3  ;;  %6610 = vmatpush1.bf16.msra.mxu0 %v8539_v46  ;;  %v6491_v47 = vsel %vm11217_vm6, %v7903_v25, 0  ;;  %v8545_v3 = vld [vmem:[#allocation3 + $0x200] ss:$28 sps:$4 sm:$0xff]   ;;  %v8552_v52 = vld [vmem:[#allocation3 + $0x14] ss:$28 sps:$4 sm:$0xff]   ;;  %v10629_v46 = vrot.slane %v5731_v56, %v9006_v30 }
 0x335   : > { %v3951_v12 = vsel %vm11213_vm0, %v10429_v57, %v3950_v29  ;;  %3960 = vst [vmem:[#allocation3 + $0x50] sm:$0x3] %v3952_v33  ;;  %v4277_v27 = vsel %vm11214_vm2, %v4271_v39, %v4272_v22  ;;  %v4279_v8 = vsel %vm11215_vm4, %v4268_v58, %v4272_v22  ;;  %v10621_v35 = vpop.permute.xlu1 %4892  ;;  %6611 = vmatprep.subr.bf16.mxu0 %v8547_v15  ;;  %v8550_v56 = vld [vmem:[#allocation3 + $0x10] ss:$28 sps:$4 sm:$0xff]   ;;  %v11225_v33 = vrot.slane %v10224_v48, 4  ;;  %vm11230_vm0 = vmmov %vm11211_vm1 }
 0x336   : > { %7910 = vmatprep.subr.msk.bf16.mxu1 %vm11216_vm5, %v7904_v62  ;;  %3959 = vst [vmem:[#allocation3 + $0x48] sm:$0x33] %v3951_v12  ;;  %v4278_v44 = vsel %vm11218_vm8, %v10393_v28, %v4277_v27  ;;  %4287 = vst [vmem:[#allocation3 + $0x114] sm:$0xc] %v4279_v8  ;;  %v4898_v57 = vrot.slane %v10621_v35, 4  ;;  %v4398_v32 = vpop.permute.xlu0 %4397  ;;  %vm11228_vm14 = vcmask 138240  }
 0x337   : > { %4286 = vst [vmem:[#allocation3 + $0x10c] sm:$0xcc] %v4278_v44  ;;  %v4402_v39 = vrot.slane %v4398_v32, 4  ;;  %v8559_v29 = vld [vmem:[#allocation3 + $0x274] ss:$28 sps:$4 sm:$0xff]   ;;  %vm11231_vm2 = vcmask 236544   ;;  %vm11232_vm4 = vmmov %vm11230_vm0 }
 0x338   : > { %v4902_v62 = vsel %vm11219_vm10, %v4897_v17, %v4898_v57  ;;  %6561 = vmatpush1.bf16.msra.mxu1 %v6491_v47  ;;  %6612 = vmatpush1.bf16.msra.mxu0 %v8545_v3  ;;  %vm11233_vm5 = vcmask 80896   ;;  %vm11235_vm8 = vmmov %vm11230_vm0  ;;  %vm11236_vm10 = vcmask 302080  }
 0x339   : > { %v4903_v28 = vsel %vm11220_vm12, %v10272_v49, %v4902_v62  ;;  %v4407_v25 = vsel %vm11221_vm13, %v4401_v37, %v4402_v39  ;;  %v4409_v58 = vsel %vm11222_vm15, %v4398_v32, %v4402_v39  ;;  %v10642_v22 = vpop.permute.xlu1 %5085  ;;  %6675 = vmatprep.subr.bf16.mxu1 %v8552_v52  ;;  %v8554_v30 = vld [vmem:[#allocation3 + $0x238] ss:$28 sps:$4 sm:$0xff]   ;;  %v8565_v62 = vld [vmem:[#allocation3 + $0x84] ss:$28 sps:$4 sm:$0xff]   ;;  %vm11234_vm6 = vmmov %vm11233_vm5  ;;  %vm11238_vm13 = vcmask 7168  }
 0x33a   : > { %v8556_v15 = vld [vmem:[#allocation3 + $0x23c] ss:$28 sps:$4 sm:$0xff]   ;;  %4912 = vst [vmem:[#allocation3 + $0x2a8] sm:$0xcc] %v4903_v28  ;;  %v4408_v17 = vsel %vm11223_vm3, %v10417_v19, %v4407_v25  ;;  %4417 = vst [vmem:[#allocation3 + $0x168] sm:$0xc] %v4409_v58  ;;  %v10647_v49 = vpop.permute.xlu0 %5542 }
 0x33b   : > { %v5091_v63 = vrot.slane %v10642_v22, 4  ;;  %4416 = vst [vmem:[#allocation3 + $0x160] sm:$0xcc] %v4408_v17  ;;  %v5548_v37 = vrot.slane %v10647_v49, 4  ;;  %7911 = vmatmul.mubr.msk.bf16.vlgmr.msra.gmra.mrb[12].mxu1 %vm11224_vm9, %v10629_v46  ;;  %6613 = vmatprep.subr.bf16.mxu0 %v8556_v15  ;;  %vm11237_vm12 = vmmov %vm11230_vm0  ;;  %vm11242_vm9 = vcmask 809984  }
 0x33c   : > { %6614 = vmatpush1.bf16.msra.mxu0 %v8554_v30  ;;  %6676 = vmatpush1.bf16.msra.mxu1 %v8550_v56  ;;  %vm11239_vm15 = vmmov %vm11238_vm13 }
 0x33d   : > { %v5095_v19 = vsel %vm11226_vm7, %v11225_v33, %v5091_v63  ;;  %v5552_v27 = vsel %vm11211_vm1, %v5547_v55, %v5548_v37  ;;  %v10664_v8 = vpop.permute.xlu1 %5215  ;;  %6615 = vmatprep.subr.bf16.mxu0 %v8559_v29  ;;  %v8560_v47 = vld [vmem:[#allocation3 + $0x48] ss:$28 sps:$4 sm:$0xff]   ;;  %6707 = vmatprep.mubr.bf16.mxu1 %v10139_v7  ;;  %v11229_v55 = vrot.slane %v10154_v11, 4  ;;  %v8563_v33 = vld [vmem:[#allocation3 + $0x80] ss:$28 sps:$4 sm:$0xff]   ;;  %vm11241_vm3 = vmmov %vm11230_vm0  ;;  %vm11246_vm1 = vcmask 973824  }
 0x33e   : > { %v5096_v12 = vsel %vm11227_vm11, %v10224_v48, %v5095_v19  ;;  %v8562_v44 = vld [vmem:[#allocation3 + $0x4c] ss:$28 sps:$4 sm:$0xff]   ;;  %v5553_v3 = vsel %vm11228_vm14, %v10552_v23, %v5552_v27  ;;  %v5221_v32 = vrot.slane %v10664_v8, 4  ;;  %v4528_v39 = vpop.permute.xlu0 %4527  ;;  %v8571_v19 = vld [vmem:[#allocation3 + $0x2e4] ss:$28 sps:$4 sm:$0xff]   ;;  %vm11243_vm7 = vmmov %vm11242_vm9 }
 0x33f   : > { %5105 = vst [vmem:[#allocation3 + $0x334] sm:$0x33] %v5096_v12  ;;  %v8557_v48 = vld [vmem:[#allocation3 + $0x270] ss:$28 sps:$4 sm:$0xff]   ;;  %5562 = vst [vmem:[#allocation3 + $0x44c] sm:$0xcc] %v5553_v3  ;;  %6677 = vmatprep.subr.bf16.mxu1 %v8562_v44 }
 0x340   : > { %v4532_v52 = vrot.slane %v4528_v39, 4  ;;  %v5225_v28 = vsel %vm11230_vm0, %v11229_v55, %v5221_v32  ;;  %6616 = vmatpush1.bf16.msra.mxu0 %v8557_v48  ;;  %6678 = vmatpush1.bf16.msra.mxu1 %v8560_v47  ;;  %vm11245_vm11 = vmmov %vm11230_vm0 }
 0x341   : > { %v5226_v25 = vsel %vm11231_vm2, %v10154_v11, %v5225_v28  ;;  %v10681_v30 = vpop.permute.xlu1 %5152  ;;  %6679 = vmatprep.subr.bf16.mxu1 %v8565_v62  ;;  %v8566_v15 = vld [vmem:[#allocation3 + $0x2a8] ss:$28 sps:$4 sm:$0xff]   ;;  %v11240_v28 = vrot.slane %v10464_v18, 4  ;;  %vm11247_vm14 = vmmov %vm11246_vm1  ;;  %vm11249_vm2 = vcmask 220160  }
 0x342   : > { %v4537_v23 = vsel %vm11232_vm4, %v4531_v2, %v4532_v52  ;;  %v4539_v58 = vsel %vm11233_vm5, %v4528_v39, %v4532_v52  ;;  %v8568_v17 = vld [vmem:[#allocation3 + $0x2ac] ss:$28 sps:$4 sm:$0xff]   ;;  %5235 = vst [vmem:[#allocation3 + $0x388] sm:$0x33] %v5226_v25  ;;  %v5158_v29 = vrot.slane %v10681_v30, 4  ;;  %v4658_v11 = vpop.permute.xlu0 %4657  ;;  %vm11250_vm4 = vmmov %vm11230_vm0  ;;  %vm11251_vm5 = vcmask 957440  }
 0x343   : > { %v4538_v56 = vsel %vm11234_vm6, %v10434_v40, %v4537_v23  ;;  %4547 = vst [vmem:[#allocation3 + $0x1bc] sm:$0xc] %v4539_v58  ;;  %v4662_v12 = vrot.slane %v4658_v11, 4  ;;  %6617 = vmatprep.subr.bf16.mxu0 %v8568_v17  ;;  %v8574_v2 = vld [vmem:[#allocation3 + $0xbc] ss:$28 sps:$4 sm:$0xff]   ;;  %vm11252_vm6 = vmmov %vm11251_vm5 }
 0x344   : > { %4546 = vst [vmem:[#allocation3 + $0x1b4] sm:$0xcc] %v4538_v56  ;;  %v5162_v27 = vsel %vm11235_vm8, %v5157_v26, %v5158_v29  ;;  %6618 = vmatpush1.bf16.msra.mxu0 %v8566_v15  ;;  %6680 = vmatpush1.bf16.msra.mxu1 %v8563_v33  ;;  %v8569_v39 = vld [vmem:[#allocation3 + $0x2e0] ss:$28 sps:$4 sm:$0xff]   ;;  %v8572_v52 = vld [vmem:[#allocation3 + $0xb8] ss:$28 sps:$4 sm:$0xff]   ;;  %vm11254_vm8 = vmmov %vm11230_vm0 }
 0x345   : > { %v5163_v40 = vsel %vm11236_vm10, %v10298_v36, %v5162_v27  ;;  %v4667_v47 = vsel %vm11237_vm12, %v4661_v4, %v4662_v12  ;;  %v4669_v44 = vsel %vm11238_vm13, %v4658_v11, %v4662_v12  ;;  %v4201_v3 = vpop.permute.xlu1 %4200  ;;  %6619 = vmatprep.subr.bf16.mxu0 %v8571_v19  ;;  %6681 = vmatprep.subr.bf16.mxu1 %v8574_v2  ;;  %v11248_v12 = vrot.slane %v10246_v6, 4  ;;  %vm11256_vm12 = vmmov %vm11230_vm0 }
 0x346   : > { %5172 = vst [vmem:[#allocation3 + $0x350] sm:$0xcc] %v5163_v40  ;;  %v4668_v48 = vsel %vm11239_vm15, %v10469_v42, %v4667_v47  ;;  %4677 = vst [vmem:[#allocation3 + $0x210] sm:$0xc] %v4669_v44  ;;  %v4205_v26 = vrot.slane %v4201_v3, 4  ;;  %v4828_v62 = vpop.permute.xlu0 %4827  ;;  %v11244_v42 = vrot.slane %v10451_v16, 4 }
 0x347   : > { %4676 = vst [vmem:[#allocation3 + $0x208] sm:$0xcc] %v4668_v48  ;;  %v4832_v36 = vrot.slane %v4828_v62, 4  ;;  %v8577_v55 = vld [vmem:[#allocation3 + $0x31c] ss:$28 sps:$4 sm:$0xff]   ;;  %vm11255_vm10 = vcmask 154624  }
 0x348   : > { %v4210_v4 = vsel %vm11241_vm3, %v11240_v28, %v4205_v26  ;;  %v4212_v25 = vsel %vm11242_vm9, %v4201_v3, %v4205_v26  ;;  %6620 = vmatpush1.bf16.msra.mxu0 %v8569_v39  ;;  %6682 = vmatpush1.bf16.msra.mxu1 %v8572_v52  ;;  %v8575_v11 = vld [vmem:[#allocation3 + $0x318] ss:$28 sps:$4 sm:$0xff]   ;;  %vm11257_vm13 = vcmask 310272   ;;  %vm11259_vm3 = vmmov %vm11230_vm0  ;;  %vm11260_vm9 = vcmask 146432  }
 0x349   : > { %v4211_v23 = vsel %vm11243_vm7, %v10464_v18, %v4210_v4  ;;  %4220 = vst [vmem:[#allocation3 + $0xf8] sm:$0x3] %v4212_v25  ;;  %v4837_v58 = vsel %vm11245_vm11, %v11244_v42, %v4832_v36  ;;  %v4839_v15 = vsel %vm11246_vm1, %v4828_v62, %v4832_v36  ;;  %v10709_v17 = vpop.permute.xlu1 %5345  ;;  %6621 = vmatprep.subr.bf16.mxu0 %v8577_v55  ;;  %v8583_v52 = vld [vmem:[#allocation3 + $0x38c] ss:$28 sps:$4 sm:$0xff]   ;;  %vm11258_vm15 = vmmov %vm11257_vm13  ;;  %vm11262_vm11 = vcmask 236544  }
 0x34a   : > { %4219 = vst [vmem:[#allocation3 + $0xf0] sm:$0x33] %v4211_v23  ;;  %v4838_v56 = vsel %vm11247_vm14, %v10451_v16, %v4837_v58  ;;  %4847 = vst [vmem:[#allocation3 + $0x29c] sm:$0x3] %v4839_v15  ;;  %v5351_v33 = vrot.slane %v10709_v17, 4  ;;  %v4958_v19 = vpop.permute.xlu0 %4957 }
 0x34b   : > { %4846 = vst [vmem:[#allocation3 + $0x294] sm:$0x33] %v4838_v56  ;;  %v4962_v18 = vrot.slane %v4958_v19, 4  ;;  %v8581_v58 = vld [vmem:[#allocation3 + $0x388] ss:$28 sps:$4 sm:$0xff]   ;;  %vm11261_vm7 = vmmov %vm11230_vm0 }
 0x34c   : > { %v5355_v2 = vsel %vm11230_vm0, %v11248_v12, %v5351_v33  ;;  %6622 = vmatpush1.bf16.msra.mxu0 %v8575_v11  ;;  %vm11263_vm1 = vmmov %vm11262_vm11 }
 0x34d   : > { %v5356_v27 = vsel %vm11249_vm2, %v10246_v6, %v5355_v2  ;;  %v4967_v16 = vsel %vm11250_vm4, %v4961_v41, %v4962_v18  ;;  %v4969_v40 = vsel %vm11251_vm5, %v4958_v19, %v4962_v18  ;;  %v10725_v47 = vpop.permute.xlu1 %5412  ;;  %v8578_v44 = vld [vmem:[#allocation3 + $0x350] ss:$28 sps:$4 sm:$0xff]   ;;  %v11253_v41 = vrot.slane %v10324_v0, 4  ;;  %vm11264_vm14 = vmmov %vm11230_vm0 }
 0x34e   : > { %v8580_v3 = vld [vmem:[#allocation3 + $0x354] ss:$28 sps:$4 sm:$0xff]   ;;  %5365 = vst [vmem:[#allocation3 + $0x3dc] sm:$0x33] %v5356_v27  ;;  %v4968_v48 = vsel %vm11252_vm6, %v10567_v53, %v4967_v16  ;;  %4977 = vst [vmem:[#allocation3 + $0x2f0] sm:$0x3] %v4969_v40  ;;  %v5088_v39 = vpop.permute.xlu0 %5087 }
 0x34f   : > { %v5418_v26 = vrot.slane %v10725_v47, 4  ;;  %4976 = vst [vmem:[#allocation3 + $0x2e8] sm:$0x33] %v4968_v48  ;;  %v5092_v6 = vrot.slane %v5088_v39, 4  ;;  %6623 = vmatprep.subr.bf16.mxu0 %v8580_v3  ;;  %v8587_v16 = vld [vmem:[#allocation3 + $0x128] ss:$28 sps:$4 sm:$0xff]   ;;  %vm11267_vm4 = vmmov %vm11259_vm3 }
 0x350   : > { %6624 = vmatpush1.bf16.msra.mxu0 %v8578_v44  ;;  %vm11265_vm0 = vcmask 89088   ;;  %v5727_v48 = vld [vmem:[#allocation3 + $0x468] sm:$0x33]  ;;  %vm11268_vm5 = vcmask 220160  }
 0x351   : > { %v5422_v62 = vsel %vm11254_vm8, %v11253_v41, %v5418_v26  ;;  %v5097_v53 = vsel %vm11256_vm12, %v5091_v63, %v5092_v6  ;;  %v5099_v55 = vsel %vm11257_vm13, %v5088_v39, %v5092_v6  ;;  %v10741_v28 = vpop.permute.xlu1 %5475  ;;  %6634 = vmatprep.subr.bf16.mxu0 %v8583_v52  ;;  %v8584_v4 = vld [vmem:[#allocation3 + $0xf0] ss:$28 sps:$4 sm:$0xff]   ;;  %vm11266_vm2 = vmmov %vm11265_vm0 }
 0x352   : > { %v5423_v36 = vsel %vm11255_vm10, %v10324_v0, %v5422_v62  ;;  %v8586_v25 = vld [vmem:[#allocation3 + $0xf4] ss:$28 sps:$4 sm:$0xff]   ;;  %v5098_v23 = vsel %vm11258_vm15, %v10642_v22, %v5097_v53  ;;  %5107 = vst [vmem:[#allocation3 + $0x344] sm:$0x3] %v5099_v55  ;;  %v5481_v42 = vrot.slane %v10741_v28, 4  ;;  %v5218_v0 = vpop.permute.xlu0 %5217  ;;  %vm11269_vm6 = vmmov %vm11268_vm5  ;;  %vm11271_vm10 = vcmask 72704  }
 0x353   : > { %5432 = vst [vmem:[#allocation3 + $0x3f8] sm:$0xcc] %v5423_v36  ;;  %5106 = vst [vmem:[#allocation3 + $0x33c] sm:$0x33] %v5098_v23  ;;  %v5222_v15 = vrot.slane %v5218_v0, 4  ;;  %6683 = vmatprep.subr.bf16.mxu1 %v8586_v25  ;;  %6626 = vmatmul.mubr.bf16.vlgmr.msra.gmra.mrb[8].mxu0 %v10123_v9  ;;  %v7906_v25 = vcombine.high %v5727_v48, %v5727_v48 }
 0x354   : > { %v8589_v63 = vld [vmem:[#allocation3 + $0x12c] ss:$28 sps:$4 sm:$0xff]   ;;  %v5485_v56 = vsel %vm11259_vm3, %v5480_v50, %v5481_v42  ;;  %6635 = vmatpush1.bf16.msra.mxu0 %v8581_v58  ;;  %6684 = vmatpush1.bf16.msra.mxu1 %v8584_v4  ;;  %v8593_v53 = vld [vmem:[#allocation3 + $0x160] ss:$28 sps:$4 sm:$0xff]   ;;  %vm11270_vm8 = vmmov %vm11259_vm3 }
 0x355   : > { %v5486_v22 = vsel %vm11260_vm9, %v10537_v14, %v5485_v56  ;;  %v5227_v11 = vsel %vm11261_vm7, %v5221_v32, %v5222_v15  ;;  %v5229_v19 = vsel %vm11262_vm11, %v5218_v0, %v5222_v15  ;;  %v4461_v18 = vpop.permute.xlu1 %4460  ;;  %6685 = vmatprep.subr.bf16.mxu1 %v8589_v63  ;;  %v8590_v12 = vld [vmem:[#allocation3 + $0x3c0] ss:$28 sps:$4 sm:$0xff]   ;;  %6666 = vmatprep.mubr.bf16.mxu0 %v10572_v13  ;;  %vm11272_vm12 = vmmov %vm11271_vm10  ;;  %vm11277_vm7 = vcmask 1039360  }
 0x356   : > { %v8592_v2 = vld [vmem:[#allocation3 + $0x3c4] ss:$28 sps:$4 sm:$0xff]   ;;  %5495 = vst [vmem:[#allocation3 + $0x430] sm:$0x33] %v5486_v22  ;;  %v5228_v50 = vsel %vm11263_vm1, %v10664_v8, %v5227_v11  ;;  %5237 = vst [vmem:[#allocation3 + $0x398] sm:$0x3] %v5229_v19  ;;  %v5348_v14 = vpop.permute.xlu0 %5347  ;;  %v7905_v56 = vcombine.low %v5727_v48, %v5727_v48 }
 0x357   : > { %v4465_v27 = vrot.slane %v4461_v18, 4  ;;  %5236 = vst [vmem:[#allocation3 + $0x390] sm:$0x33] %v5228_v50  ;;  %v5352_v40 = vrot.slane %v5348_v14, 4  ;;  %6636 = vmatprep.subr.bf16.mxu0 %v8592_v2  ;;  %v8595_v32 = vld [vmem:[#allocation3 + $0x164] ss:$28 sps:$4 sm:$0xff]   ;;  %vm11273_vm13 = vmmov %vm11259_vm3 }
 0x358   : > { %6637 = vmatpush1.bf16.msra.mxu0 %v8590_v12  ;;  %6686 = vmatpush1.bf16.msra.mxu1 %v8587_v16  ;;  %vm11274_vm15 = vmmov %vm11260_vm9  ;;  %vm11279_vm1 = vcmask 1041408   ;;  %v11285_v48 = vrot.slane %v10521_v61, 4 }
 0x359   : > { %v4470_v44 = vsel %vm11264_vm14, %v4464_v38, %v4465_v27  ;;  %v4472_v3 = vsel %vm11265_vm0, %v4461_v18, %v4465_v27  ;;  %v5357_v39 = vsel %vm11267_vm4, %v5351_v33, %v5352_v40  ;;  %v5359_v6 = vsel %vm11268_vm5, %v5348_v14, %v5352_v40  ;;  %v4591_v52 = vpop.permute.xlu1 %4590  ;;  %6687 = vmatprep.subr.bf16.mxu1 %v8595_v32  ;;  %vm11275_vm3 = vmmov %vm11260_vm9 }
 0x35a   : > { %v4471_v8 = vsel %vm11266_vm2, %v10498_v59, %v4470_v44  ;;  %4480 = vst [vmem:[#allocation3 + $0x1a0] sm:$0x3] %v4472_v3  ;;  %v8596_v41 = vld [vmem:[#allocation3 + $0x3f8] ss:$28 sps:$4 sm:$0xff]   ;;  %v5358_v38 = vsel %vm11269_vm6, %v10709_v17, %v5357_v39  ;;  %5367 = vst [vmem:[#allocation3 + $0x3ec] sm:$0x3] %v5359_v6  ;;  %v5478_v55 = vpop.permute.xlu0 %5477 }
 0x35b   : > { %v8598_v62 = vld [vmem:[#allocation3 + $0x3fc] ss:$28 sps:$4 sm:$0xff]   ;;  %4479 = vst [vmem:[#allocation3 + $0x198] sm:$0x33] %v4471_v8  ;;  %v4595_v36 = vrot.slane %v4591_v52, 4  ;;  %v5482_v59 = vrot.slane %v5478_v55, 4  ;;  %vm11276_vm9 = vmmov %vm11267_vm4 }
 0x35c   : > { %5366 = vst [vmem:[#allocation3 + $0x3e4] sm:$0x33] %v5358_v38  ;;  %6638 = vmatprep.subr.bf16.mxu0 %v8598_v62  ;;  %6688 = vmatpush1.bf16.msra.mxu1 %v8593_v53  ;;  %vm11278_vm11 = vmmov %vm11277_vm7  ;;  %vm11282_vm2 = vcmask 965632   ;;  %v8611_v44 = vld [vmem:[#allocation3 + $0x18] ss:$28 sps:$4 sm:$0xff]   ;;  %vm11284_vm5 = vcmask 556032  }
 0x35d   : > { %v4600_v33 = vsel %vm11270_vm8, %v4594_v45, %v4595_v36  ;;  %v4602_v4 = vsel %vm11271_vm10, %v4591_v52, %v4595_v36  ;;  %6639 = vmatpush1.bf16.msra.mxu0 %v8596_v41  ;;  %v5487_v17 = vsel %vm11273_vm13, %v5481_v42, %v5482_v59  ;;  %v5489_v58 = vsel %vm11274_vm15, %v5478_v55, %v5482_v59  ;;  %v4765_v0 = vpop.permute.xlu1 %4764  ;;  %v8599_v15 = vld [vmem:[#allocation3 + $0x430] ss:$28 sps:$4 sm:$0xff]   ;;  %vm11280_vm14 = vmmov %vm11279_vm1  ;;  %v8612_v41 = vld [vmem:[#allocation3 + $0x208] ss:$28 sps:$4 sm:$0xff]  }
 0x35e   : > { %v4601_v23 = vsel %vm11272_vm12, %v10516_v51, %v4600_v33  ;;  %4610 = vst [vmem:[#allocation3 + $0x1f4] sm:$0x3] %v4602_v4  ;;  %v8601_v63 = vld [vmem:[#allocation3 + $0x434] ss:$28 sps:$4 sm:$0xff]   ;;  %v5488_v45 = vsel %vm11275_vm3, %v10741_v28, %v5487_v17  ;;  %5497 = vst [vmem:[#allocation3 + $0x440] sm:$0x3] %v5489_v58 }
 0x35f   : > { %4609 = vst [vmem:[#allocation3 + $0x1ec] sm:$0x33] %v4601_v23  ;;  %v4769_v22 = vrot.slane %v4765_v0, 4  ;;  %5496 = vst [vmem:[#allocation3 + $0x438] sm:$0x33] %v5488_v45  ;;  %6640 = vmatprep.subr.bf16.mxu0 %v8601_v63  ;;  %v6497_v12 = vsel %vm11280_vm14, %v7905_v56, 0 }
 0x360   : > { %vm11281_vm0 = vmmov %vm11267_vm4  ;;  %v8615_v3 = vld [vmem:[#allocation3 + $0x210] ss:$28 sps:$4 sm:$0xff]   ;;  %vm11287_vm8 = vcmask 318464   ;;  %vm11290_vm13 = vcmask 302080   ;;  %v8621_v4 = vld [vmem:[#allocation3 + $0x88] ss:$28 sps:$4 sm:$0xff]  }
 0x361   : > { %v4774_v51 = vsel %vm11276_vm9, %v4768_v24, %v4769_v22  ;;  %v4776_v42 = vsel %vm11277_vm7, %v4765_v0, %v4769_v22  ;;  %6641 = vmatpush1.bf16.msra.mxu0 %v8599_v15  ;;  %v4895_v19 = vpop.permute.xlu1 %4894  ;;  %vm11283_vm4 = vmmov %vm11282_vm2  ;;  %v8616_v62 = vld [vmem:[#allocation3 + $0x50] ss:$28 sps:$4 sm:$0xff]   ;;  %v8625_v23 = vld [vmem:[#allocation3 + $0x280] ss:$28 sps:$4 sm:$0xff]   ;;  %vm11293_vm9 = vcmask 228352  }
 0x362   : > { %v4775_v11 = vsel %vm11278_vm11, %v10586_v31, %v4774_v51  ;;  %4784 = vst [vmem:[#allocation3 + $0x264] sm:$0xc] %v4776_v42  ;;  %7912 = vmatprep.subr.msk.bf16.mxu0 %vm11279_vm1, %v7906_v25  ;;  %v8603_v18 = vld [vmem:[#allocation3 + $0x198] ss:$28 sps:$4 sm:$0xff]   ;;  %v4899_v2 = vrot.slane %v4895_v19, 4  ;;  %vm11286_vm6 = vmmov %vm11281_vm0  ;;  %vm11296_vm1 = vcmask 154624  }
 0x363   : > { %v8605_v28 = vld [vmem:[#allocation3 + $0x19c] ss:$28 sps:$4 sm:$0xff]   ;;  %4783 = vst [vmem:[#allocation3 + $0x25c] sm:$0xcc] %v4775_v11  ;;  %vm11288_vm10 = vmmov %vm11287_vm8 }
 0x364   : > { %6689 = vmatprep.subr.bf16.mxu1 %v8605_v28  ;;  %v4904_v24 = vsel %vm11281_vm0, %v4898_v57, %v4899_v2  ;;  %v4906_v50 = vsel %vm11282_vm2, %v4895_v19, %v4899_v2  ;;  %v8614_v57 = vld [vmem:[#allocation3 + $0x20c] ss:$28 sps:$4 sm:$0xff]   ;;  %vm11289_vm12 = vmmov %vm11281_vm0  ;;  %v8624_v25 = vld [vmem:[#allocation3 + $0x27c] ss:$28 sps:$4 sm:$0xff]   ;;  %vm11298_vm2 = vcmask 138240  }
 0x365   : > { %6643 = vmatpush1.bf16.msra.mxu0 %v6497_v12  ;;  %6690 = vmatpush1.bf16.msra.mxu1 %v8603_v18  ;;  %v8607_v31 = vld [vmem:[#allocation3 + $0x1d8] ss:$28 sps:$4 sm:$0xff]   ;;  %v4905_v27 = vsel %vm11283_vm4, %v10621_v35, %v4904_v24  ;;  %4914 = vst [vmem:[#allocation3 + $0x2b8] sm:$0xc] %v4906_v50  ;;  %v5025_v16 = vpop.permute.xlu1 %5024  ;;  %vm11291_vm15 = vmmov %vm11290_vm13  ;;  %v8626_v63 = vld [vmem:[#allocation3 + $0xc0] ss:$28 sps:$4 sm:$0xff]  }
 0x366   : > { %v8608_v14 = vld [vmem:[#allocation3 + $0x1d0] ss:$28 sps:$4 sm:$0xff]   ;;  %4913 = vst [vmem:[#allocation3 + $0x2b0] sm:$0xcc] %v4905_v27  ;;  %v5029_v32 = vrot.slane %v5025_v16, 4  ;;  %8177 = vmatprep.subr.bf16.mxu0 %v8607_v31  ;;  %vm11292_vm3 = vmmov %vm11281_vm0 }
 0x367   : > { %v8610_v40 = vld [vmem:[#allocation3 + $0x1d4] ss:$28 sps:$4 sm:$0xff]   ;;  %vm11294_vm7 = vmmov %vm11293_vm9  ;;  %v8639_v50 = vld [vmem:[#allocation3 + $0x324] ss:$28 sps:$4 sm:$0xff]  }
 0x368   : > { %7913 = vmatmul.mubr.msk.bf16.vlgmr.msra.gmra.mrb[8].mxu0 %vm11284_vm5, %v10629_v46  ;;  %6691 = vmatprep.subr.bf16.mxu1 %v8610_v40  ;;  %v5034_v8 = vsel %vm11286_vm6, %v11285_v48, %v5029_v32  ;;  %v5036_v35 = vsel %vm11287_vm8, %v5025_v16, %v5029_v32  ;;  %v8622_v15 = vld [vmem:[#allocation3 + $0x278] ss:$28 sps:$4 sm:$0xff]   ;;  %vm11295_vm11 = vmmov %vm11281_vm0  ;;  %v8636_v24 = vld [vmem:[#allocation3 + $0x130] ss:$28 sps:$4 sm:$0xff]   ;;  %vm11300_vm5 = vmmov 0   ;;  %vm11301_vm6 = vcmask 1041408  }
 0x369   : > { %6692 = vmatpush1.bf16.msra.mxu1 %v8608_v14  ;;  %8178 = vmatpush3.bf16.msra.mxu0 %v8611_v44  ;;  %v5035_v39 = vsel %vm11288_vm10, %v10521_v61, %v5034_v8  ;;  %5044 = vst [vmem:[#allocation3 + $0x30c] sm:$0xc] %v5036_v35  ;;  %v5155_v6 = vpop.permute.xlu1 %5154  ;;  %v8620_v36 = vld [vmem:[#allocation3 + $0x248] ss:$28 sps:$4 sm:$0xff]   ;;  %vm11297_vm14 = vmmov %vm11296_vm1  ;;  %v8631_v19 = vld [vmem:[#allocation3 + $0xf8] ss:$28 sps:$4 sm:$0xff]  }
 0x36a   : > { %6693 = vmatprep.subr.bf16.mxu1 %v8614_v57  ;;  %8179 = vmatprep.subr.bf16.mxu0 %v8615_v3  ;;  %5043 = vst [vmem:[#allocation3 + $0x304] sm:$0xcc] %v5035_v39  ;;  %v5159_v52 = vrot.slane %v5155_v6, 4  ;;  %v8619_v38 = vld [vmem:[#allocation3 + $0x244] ss:$28 sps:$4 sm:$0xff]   ;;  %vm11299_vm4 = vmmov %vm11298_vm2  ;;  %v10828_v44 = vld [vmem:[#allocation2] sm:$0xff] }
 0x36b   : > { %6789 = vmatprep.mubr.bf16.mxu0 %v10139_v7  ;;  %v8617_v7 = vld [vmem:[#allocation3 + $0x240] ss:$28 sps:$4 sm:$0xff]   ;;  %v8640_v31 = vld [vmem:[#allocation3 + $0x328] ss:$28 sps:$4 sm:$0xff]   ;;  %v8654_v35 = vld [vmem:[#allocation3 + $0x3d0] ss:$28 sps:$4 sm:$0xff]  }
 0x36c   : > { %v5164_v53 = vsel %vm11289_vm12, %v5158_v29, %v5159_v52  ;;  %v5166_v55 = vsel %vm11290_vm13, %v5155_v6, %v5159_v52  ;;  %v8630_v45 = vld [vmem:[#allocation3 + $0x2b8] ss:$28 sps:$4 sm:$0xff]   ;;  %v8641_v27 = vld [vmem:[#allocation3 + $0x168] ss:$28 sps:$4 sm:$0xff]   ;;  %v8646_v40 = vld [vmem:[#allocation3 + $0x1a0] ss:$28 sps:$4 sm:$0xff]  }
 0x36d   : > { %6694 = vmatpush1.bf16.msra.mxu1 %v8612_v41  ;;  %8180 = vmatpush3.bf16.msra.mxu0 %v8616_v62  ;;  %v5165_v61 = vsel %vm11291_vm15, %v10681_v30, %v5164_v53  ;;  %5174 = vst [vmem:[#allocation3 + $0x360] sm:$0xc] %v5166_v55  ;;  %v5285_v59 = vpop.permute.xlu1 %5284  ;;  %v8629_v56 = vld [vmem:[#allocation3 + $0x2b4] ss:$28 sps:$4 sm:$0xff]   ;;  %v8653_v48 = vld [vmem:[#allocation3 + $0x3cc] ss:$28 sps:$4 sm:$0xff]   ;;  %vm11302_vm8 = vmmov %vm11301_vm6 }
 0x36e   : > { %6695 = vmatprep.subr.bf16.mxu1 %v8619_v38  ;;  %8181 = vmatprep.subr.bf16.mxu0 %v8620_v36  ;;  %5173 = vst [vmem:[#allocation3 + $0x358] sm:$0xcc] %v5165_v61  ;;  %v5289_v33 = vrot.slane %v5285_v59, 4  ;;  %v8627_v11 = vld [vmem:[#allocation3 + $0x2b0] ss:$28 sps:$4 sm:$0xff]   ;;  %vm11303_vm10 = vmmov %vm11301_vm6  ;;  %vm11304_vm12 = vcmask 556032  }
 0x36f   : > { %v8651_v8 = vld [vmem:[#allocation3 + $0x3c8] ss:$28 sps:$4 sm:$0xff]   ;;  %v5728_v52 = vld [vmem:[#allocation3 + $0x470] sm:$0x33]  ;;  %vm11305_vm13 = vmmov %vm11304_vm12 }
 0x370   : > { %v5294_v29 = vsel %vm11292_vm3, %v5288_v10, %v5289_v33  ;;  %v5296_v17 = vsel %vm11293_vm9, %v5285_v59, %v5289_v33  ;;  %v8635_v28 = vld [vmem:[#allocation3 + $0x2f0] ss:$28 sps:$4 sm:$0xff]   ;;  %v7908_v62 = vcombine.high %v5728_v52, %v5728_v52  ;;  %v7907_v38 = vcombine.low %v5728_v52, %v5728_v52  ;;  %v8665_v36 = vld [vmem:[#allocation3 + $0x478] ss:$0 sps:$4 sm:$0x33]   ;;  %vm11306_vm15 = vmmov %vm11281_vm0 }
 0x371   : > { %6696 = vmatpush1.bf16.msra.mxu1 %v8617_v7  ;;  %8182 = vmatpush3.bf16.msra.mxu0 %v8621_v4  ;;  %v5295_v30 = vsel %vm11294_vm7, %v10591_v54, %v5294_v29  ;;  %5304 = vst [vmem:[#allocation3 + $0x3b4] sm:$0xc] %v5296_v17  ;;  %v5415_v58 = vpop.permute.xlu1 %5414  ;;  %v8634_v18 = vld [vmem:[#allocation3 + $0x2ec] ss:$28 sps:$4 sm:$0xff]   ;;  %v6509_v59 = vsel %vm11303_vm10, %v8665_v36, 0  ;;  %vm11307_vm3 = vmmov %vm11281_vm0  ;;  %vm6924_vm9 = vcmask 64512  }
 0x372   : > { %6697 = vmatprep.subr.bf16.mxu1 %v8624_v25  ;;  %8183 = vmatprep.subr.bf16.mxu0 %v8625_v23  ;;  %5303 = vst [vmem:[#allocation3 + $0x3ac] sm:$0xcc] %v5295_v30  ;;  %v5419_v0 = vrot.slane %v5415_v58, 4  ;;  %v8632_v2 = vld [vmem:[#allocation3 + $0x2e8] ss:$28 sps:$4 sm:$0xff]   ;;  %v6503_v61 = vsel %vm11302_vm8, %v7907_v38, 0  ;;  %vm11308_vm7 = vmmov %vm11281_vm0 }
 0x373   : > { %v10871_v36 = vld [vmem:[%s8924_s20 + $0x4] sm:$0xff] }
 0x374   : > { %v5424_v10 = vsel %vm11295_vm11, %v5418_v26, %v5419_v0  ;;  %v5426_v22 = vsel %vm11296_vm1, %v5415_v58, %v5419_v0  ;;  %v8645_v14 = vld [vmem:[#allocation3 + $0x360] ss:$28 sps:$4 sm:$0xff]   ;;  %vm11309_vm11 = vmmov %vm11281_vm0 }
 0x375   : > { %6698 = vmatpush1.bf16.msra.mxu1 %v8622_v15  ;;  %8184 = vmatpush3.bf16.msra.mxu0 %v8626_v63  ;;  %v5425_v54 = vsel %vm11297_vm14, %v10725_v47, %v5424_v10  ;;  %5434 = vst [vmem:[#allocation3 + $0x408] sm:$0xc] %v5426_v22  ;;  %v5545_v51 = vpop.permute.xlu1 %5544  ;;  %v8644_v16 = vld [vmem:[#allocation3 + $0x35c] ss:$28 sps:$4 sm:$0xff]   ;;  %vm11310_vm1 = vmmov %vm11281_vm0 }
 0x376   : > { %6699 = vmatprep.subr.bf16.mxu1 %v8629_v56  ;;  %8185 = vmatprep.subr.bf16.mxu0 %v8630_v45  ;;  %5433 = vst [vmem:[#allocation3 + $0x400] sm:$0xcc] %v5425_v54  ;;  %v5549_v42 = vrot.slane %v5545_v51, 4  ;;  %vm11311_vm14 = vmmov %vm11281_vm0 }
 0x378   : > { %v5554_v26 = vsel %vm11281_vm0, %v5548_v37, %v5549_v42  ;;  %v5556_v12 = vsel %vm11298_vm2, %v5545_v51, %v5549_v42  ;;  %v8637_v37 = vld [vmem:[#allocation3 + $0x320] ss:$28 sps:$4 sm:$0xff]   ;;  %v8650_v3 = vld [vmem:[#allocation3 + $0x398] ss:$28 sps:$4 sm:$0xff]   ;;  %vm11312_vm2 = vmmov %vm11301_vm6 }
 0x379   : > { %6700 = vmatpush1.bf16.msra.mxu1 %v8627_v11  ;;  %8186 = vmatpush3.bf16.msra.mxu0 %v8631_v19  ;;  %v5555_v47 = vsel %vm11299_vm4, %v10647_v49, %v5554_v26  ;;  %5564 = vst [vmem:[#allocation3 + $0x45c] sm:$0xc] %v5556_v12  ;;  %v8642_v49 = vld [vmem:[#allocation3 + $0x358] ss:$28 sps:$4 sm:$0xff]   ;;  %v8647_v57 = vld [vmem:[#allocation3 + $0x390] ss:$28 sps:$4 sm:$0xff]   ;;  %vm11313_vm4 = vmmov %vm11312_vm2 }
 0x37a   : > { %6701 = vmatprep.subr.bf16.mxu1 %v8634_v18  ;;  %8187 = vmatprep.subr.bf16.mxu0 %v8635_v28  ;;  %5563 = vst [vmem:[#allocation3 + $0x454] sm:$0xcc] %v5555_v47  ;;  %v8649_v32 = vld [vmem:[#allocation3 + $0x394] ss:$28 sps:$4 sm:$0xff]   ;;  %vm11315_vm8 = vmmov %vm11312_vm2 }
 0x37b   : > { %vm11316_vm10 = vmmov %vm11312_vm2 }
 0x37c   : > { %v8658_v6 = vld [vmem:[#allocation3 + $0x408] ss:$28 sps:$4 sm:$0xff]  }
 0x37d   : > { %6702 = vmatpush1.bf16.msra.mxu1 %v8632_v2  ;;  %8188 = vmatpush3.bf16.msra.mxu0 %v8636_v24  ;;  %v8657_v39 = vld [vmem:[#allocation3 + $0x404] ss:$28 sps:$4 sm:$0xff]  }
 0x37e   : > { %6703 = vmatprep.subr.bf16.mxu1 %v8639_v50  ;;  %8189 = vmatprep.subr.bf16.mxu0 %v8640_v31 }
 0x380   : > { %v8662_v55 = vld [vmem:[#allocation3 + $0x440] ss:$28 sps:$4 sm:$0xff]  }
 0x381   : > { %6704 = vmatpush1.bf16.msra.mxu1 %v8637_v37  ;;  %8190 = vmatpush3.bf16.msra.mxu0 %v8641_v27  ;;  %v8661_v41 = vld [vmem:[#allocation3 + $0x43c] ss:$28 sps:$4 sm:$0xff]  }
 0x382   : > { %6705 = vmatprep.subr.bf16.mxu1 %v8644_v16  ;;  %8191 = vmatprep.subr.bf16.mxu0 %v8645_v14  ;;  %v8659_v53 = vld [vmem:[#allocation3 + $0x438] ss:$28 sps:$4 sm:$0xff]  }
 0x385   : > { %6706 = vmatpush1.bf16.msra.mxu1 %v8642_v49  ;;  %8192 = vmatpush3.bf16.msra.mxu0 %v8646_v40 }
 0x386   : > { %6716 = vmatprep.subr.bf16.mxu1 %v8649_v32  ;;  %8223 = vmatprep.subr.bf16.mxu0 %v10828_v44 }
 0x388   : > { %6790 = vmatmul.mubr.bf16.vlgmr.msra.gmra.mrb[12].mxu0 %v10123_v9  ;;  %6708 = vmatmul.mubr.bf16.vlgmr.msra.gmra.mrb[16].mxu1 %v10123_v9  ;;  %v8655_v9 = vld [vmem:[#allocation3 + $0x400] ss:$28 sps:$4 sm:$0xff]  }
 0x389   : > { %6717 = vmatpush1.bf16.msra.mxu1 %v8647_v57  ;;  %8224 = vmatpush3.bf16.msra.mxu0 %v8650_v3 }
 0x38a   : > { %6718 = vmatprep.subr.bf16.mxu1 %v8653_v48  ;;  %8225 = vmatprep.subr.bf16.mxu0 %v10828_v44 }
 0x38b   : > { %6748 = vmatprep.mubr.bf16.mxu1 %v10572_v13  ;;  %8233 = vmatprep.mubr.msk.bf16.mxu0 %vm11300_vm5, %v10828_v44 }
 0x38d   : > { %6719 = vmatpush1.bf16.msra.mxu1 %v8651_v8  ;;  %8226 = vmatpush3.bf16.msra.mxu0 %v8654_v35 }
 0x38e   : > { %6720 = vmatprep.subr.bf16.mxu1 %v8657_v39  ;;  %8227 = vmatprep.subr.bf16.mxu0 %v10828_v44 }
 0x390   : > { %v10853_v10 = vpop.permute.xlu0 %6922 }
 0x391   : > { %6721 = vmatpush1.bf16.msra.mxu1 %v8655_v9  ;;  %8228 = vmatpush3.bf16.msra.mxu0 %v8658_v6 }
 0x392   : > { %6722 = vmatprep.subr.bf16.mxu1 %v8661_v41  ;;  %8229 = vmatprep.subr.bf16.mxu0 %v10828_v44 }
 0x395   : > { %6723 = vmatpush1.bf16.msra.mxu1 %v8659_v53  ;;  %8230 = vmatpush3.bf16.msra.mxu0 %v8662_v55  ;;  %v10874_v53 = vld [vmem:[%s8924_s20 + $0xc] sm:$0xff] }
 0x396   : > { %7914 = vmatprep.subr.msk.bf16.mxu1 %vm11301_vm6, %v7908_v62  ;;  %8231 = vmatprep.subr.bf16.mxu0 %v10828_v44  ;;  %v10882_v55 = vcombine.high %v10874_v53, %v10874_v53  ;;  %vm11314_vm6 = vmmov %vm11312_vm2 }
 0x399   : > { %6725 = vmatpush1.bf16.msra.mxu1 %v6503_v61  ;;  %8232 = vmatpush3.bf16.msra.mxu0 %v6509_v59  ;;  %v10885_v61 = vld [vmem:[%s8924_s20 + $0x14] sm:$0xff] }
 0x39c   : > { %7915 = vmatmul.mubr.msk.bf16.vlgmr.msra.gmra.mrb[16].mxu1 %vm11304_vm12, %v10629_v46  ;;  %8234 = vmatmul.mubr.msk.bf16.vlgmr.msra.gmra.mrb[16].mxu0 %vm11305_vm13, %v10629_v46  ;;  %vm7113_vm12 = vcmask 31744   ;;  %vm11317_vm13 = vmmov %vm11312_vm2 }
 0x39d   : > { %6982 = vmatprep.mubr.bf16.mxu0 %v10572_v13  ;;  %7023 = vmatprep.mubr.bf16.mxu1 %v10572_v13 }
 0x40e   : > { %v6586_v33 = vpop.f32.mrb[12].mxu1 }
 0x40f   : > { %v6837_v7 = vmax.f32 %v6586_v33, 0.0  ;;  %v6588_v4 = vpop.f32.mrb[13].mxu1 }
 0x410   : > { %v6838_v25 = vmax.f32 %v6588_v4, 0.0  ;;  %v6590_v23 = vpop.f32.mrb[14].mxu1 }
 0x411   : > { %v6844_v29 = vmul.f32 %v9876_v20, %v6837_v7  ;;  %v6591_v17 = vpop.f32.mrb[15].mxu1  ;;  %v6902_v23 = vpack.c.bf16 %v10874_v53, %v10874_v53 }
 0x412   : > { %v6845_v30 = vmul.f32 %v9879_v21, %v6838_v25  ;;  %v6900_v25 = vpack.c.bf16 %v10871_v36, %v10871_v36 }
 0x413   : > { %v6858_v58 = vrot.slane %v6844_v29, 4 }
 0x414   : > { %v6859_v0 = vrot.slane %v6845_v30, 4  ;;  %v6903_v30 = vpack.c.bf16 %v10882_v55, %v10882_v55 }
 0x415   : > { %6872 = vst [vmem:[#allocation2 + $0x8] sm:$0xf0] %v6858_v58  ;;  %v10898_v58 = vcombine.high %v10885_v61, %v10885_v61 }
 0x416   : > { %6873 = vst [vmem:[#allocation2 + $0x10] sm:$0xf0] %v6859_v0 }
 0x41c   : > { %v6883_v15 = vld [vmem:[#allocation2 + $0x8] sm:$0xff] }
 0x41d   : > { %v6884_v46 = vld [vmem:[#allocation2 + $0x10] sm:$0xff]  ;;  %v6907_v63 = vpack.c.bf16 %v6883_v15, %v6883_v15  ;;  %v7118_v15 = vsel %vm11313_vm4, %v6900_v25, 0 }
 0x41e   : > { %v6908_v56 = vpack.c.bf16 %v6884_v46, %v6884_v46  ;;  %v7124_v46 = vsel %vm11315_vm8, %v6902_v23, 0 }
 0x41f   : > { %v6930_v45 = vsel %vm11306_vm15, %v6907_v63, 0  ;;  %v6905_v63 = vpack.c.bf16 %v10898_v58, %v10898_v58  ;;  %vm11318_vm15 = vmmov %vm11312_vm2 }
 0x420   : > { %7917 = vmatprep.subr.msk.bf16.mxu0 %vm11307_vm3, %v6908_v56  ;;  %v10911_v56 = vld [vmem:[%s8924_s20 + $0x1c] sm:$0xf] }
 0x421   : > { %6951 = vmatpush1.bf16.msra.mxu0 %v6930_v45  ;;  %v6904_v45 = vpack.c.bf16 %v10885_v61, %v10885_v61 }
 0x424   : > { %7918 = vmatmul.mubr.msk.bf16.vlgmr.msra.gmra.mrb[20].mxu0 %vm6924_vm9, %v10853_v10 }
 0x425   : > { %7064 = vmatprep.mubr.bf16.mxu0 %v10572_v13 }
 0x43b   : > { %v6668_v20 = vpop.f32.mrb[8].mxu0 }
 0x43c   : > { %v6839_v21 = vmax.f32 %v6668_v20, 0.0  ;;  %v6670_v22 = vpop.f32.mrb[9].mxu0  ;;  %v6906_v20 = vpack.c.bf16 %v10911_v56, %v10911_v56 }
 0x43d   : > { %v6840_v54 = vmax.f32 %v6670_v22, 0.0  ;;  %v6672_v51 = vpop.f32.mrb[10].mxu0  ;;  %v8676_v22 = vld [vmem:[%s10948_s3] sm:$0x3] }
 0x43e   : > { %v6846_v42 = vmul.f32 %v9919_v43, %v6839_v21  ;;  %v6673_v11 = vpop.f32.mrb[11].mxu0  ;;  %v7130_v21 = vsel %vm11317_vm13, %v6904_v45, 0 }
 0x43f   : > { %v6847_v19 = vmul.f32 %v9922_v1, %v6840_v54 }
 0x440   : > { %v6860_v18 = vrot.slane %v6846_v42, 4 }
 0x441   : > { %v6861_v28 = vrot.slane %v6847_v19, 4 }
 0x442   : > { %6874 = vst [vmem:[#allocation2 + $0x18] sm:$0xf0] %v6860_v18 }
 0x443   : > { %6875 = vst [vmem:[#allocation2 + $0x20] sm:$0xf0] %v6861_v28 }
 0x449   : > { %v6885_v26 = vld [vmem:[#allocation2 + $0x18] sm:$0xff] }
 0x44a   : > { %v6886_v12 = vld [vmem:[#allocation2 + $0x20] sm:$0xff]  ;;  %v6909_v47 = vpack.c.bf16 %v6885_v26, %v6885_v26 }
 0x44b   : > { %v6910_v2 = vpack.c.bf16 %v6886_v12, %v6886_v12 }
 0x44c   : > { %v6936_v24 = vsel %vm11308_vm7, %v6909_v47, 0 }
 0x44d   : > { %7919 = vmatprep.subr.msk.bf16.mxu1 %vm11309_vm11, %v6910_v2 }
 0x44e   : > { %6992 = vmatpush1.bf16.msra.mxu1 %v6936_v24 }
 0x44f   : > { %8237 = vmatprep.subr.bf16.mxu1 %v10828_v44 }
 0x451   : > { %7920 = vmatmul.mubr.msk.bf16.vlgmr.msra.gmra.mrb[20].mxu1 %vm6924_vm9, %v10853_v10 }
 0x452   : > { %8239 = vmatprep.mubr.msk.bf16.mxu1 %vm11300_vm5, %v10828_v44 }
 0x45b   : > { %v8193_v43 = vpop.f32.mrb[12].mxu0 }
 0x45c   : > { %v8194_v1 = vpop.f32.mrb[13].mxu0 }
 0x45d   : > { %v8195_v50 = vadd.f32 %v8194_v1, %v8193_v43  ;;  %v8196_v31 = vpop.f32.mrb[14].mxu0 }
 0x45e   : > { %v8197_v37 = vpop.f32.mrb[15].mxu0 }
 0x46f   : > { %v6750_v27 = vpop.f32.mrb[16].mxu1  ;;  %v6831_v16 = vpop.f32.mrb[16].mxu0 }
 0x470   : > { %v6841_v14 = vmax.f32 %v6750_v27, 0.0  ;;  %v6832_v49 = vadd.f32 %v8195_v50, %v6831_v16  ;;  %v6752_v40 = vpop.f32.mrb[17].mxu1  ;;  %v8235_v32 = vpop.f32.mrb[17].mxu0 }
 0x471   : > { %v6842_v57 = vmax.f32 %v6752_v40, 0.0  ;;  %v6754_v3 = vpop.f32.mrb[18].mxu1  ;;  %v6834_v48 = vpop.f32.mrb[18].mxu0 }
 0x472   : > { %v6848_v8 = vmul.f32 %v10015_v60, %v6841_v14  ;;  %v6843_v35 = vmax.f32 %v6832_v49, 0.0  ;;  %v6755_v39 = vpop.f32.mrb[19].mxu1  ;;  %v8236_v9 = vpop.f32.mrb[19].mxu0  ;;  %v10878_v60 = vcombine.high %v10871_v36, %v10871_v36 }
 0x473   : > { %v6849_v6 = vmul.f32 %v10018_v5, %v6842_v57 }
 0x474   : > { %v6862_v52 = vrot.slane %v6848_v8, 4  ;;  %v6850_v41 = vmul.f32 %v10058_v34, %v6843_v35  ;;  %v6901_v4 = vpack.c.bf16 %v10878_v60, %v10878_v60 }
 0x475   : > { %v6863_v62 = vrot.slane %v6849_v6, 4 }
 0x476   : > { %6876 = vst [vmem:[#allocation2 + $0x28] sm:$0xf0] %v6862_v52  ;;  %v6864_v38 = vrot.slane %v6850_v41, 4 }
 0x477   : > { %6877 = vst [vmem:[#allocation2 + $0x30] sm:$0xf0] %v6863_v62 }
 0x478   : > { %6878 = vst [vmem:[#allocation2 + $0x38] sm:$0xf0] %v6864_v38 }
 0x47d   : > { %v6887_v5 = vld [vmem:[#allocation2 + $0x28] sm:$0xff] }
 0x47e   : > { %v6888_v34 = vld [vmem:[#allocation2 + $0x30] sm:$0xff]  ;;  %v6911_v59 = vpack.c.bf16 %v6887_v5, %v6887_v5 }
 0x47f   : > { %v6912_v33 = vpack.c.bf16 %v6888_v34, %v6888_v34  ;;  %v6889_v7 = vld [vmem:[#allocation2 + $0x38] sm:$0xff] }
 0x480   : > { %v6942_v29 = vsel %vm11310_vm1, %v6911_v59, 0  ;;  %v6913_v17 = vpack.c.bf16 %v6889_v7, %v6889_v7 }
 0x481   : > { %7921 = vmatprep.subr.msk.bf16.mxu0 %vm11311_vm14, %v6912_v33 }
 0x482   : > { %7033 = vmatpush1.bf16.msra.mxu0 %v6942_v29  ;;  %v6948_v0 = vsel %vm11281_vm0, %v6913_v17, 0 }
 0x483   : > { %8238 = vmatpush3.bf16.msra.mxu1 %v6948_v0  ;;  %7924 = vmatprep.subr.msk.bf16.mxu0 %vm11312_vm2, %v6901_v4 }
 0x484   : > { %7926 = vmatprep.subr.msk.bf16.mxu1 %vm11314_vm6, %v6903_v30 }
 0x485   : > { %7922 = vmatmul.mubr.msk.bf16.vlgmr.msra.gmra.mrb[24].mxu0 %vm6924_vm9, %v10853_v10 }
 0x486   : > { %8240 = vmatmul.mubr.msk.bf16.vlgmr.msra.gmra.mrb[24].mxu1 %vm6924_vm9, %v10853_v10  ;;  %7139 = vmatpush1.bf16.msra.mxu0 %v7118_v15  ;;  %v7136_v10 = vsel %vm11318_vm15, %v6906_v20, 0 }
 0x487   : > { %7180 = vmatpush1.bf16.msra.mxu1 %v7124_v46  ;;  %7170 = vmatprep.mubr.bf16.mxu0 %v10572_v13 }
 0x488   : > { %7211 = vmatprep.mubr.bf16.mxu1 %v10572_v13  ;;  %7928 = vmatprep.subr.msk.bf16.mxu0 %vm11316_vm10, %v6905_v63 }
 0x489   : > { %8243 = vmatprep.subr.bf16.mxu1 %v10828_v44 }
 0x48d   : > { %7925 = vmatmul.mubr.msk.bf16.vlgmr.msra.gmra.mrb[28].mxu0 %vm7113_vm12, %v8676_v22 }
 0x48e   : > { %7927 = vmatmul.mubr.msk.bf16.vlgmr.msra.gmra.mrb[28].mxu1 %vm7113_vm12, %v8676_v22  ;;  %7221 = vmatpush1.bf16.msra.mxu0 %v7130_v21 }
 0x48f   : > { %8244 = vmatpush3.bf16.msra.mxu1 %v7136_v10  ;;  %7252 = vmatprep.mubr.bf16.mxu0 %v10572_v13 }
 0x490   : > { %8245 = vmatprep.mubr.msk.bf16.mxu1 %vm11300_vm5, %v10828_v44 }
 0x495   : > { %7929 = vmatmul.mubr.msk.bf16.vlgmr.msra.gmra.mrb[32].mxu0 %vm7113_vm12, %v8676_v22 }
 0x496   : > { %8246 = vmatmul.mubr.msk.bf16.vlgmr.msra.gmra.mrb[32].mxu1 %vm7113_vm12, %v8676_v22 }
 0x4f7   : > { %v6984_v54 = vpop.f32.mrb[20].mxu0 }
 0x4f8   : > { %v6986_v51 = vpop.f32.mrb[21].mxu0 }
 0x4f9   : > { %v6988_v42 = vpop.f32.mrb[22].mxu0 }
 0x4fa   : > { %v6989_v11 = vpop.f32.mrb[23].mxu0 }
 0x524   : > { %v7025_v19 = vpop.f32.mrb[20].mxu1 }
 0x525   : > { %v7027_v18 = vpop.f32.mrb[21].mxu1 }
 0x526   : > { %v7029_v28 = vpop.f32.mrb[22].mxu1 }
 0x527   : > { %v7030_v26 = vpop.f32.mrb[23].mxu1 }
 0x558   : > { %v7066_v12 = vpop.f32.mrb[24].mxu0 }
 0x559   : > { %v7068_v47 = vpop.f32.mrb[25].mxu0  ;;  %v7107_v2 = vpop.f32.mrb[24].mxu1 }
 0x55a   : > { %v7070_v24 = vpop.f32.mrb[26].mxu0  ;;  %v8241_v43 = vpop.f32.mrb[25].mxu1 }
 0x55b   : > { %v7071_v13 = vpop.f32.mrb[27].mxu0  ;;  %v7110_v1 = vpop.f32.mrb[26].mxu1 }
 0x55c   : > { %v8242_v50 = vpop.f32.mrb[27].mxu1 }
 0x560   : > { %v7172_v44 = vpop.f32.mrb[28].mxu0 }
 0x561   : > { %v7173_v31 = vadd.f32 %v7172_v44, %v6984_v54  ;;  %v7174_v37 = vpop.f32.mrb[29].mxu0  ;;  %v7213_v27 = vpop.f32.mrb[28].mxu1 }
 0x562   : > { %v7175_v16 = vadd.f32 %v7174_v37, %v6986_v51  ;;  %v7214_v14 = vadd.f32 %v7213_v27, %v7025_v19  ;;  %v7215_v49 = vpop.f32.mrb[29].mxu1  ;;  %v7176_v40 = vpop.f32.mrb[30].mxu0 }
 0x563   : > { %v7301_v32 = vadd.f32 %v7173_v31, %v10871_v36  ;;  %v7216_v57 = vadd.f32 %v7215_v49, %v7027_v18  ;;  %v7177_v3 = vpop.f32.mrb[31].mxu0  ;;  %v7217_v48 = vpop.f32.mrb[30].mxu1 }
 0x564   : > { %v7302_v8 = vadd.f32 %v7175_v16, %v10878_v60  ;;  %v7303_v35 = vadd.f32 %v7214_v14, %v10874_v53  ;;  %v7218_v39 = vpop.f32.mrb[31].mxu1 }
 0x565   : > { %v7304_v9 = vadd.f32 %v7216_v57, %v10882_v55 }
 0x566   : > { %v7314_v6 = vcombine.low %v7301_v32, %v7302_v8 }
 0x567   : > { %v7315_v52 = vcombine.low %v7303_v35, %v7304_v9 }
 0x568   : > { %7320 = vst [vmem:[%s197_s16] sm:$0xff] %v7314_v6  ;;  %v7254_v41 = vpop.f32.mrb[32].mxu0 }
 0x569   : > { %7321 = vst [vmem:[%s197_s16 + $0x8] sm:$0xff] %v7315_v52  ;;  %v7255_v62 = vadd.f32 %v7254_v41, %v7066_v12  ;;  %v7256_v38 = vpop.f32.mrb[33].mxu0  ;;  %v7295_v36 = vpop.f32.mrb[32].mxu1 }
 0x56a   : > { %v7257_v5 = vadd.f32 %v7256_v38, %v7068_v47  ;;  %v7296_v34 = vadd.f32 %v7295_v36, %v7107_v2  ;;  %v7258_v60 = vpop.f32.mrb[34].mxu0  ;;  %v8247_v59 = vpop.f32.mrb[33].mxu1 }
 0x56b   : > { %v7305_v53 = vadd.f32 %v7255_v62, %v10885_v61  ;;  %v7259_v33 = vpop.f32.mrb[35].mxu0  ;;  %v7298_v7 = vpop.f32.mrb[34].mxu1 }
 0x56c   : > { %v7306_v4 = vadd.f32 %v7257_v5, %v10898_v58  ;;  %v7307_v55 = vadd.f32 %v7296_v34, %v10911_v56  ;;  %v8248_v25 = vpop.f32.mrb[35].mxu1 }
 0x56e   : > { %v7316_v23 = vcombine.low %v7305_v53, %v7306_v4  ;;  %7323 = vst [vmem:[%s197_s16 + $0x18] sm:$0xf] %v7307_v55 }
 0x570   : > { %7322 = vst [vmem:[%s197_s16 + $0x10] sm:$0xff] %v7316_v23 }
 0x571 PF: > { %s14_s15 = sadd.s32 1, %s8686_s15  }
 0x572   : > { %p11_p4 = scmp.ge.s32.totalorder %s14_s15, 4  }
 0x574   :  { %13 = sbr.rel (!%p11_p4) target bundleno = 1 (0x1), region = 66 }

</bundles_post_ra>
